<compile_context>
chip_gen: v5e
topology: v5e:2x2
jax: 0.10.0
libtpu: 0.0.40
codegen_flags: <defaults>
</compile_context>

<pallas_src>
import jax
import jax.numpy as jnp
from jax.experimental import pallas as pl
from jax.experimental.pallas import tpu as pltpu

HIDDEN = 1024               # bert-large hidden size (fixed by module __init__)
D_IN = 2 * HIDDEN           # 2048
D_MID = 2 * HIDDEN          # 2048
D_OUT = 2                   # start / end logits
PAD_OUT = 128               # lane-dense padded output width
NEG_SLOPE = 0.01            # nn.LeakyReLU default


def _head_kernel(xa_ref, xb_ref, w1a_ref, w1b_ref, b1_ref, w2_ref, b2_ref,
                 out_ref, acc_ref):
    """Grid: (i over M tiles [parallel], j over D_MID tiles [reduction]).

    For each (i, j): h = leaky_relu(xa @ W1a[:, j] + xb @ W1b[:, j] + b1[j]),
    then acc += h @ W2[j, :].  acc is zeroed at j == 0 and flushed (plus b2)
    at the last j.  All matmul inputs are bf16, accumulation is f32.
    """
    j = pl.program_id(1)

    @pl.when(j == 0)
    def _():
        acc_ref[...] = jnp.zeros_like(acc_ref)

    h = jnp.dot(xa_ref[...], w1a_ref[...], preferred_element_type=jnp.float32)
    h = h + jnp.dot(xb_ref[...], w1b_ref[...],
                    preferred_element_type=jnp.float32)
    h = h + b1_ref[...]                       # (tm, tn) + (1, tn) broadcast
    h = jnp.where(h > 0, h, NEG_SLOPE * h)    # LeakyReLU (f32)

    acc_ref[...] += jnp.dot(h.astype(jnp.bfloat16), w2_ref[...],
                            preferred_element_type=jnp.float32)

    @pl.when(j == pl.num_programs(1) - 1)
    def _():
        out_ref[...] = (acc_ref[...] + b2_ref[...]).astype(out_ref.dtype)


def qa_head_pallas(xa, xb, w1, b1, w2, b2, *, tn=512):
    """xa, xb: (M, 1024) activations (h_last, h_minus3 flattened);
    w1: (2048, 2048); b1: (2048,); w2: (2048, 2); b2: (2,).
    Returns (M, 2) f32 logits.  Weights are [in, out] (transposed vs PyTorch).
    """
    M = xa.shape[0]
    assert xa.shape == (M, HIDDEN) and xb.shape == (M, HIDDEN)
    assert w1.shape == (D_IN, D_MID) and b1.shape == (D_MID,)
    assert w2.shape == (D_MID, D_OUT) and b2.shape == (D_OUT,)
    assert tn % 128 == 0 and D_MID % tn == 0

    # Row tile: 256 fills the 256-row MXU pass on v6e/v7x; small M uses one
    # tile rounded up to a sublane multiple.
    if M >= 256:
        tm = 256
    else:
        tm = max(8, ((M + 7) // 8) * 8)
    m_tiles = pl.cdiv(M, tm)
    M_pad = m_tiles * tm

    # bf16 MXU inputs; f32 accumulation inside the kernel.
    xa_b = xa.astype(jnp.bfloat16)
    xb_b = xb.astype(jnp.bfloat16)
    if M_pad != M:
        pad = ((0, M_pad - M), (0, 0))
        xa_b = jnp.pad(xa_b, pad)
        xb_b = jnp.pad(xb_b, pad)

    w1a = w1[:HIDDEN, :].astype(jnp.bfloat16)
    w1b = w1[HIDDEN:, :].astype(jnp.bfloat16)
    b1_2d = b1.reshape(1, D_MID).astype(jnp.float32)
    # Pad the 2-wide second Linear to 128 lanes (zero columns) so the output
    # store is lane-dense; extra columns cost nothing.
    w2p = jnp.zeros((D_MID, PAD_OUT), jnp.float32).at[:, :D_OUT].set(w2)
    w2p = w2p.astype(jnp.bfloat16)
    b2p = jnp.zeros((1, PAD_OUT), jnp.float32).at[:, :D_OUT].set(
        b2.reshape(1, D_OUT))

    grid = (m_tiles, D_MID // tn)
    out = pl.pallas_call(
        _head_kernel,
        out_shape=jax.ShapeDtypeStruct((M_pad, PAD_OUT), jnp.float32),
        grid_spec=pltpu.PrefetchScalarGridSpec(
            num_scalar_prefetch=0,
            grid=grid,
            in_specs=[
                pl.BlockSpec((tm, HIDDEN), lambda i, j: (i, 0)),    # xa tile
                pl.BlockSpec((tm, HIDDEN), lambda i, j: (i, 0)),    # xb tile
                pl.BlockSpec((HIDDEN, tn), lambda i, j: (0, j)),    # W1a cols
                pl.BlockSpec((HIDDEN, tn), lambda i, j: (0, j)),    # W1b cols
                pl.BlockSpec((1, tn), lambda i, j: (0, j)),         # b1 tile
                pl.BlockSpec((tn, PAD_OUT), lambda i, j: (j, 0)),   # W2 rows
                pl.BlockSpec((1, PAD_OUT), lambda i, j: (0, 0)),    # b2
            ],
            out_specs=pl.BlockSpec((tm, PAD_OUT), lambda i, j: (i, 0)),
            scratch_shapes=[pltpu.VMEM((tm, PAD_OUT), jnp.float32)],
        ),
        compiler_params=pltpu.CompilerParams(
            dimension_semantics=("parallel", "arbitrary"),
        ),
    )(xa_b, xb_b, w1a, w1b, b1_2d, w2p, b2p)
    return out[:M, :D_OUT]


def qa_lang_model_forward(h_last, h_minus3, params):
    """Mirrors QA_Lang_Model.forward after the BERT backbone.

    h_last, h_minus3: (B, S, HIDDEN) — hidden_states[-1], hidden_states[-3].
    Returns (start_logits, end_logits), each (B, S).
    """
    B, S, H = h_last.shape
    assert H == HIDDEN and h_minus3.shape == (B, S, HIDDEN)
    xa = h_last.reshape(B * S, HIDDEN).astype(jnp.float32)
    xb = h_minus3.reshape(B * S, HIDDEN).astype(jnp.float32)
    logits = qa_head_pallas(xa, xb, params["w1"], params["b1"],
                            params["w2"], params["b2"])      # (B*S, 2)
    logits = logits.reshape(B, S, D_OUT)
    start_logits = logits[..., 0]
    end_logits = logits[..., 1]
    return start_logits, end_logits


def init_params(key):
    k1, k2, k3, k4 = jax.random.split(key, 4)
    scale1 = 1.0 / jnp.sqrt(jnp.float32(D_IN))
    scale2 = 1.0 / jnp.sqrt(jnp.float32(D_MID))
    return {
        "w1": jax.random.uniform(k1, (D_IN, D_MID), jnp.float32,
                                 -scale1, scale1),
        "b1": jax.random.uniform(k2, (D_MID,), jnp.float32, -scale1, scale1),
        "w2": jax.random.uniform(k3, (D_MID, D_OUT), jnp.float32,
                                 -scale2, scale2),
        "b2": jax.random.uniform(k4, (D_OUT,), jnp.float32, -scale2, scale2),
    }


def _reference(h_last, h_minus3, params):
    """Pure-JAX reference mirroring the module math.  Matmul inputs are
    rounded to bf16 (to match the kernel's bf16-fed MXU) but accumulation and
    all elementwise math stay f32."""
    x = jnp.concatenate([h_last, h_minus3], axis=-1).astype(jnp.float32)
    xq = x.astype(jnp.bfloat16).astype(jnp.float32)
    w1q = params["w1"].astype(jnp.bfloat16).astype(jnp.float32)
    h = jnp.dot(xq, w1q, precision=jax.lax.Precision.HIGHEST) + params["b1"]
    h = jnp.where(h > 0, h, NEG_SLOPE * h)
    hq = h.astype(jnp.bfloat16).astype(jnp.float32)
    w2q = params["w2"].astype(jnp.bfloat16).astype(jnp.float32)
    logits = jnp.dot(hq, w2q, precision=jax.lax.Precision.HIGHEST) + params["b2"]
    return logits[..., 0], logits[..., 1]


if __name__ == "__main__":
    key = jax.random.PRNGKey(0)
    kp, kh1, kh2 = jax.random.split(key, 3)

    B, S = 2, 8   # small batch / sequence; hidden is fixed at 1024 by module
    params = init_params(kp)
    h_last = jax.random.normal(kh1, (B, S, HIDDEN), jnp.float32)
    h_minus3 = jax.random.normal(kh2, (B, S, HIDDEN), jnp.float32)

    start_logits, end_logits = qa_lang_model_forward(h_last, h_minus3, params)
    jax.block_until_ready((start_logits, end_logits))

    ref_start, ref_end = _reference(h_last, h_minus3, params)
    assert start_logits.shape == (B, S) and end_logits.shape == (B, S)
    assert jnp.allclose(start_logits, ref_start, atol=2e-3, rtol=2e-3)
    assert jnp.allclose(end_logits, ref_end, atol=2e-3, rtol=2e-3)

    print("KERNEL_OK")
</pallas_src>

<mosaic_0001>
module attributes {stable_mosaic.version = 11 : i64} {
  func.func @_head_kernel(%arg0: i32, %arg1: i32, %arg2: memref<16x1024xbf16, #tpu.memory_space<vmem>>, %arg3: memref<16x1024xbf16, #tpu.memory_space<vmem>>, %arg4: memref<1024x512xbf16, #tpu.memory_space<vmem>>, %arg5: memref<1024x512xbf16, #tpu.memory_space<vmem>>, %arg6: memref<1x512xf32, #tpu.memory_space<vmem>>, %arg7: memref<512x128xbf16, #tpu.memory_space<vmem>>, %arg8: memref<1x128xf32, #tpu.memory_space<vmem>>, %arg9: memref<16x128xf32, #tpu.memory_space<vmem>>, %arg10: memref<16x128xf32, #tpu.memory_space<vmem>>) attributes {dimension_semantics = [#tpu.dimension_semantics<parallel>, #tpu.dimension_semantics<arbitrary>], iteration_bounds = array<i64: 1, 4>, scalar_prefetch = 0 : i64, scratch_operands = 1 : i64, tpu.core_type = #tpu.core_type<tc>, window_params = [{transform_indices = @transform_0, window_bounds = array<i64: 16, 1024>}, {transform_indices = @transform_1, window_bounds = array<i64: 16, 1024>}, {transform_indices = @transform_2, window_bounds = array<i64: 1024, 512>}, {transform_indices = @transform_3, window_bounds = array<i64: 1024, 512>}, {transform_indices = @transform_4, window_bounds = array<i64: 1, 512>}, {transform_indices = @transform_5, window_bounds = array<i64: 512, 128>}, {pipeline_mode = #tpu.pipeline_mode<synchronous>, transform_indices = @transform_6, window_bounds = array<i64: 1, 128>}, {transform_indices = @transform_7, window_bounds = array<i64: 16, 128>}]} {
    %c0_i32 = arith.constant 0 : i32
    %0 = arith.cmpi eq, %arg1, %c0_i32 : i32
    %1 = arith.extui %0 : i1 to i32
    %c0_i32_0 = arith.constant 0 : i32
    %2 = arith.cmpi ne, %1, %c0_i32_0 : i32
    scf.if %2 {
      %cst_21 = arith.constant 0.000000e+00 : f32
      %27 = vector.broadcast %cst_21 : f32 to vector<16x128xf32>
      %c0_22 = arith.constant 0 : index
      %c0_23 = arith.constant 0 : index
      %28 = vector.load %arg10[%c0_22, %c0_23] : memref<16x128xf32, #tpu.memory_space<vmem>>, vector<16x128xf32>
      tpu.vector_store %arg10[%c0_22, %c0_23], %27 {strides = array<i32>} : memref<16x128xf32, #tpu.memory_space<vmem>>, vector<16x128xf32>,
    } else {
    }
    %c0 = arith.constant 0 : index
    %c0_1 = arith.constant 0 : index
    %3 = vector.load %arg2[%c0, %c0_1] : memref<16x1024xbf16, #tpu.memory_space<vmem>>, vector<16x1024xbf16>
    %c0_2 = arith.constant 0 : index
    %c0_3 = arith.constant 0 : index
    %4 = vector.load %arg4[%c0_2, %c0_3] : memref<1024x512xbf16, #tpu.memory_space<vmem>>, vector<1024x512xbf16>
    %cst = arith.constant dense<0.000000e+00> : vector<16x512xf32>
    %5 = tpu.matmul %3, %4, %cst {dimension_numbers = #tpu.dot_dimension_numbers<[1], [0], [0], [1], [0, 0, 1, 1], [], []>} : vector<16x1024xbf16>, vector<1024x512xbf16>, vector<16x512xf32> -> vector<16x512xf32>
    %c0_4 = arith.constant 0 : index
    %c0_5 = arith.constant 0 : index
    %6 = vector.load %arg3[%c0_4, %c0_5] : memref<16x1024xbf16, #tpu.memory_space<vmem>>, vector<16x1024xbf16>
    %c0_6 = arith.constant 0 : index
    %c0_7 = arith.constant 0 : index
    %7 = vector.load %arg5[%c0_6, %c0_7] : memref<1024x512xbf16, #tpu.memory_space<vmem>>, vector<1024x512xbf16>
    %cst_8 = arith.constant dense<0.000000e+00> : vector<16x512xf32>
    %8 = tpu.matmul %6, %7, %cst_8 {dimension_numbers = #tpu.dot_dimension_numbers<[1], [0], [0], [1], [0, 0, 1, 1], [], []>} : vector<16x1024xbf16>, vector<1024x512xbf16>, vector<16x512xf32> -> vector<16x512xf32>
    %9 = arith.addf %5, %8 : vector<16x512xf32>
    %c0_9 = arith.constant 0 : index
    %c0_10 = arith.constant 0 : index
    %10 = vector.load %arg6[%c0_9, %c0_10] : memref<1x512xf32, #tpu.memory_space<vmem>>, vector<1x512xf32>
    %11 = vector.broadcast %10 : vector<1x512xf32> to vector<16x512xf32>
    %12 = arith.addf %9, %11 : vector<16x512xf32>
    %cst_11 = arith.constant 0.000000e+00 : f32
    %13 = vector.broadcast %cst_11 : f32 to vector<16x512xf32>
    %14 = arith.cmpf ogt, %12, %13 : vector<16x512xf32>
    %cst_12 = arith.constant 0.00999999977 : f32
    %15 = vector.broadcast %cst_12 : f32 to vector<16x512xf32>
    %16 = arith.mulf %15, %12 : vector<16x512xf32>
    %17 = arith.select %14, %12, %16 : vector<16x512xi1>, vector<16x512xf32>
    %c0_13 = arith.constant 0 : index
    %c0_14 = arith.constant 0 : index
    %18 = vector.load %arg10[%c0_13, %c0_14] : memref<16x128xf32, #tpu.memory_space<vmem>>, vector<16x128xf32>
    %19 = arith.truncf %17 : vector<16x512xf32> to vector<16x512xbf16>
    %c0_15 = arith.constant 0 : index
    %c0_16 = arith.constant 0 : index
    %20 = vector.load %arg7[%c0_15, %c0_16] : memref<512x128xbf16, #tpu.memory_space<vmem>>, vector<512x128xbf16>
    %cst_17 = arith.constant dense<0.000000e+00> : vector<16x128xf32>
    %21 = tpu.matmul %19, %20, %cst_17 {dimension_numbers = #tpu.dot_dimension_numbers<[1], [0], [0], [1], [0, 0, 1, 1], [], []>} : vector<16x512xbf16>, vector<512x128xbf16>, vector<16x128xf32> -> vector<16x128xf32>
    %22 = arith.addf %18, %21 : vector<16x128xf32>
    %c0_18 = arith.constant 0 : index
    %c0_19 = arith.constant 0 : index
    %23 = vector.load %arg10[%c0_18, %c0_19] : memref<16x128xf32, #tpu.memory_space<vmem>>, vector<16x128xf32>
    tpu.vector_store %arg10[%c0_18, %c0_19], %22 {strides = array<i32>} : memref<16x128xf32, #tpu.memory_space<vmem>>, vector<16x128xf32>,
    %c3_i32 = arith.constant 3 : i32
    %24 = arith.cmpi eq, %arg1, %c3_i32 : i32
    %25 = arith.extui %24 : i1 to i32
    %c0_i32_20 = arith.constant 0 : i32
    %26 = arith.cmpi ne, %25, %c0_i32_20 : i32
    scf.if %26 {
      %c0_21 = arith.constant 0 : index
      %c0_22 = arith.constant 0 : index
      %27 = vector.load %arg10[%c0_21, %c0_22] : memref<16x128xf32, #tpu.memory_space<vmem>>, vector<16x128xf32>
      %c0_23 = arith.constant 0 : index
      %c0_24 = arith.constant 0 : index
      %28 = vector.load %arg8[%c0_23, %c0_24] : memref<1x128xf32, #tpu.memory_space<vmem>>, vector<1x128xf32>
      %29 = vector.broadcast %28 : vector<1x128xf32> to vector<16x128xf32>
      %30 = arith.addf %27, %29 : vector<16x128xf32>
      %c0_25 = arith.constant 0 : index
      %c0_26 = arith.constant 0 : index
      %31 = vector.load %arg9[%c0_25, %c0_26] : memref<16x128xf32, #tpu.memory_space<vmem>>, vector<16x128xf32>
      tpu.vector_store %arg9[%c0_25, %c0_26], %30 {strides = array<i32>} : memref<16x128xf32, #tpu.memory_space<vmem>>, vector<16x128xf32>,
    } else {
    }
    return
  }
  func.func @transform_0(%arg0: i32, %arg1: i32) -> (i32, i32) {
    %c0_i32 = arith.constant 0 : i32
    %c0_i32_0 = arith.constant 0 : i32
    return %arg0, %c0_i32 : i32, i32
  }
  func.func @transform_1(%arg0: i32, %arg1: i32) -> (i32, i32) {
    %c0_i32 = arith.constant 0 : i32
    %c0_i32_0 = arith.constant 0 : i32
    return %arg0, %c0_i32 : i32, i32
  }
  func.func @transform_2(%arg0: i32, %arg1: i32) -> (i32, i32) {
    %c0_i32 = arith.constant 0 : i32
    %c0_i32_0 = arith.constant 0 : i32
    return %c0_i32, %arg1 : i32, i32
  }
  func.func @transform_3(%arg0: i32, %arg1: i32) -> (i32, i32) {
    %c0_i32 = arith.constant 0 : i32
    %c0_i32_0 = arith.constant 0 : i32
    return %c0_i32, %arg1 : i32, i32
  }
  func.func @transform_4(%arg0: i32, %arg1: i32) -> (i32, i32) {
    %c0_i32 = arith.constant 0 : i32
    %c0_i32_0 = arith.constant 0 : i32
    return %c0_i32, %arg1 : i32, i32
  }
  func.func @transform_5(%arg0: i32, %arg1: i32) -> (i32, i32) {
    %c0_i32 = arith.constant 0 : i32
    %c0_i32_0 = arith.constant 0 : i32
    return %arg1, %c0_i32 : i32, i32
  }
  func.func @transform_6(%arg0: i32, %arg1: i32) -> (i32, i32) {
    %c0_i32 = arith.constant 0 : i32
    %c0_i32_0 = arith.constant 0 : i32
    %c0_i32_1 = arith.constant 0 : i32
    return %c0_i32, %c0_i32_0 : i32, i32
  }
  func.func @transform_7(%arg0: i32, %arg1: i32) -> (i32, i32) {
    %c0_i32 = arith.constant 0 : i32
    %c0_i32_0 = arith.constant 0 : i32
    return %arg0, %c0_i32 : i32, i32
  }
}

</mosaic_0001>

<bundles_post_ra>
// kernel: tpu_custom_call.1
= control target key start
LH: loop header
LB: loop body
LE: loop exit
PB: predicated region body
PF: predicated region fallthrough
CT: control target
= control target key end

     0   :  { %s9891_s0 = inlined_call_operand.hbm [shape: bf16[16,1024], index: 0, kind: input, shape index: {}]   ;;  %s9892_s1 = inlined_call_operand.hbm [shape: bf16[16,1024], index: 1, kind: input, shape index: {}]   ;;  %s9893_s2 = inlined_call_operand.hbm [shape: bf16[1024,2048], index: 2, kind: input, shape index: {}]   ;;  %s9894_s3 = inlined_call_operand.hbm [shape: bf16[1024,2048], index: 3, kind: input, shape index: {}]   ;;  %s9895_s4 = inlined_call_operand.hbm [shape: f32[1,2048], index: 4, kind: input, shape index: {}]   ;;  %s9896_s5 = inlined_call_operand.hbm [shape: bf16[2048,128], index: 5, kind: input, shape index: {}]   ;;  %s9897_s6 = inlined_call_operand.hbm [shape: f32[1,128], index: 6, kind: input, shape index: {}]   ;;  %s9898_s7 = inlined_call_operand.hbm [shape: f32[16,128], index: 7, kind: output, shape index: {}]  }
   0x1   :  { %9904 = sst [smem:[#allocation25_spill]] %s9891_s0 }
   0x2   :  { %9905 = sst [smem:[#allocation26_spill]] %s9893_s2 }
   0x3   :  { %9906 = sst [smem:[#allocation27_spill]] %s9898_s7 }
   0x4   :  { %12 = vsyncpa [#allocation4], 0 }
   0x5   :  { %13 = vsyncpa [#allocation7], 0 }
   0x6   :  { %14 = vsyncpa [#allocation5], 0  ;;  %s8416_s24 = smov 0   ;;  %s8418_s25 = smov 0  }
   0x7   :  { %s8420_s26 = smov 0   ;;  %s8422_s27 = smov 0  }
   0x8   :  { %s8424_s28 = smov 0   ;;  %s8426_s29 = smov 0  }
   0x9 LB: > { %9907 = sst [smem:[#allocation19_spill]] %s8348_s26  ;;  %s8445_s30 = sadd.s32 4294967295, %s8360_s29   ;;  %s8360_s29 = sphi %s8426_s29, %s20_s29   ;;  %s8356_s28 = sphi %s8424_s28, %s9933_s28   ;;  %s8352_s27 = sphi %s8422_s27, %s9932_s27   ;;  %s8348_s26 = sphi %s8420_s26, %s9928_s26   ;;  %s8344_s25 = sphi %s8418_s25, %s9931_s25   ;;  %s8340_s24 = sphi %s8416_s24, %s9930_s24  }
   0xa   : > { %9908 = sst [smem:[#allocation20_spill]] %s8352_s27  ;;  %s91_s8 = sadd.s32 1, %s8348_s26 }
   0xb   : > { %9909 = sst [smem:[#allocation21_spill]] %s8360_s29  ;;  %p98_p0 = scmp.ne.s32.totalorder %s8348_s26, %s8344_s25 }
   0xc   : > { %p99_p1 = scmp.eq.s32.totalorder %s8360_s29, 0  ;;  %p104_p2 = scmp.ne.s32.totalorder %s8344_s25, %s8340_s24 }
   0xd   : > { %p105_p3 = scmp.eq.s32.totalorder %s8445_s30, 0  ;;  %p5104_p5 = scmp.ge.s32.totalorder %s8360_s29, 1 }
   0xe   : > { %p8453_p4 = por %p99_p1, %p98_p0  ;;  %p240_p7 = scmp.lt.s32.totalorder %s8360_s29, 5 }
   0xf   : > { %p8460_p6 = por %p105_p3, %p104_p2  ;;  %s9912_s0 = sld [smem:[#allocation25_spill]] }
  0x10   : > { %p8468_p8 = pnand %p5104_p5, %p240_p7  ;;  %s8362_s15 = smov [#allocation3]  }
  0x11   : > { %s257_s16 = sshll.u32 %s8362_s15, 4  ;;  %p7987_p11 = scmp.lt.s32.totalorder %s8360_s29, 4  ;;  %s258_s16 = int_to_ptr.vmem [resolvable:$true] %s257_s16 }
  0x12   : > { %p7961_p9 = pneg %p8468_p8  ;;  %s9899_s18 = smov 512  }
  0x13   : > { %s9900_s19 = smov 32   ;;  %p8488_p12 = pnand %p7987_p11, %p8453_p4 }
  0x14   : > { %p8476_p10 = pnand %p7961_p9, %p105_p3  ;;  %s29_s21 = sadd.s32 1, %s8356_s28 }
  0x15   : > { %s255_s13 = sshll.u32 %s9912_s0, 4  ;;  %p30_p13 = scmp.ge.s32.totalorder %s29_s21, 4  ;;  %s256_s13 = int_to_ptr.hbm [resolvable:$true] %s255_s13 }
  0x16   : > { %7964 = dma.hbm_to_vmem [thread:$0]  (!%p8476_p10), %s256_s13, 1024, %s258_s16, [#allocation4], %s9899_s18, %s9899_s18, %s9900_s19  }
  0x17   : > { %s301_s22 = sand.u32 1, %s8360_s29   ;;  %s9935_s21 = smov (%p30_p13, %s29_s21), 0 }
  0x18   : > { %9916 = sst [smem:[#allocation22_spill]] %s9935_s21  ;;  %s8497_s23 = sand.u32 1, %s8348_s26  }
  0x19   : > { %s7374_s24 = sshll.u32 %s8356_s28, 4  ;;  %s88_s11 = ssub.s32 %s8356_s28, %s9935_s21 }
  0x1a   : > { %s5109_s12 = sshll.u32 %s8497_s23, 11  ;;  %p89_p0 = scmp.eq.s32.totalorder %s88_s11, 0 }
  0x1b   : > { %s9917_s2 = sld [smem:[#allocation26_spill]]  ;;  %s305_s16 = scalar_lea.vmem [#allocation8], %s5109_s12 }
  0x1c   : > { %s313_s18 = sshll.u32 %s305_s16, 4  ;;  %s8511_s29 = scalar_lea.sflag [#allocation4], %s301_s22  ;;  %s314_s18 = int_to_ptr.vmem [resolvable:$true] %s313_s18 }
  0x1d   : > { %s8509_s19 = scalar_select %p89_p0, %s8348_s26, %s91_s8  }
  0x1e   : > { %s8365_s21 = smov 1024   ;;  %s8366_s11 = smov 256  }
  0x1f   : > { %9918 = sst [smem:[#allocation23_spill]] %s8509_s19  ;;  %s8367_s7 = smov 16  }
  0x20   : > { %s332_s8 = scalar_lea.hbm %s9894_s3, %s7374_s24  ;;  %s273_s26 = sshll.u32 %s9892_s1, 4  ;;  %s274_s26 = int_to_ptr.hbm [resolvable:$true] %s273_s26 }
  0x21   : > { %s310_s15 = scalar_lea.hbm %s9917_s2, %s7374_s24  ;;  %s333_s16 = sshll.u32 %s332_s8, 4  ;;  %s334_s16 = int_to_ptr.hbm [resolvable:$true] %s333_s16 }
  0x22   : > { %s311_s0 = sshll.u32 %s310_s15, 4  ;;  %s327_s15 = scalar_lea.vmem [#allocation9], %s5109_s12  ;;  %s312_s0 = int_to_ptr.hbm [resolvable:$true] %s311_s0 }
  0x23   : > { %7974 = dma.hbm_to_vmem [thread:$0]  (!%p8488_p12), %s312_s0, 32768, %s314_s18, %s8511_s29, %s8365_s21, %s8366_s11, %s8367_s7  }
  0x24   : > { %s335_s2 = sshll.u32 %s327_s15, 4  ;;  %s8368_s27 = smov [#allocation6]   ;;  %s336_s2 = int_to_ptr.vmem [resolvable:$true] %s335_s2 }
  0x25   : > { %7977 = dma.hbm_to_vmem [thread:$0]  (!%p8488_p12), %s334_s16, 32768, %s336_s2, %s8511_s29, %s8365_s21, %s8366_s11, %s8367_s7  }
  0x26   : > { %s275_s0 = sshll.u32 %s8368_s27, 4  ;;  %s5115_s18 = sshll.u32 %s8497_s23, 2  ;;  %s276_s0 = int_to_ptr.vmem [resolvable:$true] %s275_s0 }
  0x27   : > { %s9919_s24 = smov 32   ;;  %s9920_s12 = smov 512  }
  0x28   : > { %7967 = dma.hbm_to_vmem [thread:$0]  (!%p8476_p10), %s274_s26, 1024, %s276_s0, [#allocation7], %s9920_s12, %s9920_s12, %s9919_s24  }
  0x29   : > { %s5116_s2 = sshll.u32 %s8356_s28, 2  ;;  %s349_s11 = scalar_lea.vmem [#allocation10], %s5115_s18 }
  0x2a   : > { %s353_s19 = scalar_lea.hbm %s9895_s4, %s5116_s2  ;;  %s357_s13 = sshll.u32 %s349_s11, 4  ;;  %s358_s13 = int_to_ptr.vmem [resolvable:$true] %s357_s13 }
  0x2b   : > { %s355_s9 = sshll.u32 %s353_s19, 4  ;;  %s288_s16 = sshll.u32 %s9897_s6, 4  ;;  %s356_s9 = int_to_ptr.hbm [resolvable:$true] %s355_s9  ;;  %s289_s16 = int_to_ptr.hbm [resolvable:$true] %s288_s16 }
  0x2c   : > { %7980 = dma.hbm_to_vmem [thread:$0]  (!%p8488_p12), %s356_s9, 64, %s358_s13, %s8511_s29  }
  0x2d   : > { %s8369_s26 = smov [#allocation12]   ;;  %s5117_s22 = sshll.u32 %s8497_s23, 8 }
  0x2e   : > { %s290_s15 = sshll.u32 %s8369_s26, 4  ;;  %s7376_s0 = sshll.u32 %s8356_s28, 8  ;;  %s291_s15 = int_to_ptr.vmem [resolvable:$true] %s290_s15 }
  0x2f   : > { %7970 = dma.hbm_to_vmem [thread:$0]  (!%p8476_p10), %s289_s16, 16, %s291_s15, [#allocation7]  }
  0x30   : > { %s368_s18 = scalar_lea.vmem [#allocation11], %s5117_s22  ;;  %s373_s7 = scalar_lea.hbm %s9896_s5, %s7376_s0 }
  0x31   : > { %s376_s24 = sshll.u32 %s368_s18, 4  ;;  %s374_s21 = sshll.u32 %s373_s7, 4  ;;  %s377_s24 = int_to_ptr.vmem [resolvable:$true] %s376_s24  ;;  %s375_s21 = int_to_ptr.hbm [resolvable:$true] %s374_s21 }
  0x32   : > { %s8370_s19 = smov 64   ;;  %s8371_s11 = smov 4  }
  0x33   : > { %7983 = dma.hbm_to_vmem [thread:$0]  (!%p8488_p12), %s375_s21, 4096, %s377_s24, %s8511_s29, %s8370_s19, %s8370_s19, %s8371_s11  }
  0x34   : > { %388 = sbr.rel (%p8468_p8) target bundleno = 918 (0x396), region = 48 }
  0x39   : > { %8319 = dma.done.wait (%p105_p3), [#allocation4], 1024  }
  0x3a   : > { %8321 = vsyncadd (%p105_p3), [#allocation4], 4294966272 }
  0x3b   : > { %8323 = dma.done.wait (%p105_p3), [#allocation7], 1024  }
  0x3c   : > { %8325 = vsyncadd (%p105_p3), [#allocation7], 4294966272  ;;  %s400_s17 = sand.u32 1, %s8445_s30   ;;  %s402_s29 = sand.u32 1, %s8344_s25  }
  0x3d   : > { %s5123_s20 = sshll.u32 %s402_s29, 11  ;;  %s401_s14 = scalar_lea.sflag [#allocation4], %s400_s17 }
  0x3e   : > { %s8563_s23 = scalar_lea.vmem [#allocation8], %s5123_s20 }
  0x3f   : > { %8327 = dma.done.wait (%p8460_p6), %s401_s14, 69696  }
  0x40   : > { %8329 = vsyncadd (%p8460_p6), %s401_s14, 4294897600  ;;  %s5125_s13 = sshll.u32 %s402_s29, 2  ;;  %s5126_s9 = sshll.u32 %s402_s29, 8 }
  0x41   : > { %s8569_s27 = scalar_lea.vmem [#allocation9], %s5123_s20  ;;  %s8571_s8 = scalar_lea.vmem [#allocation10], %s5125_s13 }
  0x42   : > { %s8573_s16 = scalar_lea.vmem [#allocation11], %s5126_s9 }
  0x43   : > { %8331 = dma.done.wait (%p105_p3), [#allocation7], 16  }
  0x44   : > { %8333 = vsyncadd (%p105_p3), [#allocation7], 4294967280  ;;  %s9921_s26 = sld [smem:[#allocation20_spill]] }
  0x4a   : > { %p5128_p1 = scmp.ne.s32.totalorder %s9921_s26, 0 }
  0x4c   : > { %491 = sbr.rel (%p5128_p1) target bundleno = 84 (0x54), region = 80 }
  0x51   : > { %v8372_v0 = vmov 0.0  }
  0x52   : > { %492 = vst [vmem:[#allocation2] sm:$0xff] %v8372_v0 }
  0x53   : > { %493 = vst [vmem:[#allocation2 + $0x8] sm:$0xff] %v8372_v0 }
  0x54 PF: > { %v5275_v1 = vld [vmem:[%s8569_s27 + $0xe0] sm:$0xf]  ;;  %v7679_v2 = vld [vmem:[%s8569_s27 + $0xec] sm:$0xf0]  ;;  %s9924_s10 = sld [smem:[#allocation20_spill]] }
  0x55   : > { %v5403_v3 = vld [vmem:[%s8569_s27 + $0x1e0] sm:$0xf]  ;;  %v5276_v4 = vor.u32 %v7679_v2, %v5275_v1  ;;  %v7711_v5 = vld [vmem:[%s8569_s27 + $0x1ec] sm:$0xf0] }
  0x56   : > { %v5531_v6 = vld [vmem:[%s8569_s27 + $0x2e0] sm:$0xf]  ;;  %v7743_v7 = vld [vmem:[%s8569_s27 + $0x2ec] sm:$0xf0]  ;;  %v5404_v8 = vor.u32 %v7711_v5, %v5403_v3 }
  0x57   : > { %v5532_v9 = vor.u32 %v7743_v7, %v5531_v6  ;;  %v5659_v10 = vld [vmem:[%s8569_s27 + $0x3e0] sm:$0xf]  ;;  %v7775_v11 = vld [vmem:[%s8569_s27 + $0x3ec] sm:$0xf0]  ;;  %2342 = vmatpush.bf16.msra.mxu0 %v5276_v4 }
  0x58   : > { %v5259_v12 = vld [vmem:[%s8569_s27 + $0xc0] sm:$0xf]  ;;  %v5660_v13 = vor.u32 %v7775_v11, %v5659_v10  ;;  %v7675_v14 = vld [vmem:[%s8569_s27 + $0xcc] sm:$0xf0]  ;;  %2356 = vmatpush.bf16.msra.mxu1 %v5404_v8 }
  0x59   : > { %v5387_v15 = vld [vmem:[%s8569_s27 + $0x1c0] sm:$0xf]  ;;  %v7707_v16 = vld [vmem:[%s8569_s27 + $0x1cc] sm:$0xf0]  ;;  %2370 = vmatpush.bf16.msra.mxu2 %v5532_v9  ;;  %v5260_v17 = vor.u32 %v7675_v14, %v5259_v12 }
  0x5a   : > { %v5388_v18 = vor.u32 %v7707_v16, %v5387_v15  ;;  %v5515_v19 = vld [vmem:[%s8569_s27 + $0x2c0] sm:$0xf]  ;;  %v7739_v20 = vld [vmem:[%s8569_s27 + $0x2cc] sm:$0xf0]  ;;  %2384 = vmatpush.bf16.msra.mxu3 %v5660_v13  ;;  %p7369_p2 = scmp.ne.s32.totalorder %s9924_s10, 3 }
  0x5b   : > { %v5643_v21 = vld [vmem:[%s8569_s27 + $0x3c0] sm:$0xf]  ;;  %v5516_v22 = vor.u32 %v7739_v20, %v5515_v19  ;;  %v7771_v23 = vld [vmem:[%s8569_s27 + $0x3cc] sm:$0xf0]  ;;  %2343 = vmatpush.bf16.msra.mxu0 %v5260_v17 }
  0x5c   : > { %v5243_v24 = vld [vmem:[%s8569_s27 + $0xa0] sm:$0xf]  ;;  %v7671_v25 = vld [vmem:[%s8569_s27 + $0xac] sm:$0xf0]  ;;  %v5644_v26 = vor.u32 %v7771_v23, %v5643_v21  ;;  %2357 = vmatpush.bf16.msra.mxu1 %v5388_v18 }
  0x5d   : > { %v5371_v27 = vld [vmem:[%s8569_s27 + $0x1a0] sm:$0xf]  ;;  %v7703_v28 = vld [vmem:[%s8569_s27 + $0x1ac] sm:$0xf0]  ;;  %v5244_v30 = vor.u32 %v7671_v25, %v5243_v24  ;;  %2371 = vmatpush.bf16.msra.mxu2 %v5516_v22 }
  0x5e   : > { %v5499_v29 = vld [vmem:[%s8569_s27 + $0x2a0] sm:$0xf]  ;;  %v7735_v31 = vld [vmem:[%s8569_s27 + $0x2ac] sm:$0xf0]  ;;  %v5372_v34 = vor.u32 %v7703_v28, %v5371_v27  ;;  %2385 = vmatpush.bf16.msra.mxu3 %v5644_v26 }
  0x5f   : > { %v5627_v32 = vld [vmem:[%s8569_s27 + $0x3a0] sm:$0xf]  ;;  %v7767_v33 = vld [vmem:[%s8569_s27 + $0x3ac] sm:$0xf0]  ;;  %v5500_v35 = vor.u32 %v7735_v31, %v5499_v29  ;;  %2344 = vmatpush.bf16.msra.mxu0 %v5244_v30 }
  0x60   : > { %v5227_v36 = vld [vmem:[%s8569_s27 + $0x80] sm:$0xf]  ;;  %v7667_v37 = vld [vmem:[%s8569_s27 + $0x8c] sm:$0xf0]  ;;  %v5628_v39 = vor.u32 %v7767_v33, %v5627_v32  ;;  %2358 = vmatpush.bf16.msra.mxu1 %v5372_v34 }
  0x61   : > { %v5355_v38 = vld [vmem:[%s8569_s27 + $0x180] sm:$0xf]  ;;  %v7699_v40 = vld [vmem:[%s8569_s27 + $0x18c] sm:$0xf0]  ;;  %v5228_v45 = vor.u32 %v7667_v37, %v5227_v36  ;;  %2372 = vmatpush.bf16.msra.mxu2 %v5500_v35 }
  0x62   : > { %v5483_v41 = vld [vmem:[%s8569_s27 + $0x280] sm:$0xf]  ;;  %v7731_v42 = vld [vmem:[%s8569_s27 + $0x28c] sm:$0xf0]  ;;  %v5356_v46 = vor.u32 %v7699_v40, %v5355_v38  ;;  %2386 = vmatpush.bf16.msra.mxu3 %v5628_v39 }
  0x63   : > { %v5611_v43 = vld [vmem:[%s8569_s27 + $0x380] sm:$0xf]  ;;  %v7763_v44 = vld [vmem:[%s8569_s27 + $0x38c] sm:$0xf0]  ;;  %v5484_v47 = vor.u32 %v7731_v42, %v5483_v41  ;;  %2345 = vmatpush.bf16.msra.mxu0 %v5228_v45 }
  0x64   : > { %v5211_v48 = vld [vmem:[%s8569_s27 + $0x60] sm:$0xf]  ;;  %v7663_v49 = vld [vmem:[%s8569_s27 + $0x6c] sm:$0xf0]  ;;  %v5612_v51 = vor.u32 %v7763_v44, %v5611_v43  ;;  %2359 = vmatpush.bf16.msra.mxu1 %v5356_v46 }
  0x65   : > { %v5339_v50 = vld [vmem:[%s8569_s27 + $0x160] sm:$0xf]  ;;  %v7695_v52 = vld [vmem:[%s8569_s27 + $0x16c] sm:$0xf0]  ;;  %v5212_v57 = vor.u32 %v7663_v49, %v5211_v48  ;;  %2373 = vmatpush.bf16.msra.mxu2 %v5484_v47 }
  0x66   : > { %v5467_v53 = vld [vmem:[%s8569_s27 + $0x260] sm:$0xf]  ;;  %v7727_v54 = vld [vmem:[%s8569_s27 + $0x26c] sm:$0xf0]  ;;  %v5340_v58 = vor.u32 %v7695_v52, %v5339_v50  ;;  %2387 = vmatpush.bf16.msra.mxu3 %v5612_v51 }
  0x67   : > { %v5595_v55 = vld [vmem:[%s8569_s27 + $0x360] sm:$0xf]  ;;  %v7759_v56 = vld [vmem:[%s8569_s27 + $0x36c] sm:$0xf0]  ;;  %v5468_v59 = vor.u32 %v7727_v54, %v5467_v53  ;;  %2346 = vmatpush.bf16.msra.mxu0 %v5212_v57 }
  0x68   : > { %v5195_v60 = vld [vmem:[%s8569_s27 + $0x40] sm:$0xf]  ;;  %v7659_v61 = vld [vmem:[%s8569_s27 + $0x4c] sm:$0xf0]  ;;  %v5596_v63 = vor.u32 %v7759_v56, %v5595_v55  ;;  %2360 = vmatpush.bf16.msra.mxu1 %v5340_v58  ;;  %v5139_v55 = vld [vmem:[#allocation6 + $0x8] sm:$0xf] }
  0x69   : > { %v5323_v62 = vld [vmem:[%s8569_s27 + $0x140] sm:$0xf]  ;;  %v7691_v0 = vld [vmem:[%s8569_s27 + $0x14c] sm:$0xf0]  ;;  %v5196_v5 = vor.u32 %v7659_v61, %v5195_v60  ;;  %2374 = vmatpush.bf16.msra.mxu2 %v5468_v59  ;;  %v7646_v60 = vld [vmem:[#allocation6 + $0x24] sm:$0xf0] }
  0x6a   : > { %v5451_v1 = vld [vmem:[%s8569_s27 + $0x240] sm:$0xf]  ;;  %v7723_v2 = vld [vmem:[%s8569_s27 + $0x24c] sm:$0xf0]  ;;  %v5324_v6 = vor.u32 %v7691_v0, %v5323_v62  ;;  %2388 = vmatpush.bf16.msra.mxu3 %v5596_v63 }
  0x6b   : > { %v5579_v3 = vld [vmem:[%s8569_s27 + $0x340] sm:$0xf]  ;;  %v7755_v4 = vld [vmem:[%s8569_s27 + $0x34c] sm:$0xf0]  ;;  %v5452_v7 = vor.u32 %v7723_v2, %v5451_v1  ;;  %2347 = vmatpush.bf16.msra.mxu0 %v5196_v5  ;;  %v8667_v2 = vor.u32 %v7646_v60, %v5139_v55 }
  0x6c   : > { %v5179_v8 = vld [vmem:[%s8569_s27 + $0x20] sm:$0xf]  ;;  %v7655_v9 = vld [vmem:[%s8569_s27 + $0x2c] sm:$0xf0]  ;;  %v5580_v11 = vor.u32 %v7755_v4, %v5579_v3  ;;  %2361 = vmatpush.bf16.msra.mxu1 %v5324_v6 }
  0x6d   : > { %v5307_v10 = vld [vmem:[%s8569_s27 + $0x120] sm:$0xf]  ;;  %v7687_v12 = vld [vmem:[%s8569_s27 + $0x12c] sm:$0xf0]  ;;  %v5180_v17 = vor.u32 %v7655_v9, %v5179_v8  ;;  %2375 = vmatpush.bf16.msra.mxu2 %v5452_v7  ;;  %v7641_v7 = vld [vmem:[#allocation6 + $0x4] sm:$0xf] }
  0x6e   : > { %v5435_v13 = vld [vmem:[%s8569_s27 + $0x220] sm:$0xf]  ;;  %v7719_v14 = vld [vmem:[%s8569_s27 + $0x22c] sm:$0xf0]  ;;  %v5308_v20 = vor.u32 %v7687_v12, %v5307_v10  ;;  %2389 = vmatpush.bf16.msra.mxu3 %v5580_v11  ;;  %v5133_v8 = vld [vmem:[#allocation6 + $0x20] sm:$0xf0] }
  0x6f   : > { %v5563_v15 = vld [vmem:[%s8569_s27 + $0x320] sm:$0xf]  ;;  %v7751_v16 = vld [vmem:[%s8569_s27 + $0x32c] sm:$0xf0]  ;;  %v5436_v21 = vor.u32 %v7719_v14, %v5435_v13  ;;  %2348 = vmatpush.bf16.msra.mxu0 %v5180_v17  ;;  %v7642_v9 = vld [vmem:[#allocation6 + $0xc] sm:$0xf]  ;;  %v8674_v11 = vor.u32 %v7641_v7, %v5133_v8 }
  0x70   : > { %v5163_v18 = vld [vmem:[%s8569_s27] sm:$0xf]  ;;  %v7651_v19 = vld [vmem:[%s8569_s27 + $0xc] sm:$0xf0]  ;;  %v5564_v25 = vor.u32 %v7751_v16, %v5563_v15  ;;  %2362 = vmatpush.bf16.msra.mxu1 %v5308_v20  ;;  %v5141_v12 = vld [vmem:[#allocation6 + $0x28] sm:$0xf0] }
  0x71   : > { %v5291_v22 = vld [vmem:[%s8569_s27 + $0x100] sm:$0xf]  ;;  %v7683_v23 = vld [vmem:[%s8569_s27 + $0x10c] sm:$0xf0]  ;;  %v5164_v32 = vor.u32 %v7651_v19, %v5163_v18  ;;  %2376 = vmatpush.bf16.msra.mxu2 %v5436_v21  ;;  %v8679_v18 = vor.u32 %v7642_v9, %v5141_v12 }
  0x72   : > { %v5419_v24 = vld [vmem:[%s8569_s27 + $0x200] sm:$0xf]  ;;  %v7715_v26 = vld [vmem:[%s8569_s27 + $0x20c] sm:$0xf0]  ;;  %v5292_v36 = vor.u32 %v7683_v23, %v5291_v22  ;;  %2390 = vmatpush.bf16.msra.mxu3 %v5564_v25 }
  0x73   : > { %v5547_v27 = vld [vmem:[%s8569_s27 + $0x300] sm:$0xf]  ;;  %v7747_v28 = vld [vmem:[%s8569_s27 + $0x30c] sm:$0xf0]  ;;  %v5420_v37 = vor.u32 %v7715_v26, %v5419_v24  ;;  %2349 = vmatpush.bf16.msra.mxu0 %v5164_v32 }
  0x74   : > { %v5787_v29 = vld [vmem:[%s8569_s27 + $0x4e0] sm:$0xf]  ;;  %v7807_v30 = vld [vmem:[%s8569_s27 + $0x4ec] sm:$0xf0]  ;;  %v5548_v40 = vor.u32 %v7747_v28, %v5547_v27  ;;  %2363 = vmatpush.bf16.msra.mxu1 %v5292_v36 }
  0x75   : > { %v5915_v31 = vld [vmem:[%s8569_s27 + $0x5e0] sm:$0xf]  ;;  %v7839_v33 = vld [vmem:[%s8569_s27 + $0x5ec] sm:$0xf0]  ;;  %v5788_v41 = vor.u32 %v7807_v30, %v5787_v29  ;;  %2377 = vmatpush.bf16.msra.mxu2 %v5420_v37 }
  0x76   : > { %v6043_v34 = vld [vmem:[%s8569_s27 + $0x6e0] sm:$0xf]  ;;  %v7871_v35 = vld [vmem:[%s8569_s27 + $0x6ec] sm:$0xf0]  ;;  %v5916_v44 = vor.u32 %v7839_v33, %v5915_v31  ;;  %2391 = vmatpush.bf16.msra.mxu3 %v5548_v40 }
  0x77   : > { %v6171_v38 = vld [vmem:[%s8569_s27 + $0x7e0] sm:$0xf]  ;;  %v7903_v39 = vld [vmem:[%s8569_s27 + $0x7ec] sm:$0xf0]  ;;  %v6044_v45 = vor.u32 %v7871_v35, %v6043_v34  ;;  %2398 = vmatpush.bf16.msrb.mxu0 %v5788_v41  ;;  %2364 = vmatmul.bf16.vlgmr.msra.gmra.mxu1 %v8674_v11 }
  0x78   : > { %v5771_v42 = vld [vmem:[%s8569_s27 + $0x4c0] sm:$0xf]  ;;  %v7803_v43 = vld [vmem:[%s8569_s27 + $0x4cc] sm:$0xf0]  ;;  %v6172_v49 = vor.u32 %v7903_v39, %v6171_v38  ;;  %2412 = vmatpush.bf16.msrb.mxu1 %v5916_v44  ;;  %2378 = vmatmul.bf16.vlgmr.msra.gmra.mxu2 %v8667_v2 }
  0x79   : > { %v5899_v46 = vld [vmem:[%s8569_s27 + $0x5c0] sm:$0xf]  ;;  %v7835_v47 = vld [vmem:[%s8569_s27 + $0x5cc] sm:$0xf0]  ;;  %v5772_v56 = vor.u32 %v7803_v43, %v5771_v42  ;;  %2426 = vmatpush.bf16.msrb.mxu2 %v6044_v45  ;;  %2392 = vmatmul.bf16.vlgmr.msra.gmra.mxu3 %v8679_v18 }
  0x7a   : > { %v6027_v48 = vld [vmem:[%s8569_s27 + $0x6c0] sm:$0xf]  ;;  %v7867_v50 = vld [vmem:[%s8569_s27 + $0x6cc] sm:$0xf0]  ;;  %v5900_v61 = vor.u32 %v7835_v47, %v5899_v46  ;;  %2440 = vmatpush.bf16.msrb.mxu3 %v6172_v49 }
  0x7b   : > { %v6155_v51 = vld [vmem:[%s8569_s27 + $0x7c0] sm:$0xf]  ;;  %v7899_v52 = vld [vmem:[%s8569_s27 + $0x7cc] sm:$0xf0]  ;;  %v6028_v62 = vor.u32 %v7867_v50, %v6027_v48  ;;  %2399 = vmatpush.bf16.msrb.mxu0 %v5772_v56 }
  0x7c   : > { %v5131_v53 = vld [vmem:[#allocation6] sm:$0xf]  ;;  %v7799_v58 = vld [vmem:[%s8569_s27 + $0x4ac] sm:$0xf0]  ;;  %v6156_v3 = vor.u32 %v7899_v52, %v6155_v51  ;;  %2413 = vmatpush.bf16.msrb.mxu1 %v5900_v61 }
  0x7d   : > { %v7645_v54 = vld [vmem:[#allocation6 + $0x1c] sm:$0xf0]  ;;  %v7831_v0 = vld [vmem:[%s8569_s27 + $0x5ac] sm:$0xf0]  ;;  %2427 = vmatpush.bf16.msrb.mxu2 %v6028_v62 }
  0x7e   : > { %v5755_v57 = vld [vmem:[%s8569_s27 + $0x4a0] sm:$0xf]  ;;  %v8662_v59 = vor.u32 %v7645_v54, %v5131_v53  ;;  %v7863_v4 = vld [vmem:[%s8569_s27 + $0x6ac] sm:$0xf0]  ;;  %2441 = vmatpush.bf16.msrb.mxu3 %v6156_v3 }
  0x7f   : > { %v5883_v63 = vld [vmem:[%s8569_s27 + $0x5a0] sm:$0xf]  ;;  %v7895_v6 = vld [vmem:[%s8569_s27 + $0x7ac] sm:$0xf0]  ;;  %v5756_v10 = vor.u32 %v7799_v58, %v5755_v57 }
  0x80   : > { %v6011_v1 = vld [vmem:[%s8569_s27 + $0x6a0] sm:$0xf]  ;;  %2350 = vmatmul.bf16.vlgmr.msra.gmra.mxu0 %v8662_v59  ;;  %v5884_v13 = vor.u32 %v7831_v0, %v5883_v63  ;;  %v7795_v16 = vld [vmem:[%s8569_s27 + $0x48c] sm:$0xf0] }
  0x81   : > { %v6139_v5 = vld [vmem:[%s8569_s27 + $0x7a0] sm:$0xf]  ;;  %v6012_v14 = vor.u32 %v7863_v4, %v6011_v1  ;;  %v7827_v20 = vld [vmem:[%s8569_s27 + $0x58c] sm:$0xf0]  ;;  %2400 = vmatpush.bf16.msrb.mxu0 %v5756_v10  ;;  %v7677_v10 = vld [vmem:[%s8569_s27 + $0xe4] sm:$0xf] }
  0x82   : > { %v5739_v15 = vld [vmem:[%s8569_s27 + $0x480] sm:$0xf]  ;;  %v6140_v19 = vor.u32 %v7895_v6, %v6139_v5  ;;  %v7859_v22 = vld [vmem:[%s8569_s27 + $0x68c] sm:$0xf0]  ;;  %2414 = vmatpush.bf16.msrb.mxu1 %v5884_v13  ;;  %v5277_v13 = vld [vmem:[%s8569_s27 + $0xf0] sm:$0xf0] }
  0x83   : > { %v5867_v17 = vld [vmem:[%s8569_s27 + $0x580] sm:$0xf]  ;;  %v7891_v24 = vld [vmem:[%s8569_s27 + $0x78c] sm:$0xf0]  ;;  %v5740_v25 = vor.u32 %v7795_v16, %v5739_v15  ;;  %2428 = vmatpush.bf16.msrb.mxu2 %v6012_v14  ;;  %v7709_v14 = vld [vmem:[%s8569_s27 + $0x1e4] sm:$0xf] }
  0x84   : > { %v5995_v21 = vld [vmem:[%s8569_s27 + $0x680] sm:$0xf]  ;;  %v5868_v26 = vor.u32 %v7827_v20, %v5867_v17  ;;  %v7791_v29 = vld [vmem:[%s8569_s27 + $0x46c] sm:$0xf0]  ;;  %2442 = vmatpush.bf16.msrb.mxu3 %v6140_v19  ;;  %v5405_v15 = vld [vmem:[%s8569_s27 + $0x1f0] sm:$0xf0] }
  0x85   : > { %v6123_v23 = vld [vmem:[%s8569_s27 + $0x780] sm:$0xf]  ;;  %v5996_v27 = vor.u32 %v7859_v22, %v5995_v21  ;;  %v7823_v32 = vld [vmem:[%s8569_s27 + $0x56c] sm:$0xf0]  ;;  %2401 = vmatpush.bf16.msrb.mxu0 %v5740_v25  ;;  %v7741_v16 = vld [vmem:[%s8569_s27 + $0x2e4] sm:$0xf] }
  0x86   : > { %v5723_v28 = vld [vmem:[%s8569_s27 + $0x460] sm:$0xf]  ;;  %v6124_v31 = vor.u32 %v7891_v24, %v6123_v23  ;;  %v7855_v34 = vld [vmem:[%s8569_s27 + $0x66c] sm:$0xf0]  ;;  %2415 = vmatpush.bf16.msrb.mxu1 %v5868_v26  ;;  %v5533_v17 = vld [vmem:[%s8569_s27 + $0x2f0] sm:$0xf0] }
  0x87   : > { %v5851_v30 = vld [vmem:[%s8569_s27 + $0x560] sm:$0xf]  ;;  %v7887_v36 = vld [vmem:[%s8569_s27 + $0x76c] sm:$0xf0]  ;;  %v5724_v37 = vor.u32 %v7791_v29, %v5723_v28  ;;  %2429 = vmatpush.bf16.msrb.mxu2 %v5996_v27  ;;  %v7773_v19 = vld [vmem:[%s8569_s27 + $0x3e4] sm:$0xf] }
  0x88   : > { %v5979_v33 = vld [vmem:[%s8569_s27 + $0x660] sm:$0xf]  ;;  %v5852_v38 = vor.u32 %v7823_v32, %v5851_v30  ;;  %v7787_v41 = vld [vmem:[%s8569_s27 + $0x44c] sm:$0xf0]  ;;  %2443 = vmatpush.bf16.msrb.mxu3 %v6124_v31  ;;  %v5661_v21 = vld [vmem:[%s8569_s27 + $0x3f0] sm:$0xf0]  ;;  %v5280_v30 = vor.u32 %v7677_v10, %v5277_v13 }
  0x89   : > { %v6107_v35 = vld [vmem:[%s8569_s27 + $0x760] sm:$0xf]  ;;  %v5980_v39 = vor.u32 %v7855_v34, %v5979_v33  ;;  %v7819_v44 = vld [vmem:[%s8569_s27 + $0x54c] sm:$0xf0]  ;;  %2402 = vmatpush.bf16.msrb.mxu0 %v5724_v37  ;;  %v5155_v26 = vld [vmem:[#allocation6 + $0x18] sm:$0xf]  ;;  %v5408_v34 = vor.u32 %v7709_v14, %v5405_v15 }
  0x8a   : > { %v5707_v40 = vld [vmem:[%s8569_s27 + $0x440] sm:$0xf]  ;;  %v6108_v43 = vor.u32 %v7887_v36, %v6107_v35  ;;  %v7851_v46 = vld [vmem:[%s8569_s27 + $0x64c] sm:$0xf0]  ;;  %2416 = vmatpush.bf16.msrb.mxu1 %v5852_v38  ;;  %v7648_v27 = vld [vmem:[#allocation6 + $0x34] sm:$0xf0]  ;;  %v5536_v35 = vor.u32 %v7741_v16, %v5533_v17 }
  0x8b   : > { %v5835_v42 = vld [vmem:[%s8569_s27 + $0x540] sm:$0xf]  ;;  %v7883_v48 = vld [vmem:[%s8569_s27 + $0x74c] sm:$0xf0]  ;;  %v5708_v49 = vor.u32 %v7787_v41, %v5707_v40  ;;  %2430 = vmatpush.bf16.msrb.mxu2 %v5980_v39  ;;  %v7643_v28 = vld [vmem:[#allocation6 + $0x14] sm:$0xf]  ;;  %v5664_v39 = vor.u32 %v7773_v19, %v5661_v21 }
  0x8c   : > { %v5963_v45 = vld [vmem:[%s8569_s27 + $0x640] sm:$0xf]  ;;  %v5836_v51 = vor.u32 %v7819_v44, %v5835_v42  ;;  %v7783_v53 = vld [vmem:[%s8569_s27 + $0x42c] sm:$0xf0]  ;;  %2444 = vmatpush.bf16.msrb.mxu3 %v6108_v43  ;;  %v5149_v31 = vld [vmem:[#allocation6 + $0x30] sm:$0xf0]  ;;  %v8736_v44 = vor.u32 %v7648_v27, %v5155_v26 }
  0x8d   : > { %v6091_v47 = vld [vmem:[%s8569_s27 + $0x740] sm:$0xf]  ;;  %v5964_v52 = vor.u32 %v7851_v46, %v5963_v45  ;;  %v7815_v55 = vld [vmem:[%s8569_s27 + $0x52c] sm:$0xf0]  ;;  %2403 = vmatpush.bf16.msrb.mxu0 %v5708_v49  ;;  %v7644_v32 = vld [vmem:[#allocation6 + $0x1c] sm:$0xf]  ;;  %v8738_v45 = vor.u32 %v7643_v28, %v5149_v31 }
  0x8e   : > { %v5691_v50 = vld [vmem:[%s8569_s27 + $0x420] sm:$0xf]  ;;  %v6092_v56 = vor.u32 %v7883_v48, %v6091_v47  ;;  %v7847_v58 = vld [vmem:[%s8569_s27 + $0x62c] sm:$0xf0]  ;;  %2417 = vmatpush.bf16.msrb.mxu1 %v5836_v51  ;;  %v5157_v33 = vld [vmem:[#allocation6 + $0x38] sm:$0xf0] }
  0x8f   : > { %v5819_v54 = vld [vmem:[%s8569_s27 + $0x520] sm:$0xf]  ;;  %v7879_v61 = vld [vmem:[%s8569_s27 + $0x72c] sm:$0xf0]  ;;  %v5692_v0 = vor.u32 %v7783_v53, %v5691_v50  ;;  %2431 = vmatpush.bf16.msrb.mxu2 %v5964_v52  ;;  %v7673_v36 = vld [vmem:[%s8569_s27 + $0xc4] sm:$0xf]  ;;  %v8742_v48 = vor.u32 %v7644_v32, %v5157_v33 }
  0x90   : > { %v5947_v57 = vld [vmem:[%s8569_s27 + $0x620] sm:$0xf]  ;;  %v7779_v63 = vld [vmem:[%s8569_s27 + $0x40c] sm:$0xf0]  ;;  %v5820_v6 = vor.u32 %v7815_v55, %v5819_v54  ;;  %2445 = vmatpush.bf16.msrb.mxu3 %v6092_v56  ;;  %v5261_v37 = vld [vmem:[%s8569_s27 + $0xd0] sm:$0xf0] }
  0x91   : > { %v6075_v60 = vld [vmem:[%s8569_s27 + $0x720] sm:$0xf]  ;;  %v7811_v3 = vld [vmem:[%s8569_s27 + $0x50c] sm:$0xf0]  ;;  %v5948_v7 = vor.u32 %v7847_v58, %v5947_v57  ;;  %2404 = vmatpush.bf16.msrb.mxu0 %v5692_v0  ;;  %v7705_v38 = vld [vmem:[%s8569_s27 + $0x1c4] sm:$0xf]  ;;  %v5264_v49 = vor.u32 %v7673_v36, %v5261_v37 }
  0x92   : > { %v5675_v62 = vld [vmem:[%s8569_s27 + $0x400] sm:$0xf]  ;;  %v7843_v5 = vld [vmem:[%s8569_s27 + $0x60c] sm:$0xf0]  ;;  %v6076_v12 = vor.u32 %v7879_v61, %v6075_v60  ;;  %2418 = vmatpush.bf16.msrb.mxu1 %v5820_v6  ;;  %v5389_v41 = vld [vmem:[%s8569_s27 + $0x1d0] sm:$0xf0] }
  0x93   : > { %v5803_v1 = vld [vmem:[%s8569_s27 + $0x500] sm:$0xf]  ;;  %v7875_v9 = vld [vmem:[%s8569_s27 + $0x70c] sm:$0xf0]  ;;  %v5676_v20 = vor.u32 %v7779_v63, %v5675_v62  ;;  %2432 = vmatpush.bf16.msrb.mxu2 %v5948_v7  ;;  %v7737_v42 = vld [vmem:[%s8569_s27 + $0x2c4] sm:$0xf]  ;;  %v5392_v50 = vor.u32 %v7705_v38, %v5389_v41 }
  0x94   : > { %v5931_v4 = vld [vmem:[%s8569_s27 + $0x600] sm:$0xf]  ;;  %v5147_v22 = vld [vmem:[#allocation6 + $0x10] sm:$0xf]  ;;  %v5804_v24 = vor.u32 %v7811_v3, %v5803_v1  ;;  %2446 = vmatpush.bf16.msrb.mxu3 %v6076_v12  ;;  %v5517_v43 = vld [vmem:[%s8569_s27 + $0x2d0] sm:$0xf0] }
  0x95   : > { %v6059_v8 = vld [vmem:[%s8569_s27 + $0x700] sm:$0xf]  ;;  %v7647_v23 = vld [vmem:[#allocation6 + $0x2c] sm:$0xf0]  ;;  %v5932_v25 = vor.u32 %v7843_v5, %v5931_v4  ;;  %2405 = vmatpush.bf16.msrb.mxu0 %v5676_v20  ;;  %v7769_v46 = vld [vmem:[%s8569_s27 + $0x3c4] sm:$0xf]  ;;  %v5520_v51 = vor.u32 %v7737_v42, %v5517_v43 }
  0x96   : > { %v6060_v29 = vor.u32 %v7875_v9, %v6059_v8  ;;  %v8731_v40 = vor.u32 %v7647_v23, %v5147_v22  ;;  %2419 = vmatpush.bf16.msrb.mxu1 %v5804_v24  ;;  %v5645_v47 = vld [vmem:[%s8569_s27 + $0x3d0] sm:$0xf0]  ;;  %v7669_v52 = vld [vmem:[%s8569_s27 + $0xa4] sm:$0xf] }
  0x97   : > { %2433 = vmatpush.bf16.msrb.mxu2 %v5932_v25  ;;  %v5245_v53 = vld [vmem:[%s8569_s27 + $0xb0] sm:$0xf0]  ;;  %v7701_v54 = vld [vmem:[%s8569_s27 + $0x1a4] sm:$0xf]  ;;  %v5648_v55 = vor.u32 %v7769_v46, %v5645_v47 }
  0x98   : > { %2447 = vmatpush.bf16.msrb.mxu3 %v6060_v29  ;;  %2406 = vmatmul.bf16.vlgmr.msrb.gmra.mxu0 %v8731_v40  ;;  %v5373_v56 = vld [vmem:[%s8569_s27 + $0x1b0] sm:$0xf0]  ;;  %v7733_v57 = vld [vmem:[%s8569_s27 + $0x2a4] sm:$0xf]  ;;  %v5248_v62 = vor.u32 %v7669_v52, %v5245_v53 }
  0x99   : > { %2454 = vmatpush.bf16.msra.mxu0 %v5280_v30  ;;  %v5501_v58 = vld [vmem:[%s8569_s27 + $0x2b0] sm:$0xf0]  ;;  %2420 = vmatmul.bf16.vlgmr.msrb.gmra.mxu1 %v8738_v45  ;;  %v7765_v60 = vld [vmem:[%s8569_s27 + $0x3a4] sm:$0xf]  ;;  %v5376_v63 = vor.u32 %v7701_v54, %v5373_v56 }
  0x9a   : > { %2468 = vmatpush.bf16.msra.mxu1 %v5408_v34  ;;  %2434 = vmatmul.bf16.vlgmr.msrb.gmra.mxu2 %v8736_v44  ;;  %v5629_v61 = vld [vmem:[%s8569_s27 + $0x3b0] sm:$0xf0]  ;;  %v5504_v0 = vor.u32 %v7733_v57, %v5501_v58  ;;  %v7665_v1 = vld [vmem:[%s8569_s27 + $0x84] sm:$0xf] }
  0x9b   : > { %2482 = vmatpush.bf16.msra.mxu2 %v5536_v35  ;;  %2448 = vmatmul.bf16.vlgmr.msrb.gmra.mxu3 %v8742_v48  ;;  %v5229_v3 = vld [vmem:[%s8569_s27 + $0x90] sm:$0xf0]  ;;  %v7697_v4 = vld [vmem:[%s8569_s27 + $0x184] sm:$0xf]  ;;  %v5632_v5 = vor.u32 %v7765_v60, %v5629_v61 }
  0x9c   : > { %2496 = vmatpush.bf16.msra.mxu3 %v5664_v39  ;;  %v5357_v6 = vld [vmem:[%s8569_s27 + $0x190] sm:$0xf0]  ;;  %v7729_v7 = vld [vmem:[%s8569_s27 + $0x284] sm:$0xf]  ;;  %v5232_v12 = vor.u32 %v7665_v1, %v5229_v3 }
  0x9d   : > { %2455 = vmatpush.bf16.msra.mxu0 %v5264_v49  ;;  %v5485_v8 = vld [vmem:[%s8569_s27 + $0x290] sm:$0xf0]  ;;  %v7761_v9 = vld [vmem:[%s8569_s27 + $0x384] sm:$0xf]  ;;  %v5360_v13 = vor.u32 %v7697_v4, %v5357_v6 }
  0x9e   : > { %2469 = vmatpush.bf16.msra.mxu1 %v5392_v50  ;;  %v5613_v10 = vld [vmem:[%s8569_s27 + $0x390] sm:$0xf0]  ;;  %v5488_v14 = vor.u32 %v7729_v7, %v5485_v8  ;;  %v7661_v15 = vld [vmem:[%s8569_s27 + $0x64] sm:$0xf] }
  0x9f   : > { %2483 = vmatpush.bf16.msra.mxu2 %v5520_v51  ;;  %v5213_v16 = vld [vmem:[%s8569_s27 + $0x70] sm:$0xf0]  ;;  %v7693_v17 = vld [vmem:[%s8569_s27 + $0x164] sm:$0xf]  ;;  %v5616_v19 = vor.u32 %v7761_v9, %v5613_v10 }
  0xa0   : > { %2497 = vmatpush.bf16.msra.mxu3 %v5648_v55  ;;  %v5341_v20 = vld [vmem:[%s8569_s27 + $0x170] sm:$0xf0]  ;;  %v7725_v21 = vld [vmem:[%s8569_s27 + $0x264] sm:$0xf]  ;;  %v5216_v25 = vor.u32 %v7661_v15, %v5213_v16 }
  0xa1   : > { %2456 = vmatpush.bf16.msra.mxu0 %v5248_v62  ;;  %v5469_v22 = vld [vmem:[%s8569_s27 + $0x270] sm:$0xf0]  ;;  %v7757_v23 = vld [vmem:[%s8569_s27 + $0x364] sm:$0xf]  ;;  %v5344_v26 = vor.u32 %v7693_v17, %v5341_v20 }
  0xa2   : > { %2470 = vmatpush.bf16.msra.mxu1 %v5376_v63  ;;  %v5597_v24 = vld [vmem:[%s8569_s27 + $0x370] sm:$0xf0]  ;;  %v5472_v27 = vor.u32 %v7725_v21, %v5469_v22  ;;  %v7657_v28 = vld [vmem:[%s8569_s27 + $0x44] sm:$0xf] }
  0xa3   : > { %2484 = vmatpush.bf16.msra.mxu2 %v5504_v0  ;;  %v5197_v29 = vld [vmem:[%s8569_s27 + $0x50] sm:$0xf0]  ;;  %v7689_v30 = vld [vmem:[%s8569_s27 + $0x144] sm:$0xf]  ;;  %v5600_v31 = vor.u32 %v7757_v23, %v5597_v24 }
  0xa4   : > { %2498 = vmatpush.bf16.msra.mxu3 %v5632_v5  ;;  %v5325_v32 = vld [vmem:[%s8569_s27 + $0x150] sm:$0xf0]  ;;  %v7721_v33 = vld [vmem:[%s8569_s27 + $0x244] sm:$0xf]  ;;  %v5200_v37 = vor.u32 %v7657_v28, %v5197_v29 }
  0xa5   : > { %2457 = vmatpush.bf16.msra.mxu0 %v5232_v12  ;;  %v5453_v34 = vld [vmem:[%s8569_s27 + $0x250] sm:$0xf0]  ;;  %v7753_v35 = vld [vmem:[%s8569_s27 + $0x344] sm:$0xf]  ;;  %v5328_v38 = vor.u32 %v7689_v30, %v5325_v32 }
  0xa6   : > { %2471 = vmatpush.bf16.msra.mxu1 %v5360_v13  ;;  %v5581_v36 = vld [vmem:[%s8569_s27 + $0x350] sm:$0xf0]  ;;  %v5456_v39 = vor.u32 %v7721_v33, %v5453_v34  ;;  %v7653_v41 = vld [vmem:[%s8569_s27 + $0x24] sm:$0xf] }
  0xa7   : > { %2485 = vmatpush.bf16.msra.mxu2 %v5488_v14  ;;  %v5181_v42 = vld [vmem:[%s8569_s27 + $0x30] sm:$0xf0]  ;;  %v7685_v43 = vld [vmem:[%s8569_s27 + $0x124] sm:$0xf]  ;;  %v5584_v46 = vor.u32 %v7753_v35, %v5581_v36 }
  0xa8   : > { %2499 = vmatpush.bf16.msra.mxu3 %v5616_v19  ;;  %v5309_v47 = vld [vmem:[%s8569_s27 + $0x130] sm:$0xf0]  ;;  %v7717_v49 = vld [vmem:[%s8569_s27 + $0x224] sm:$0xf]  ;;  %v5184_v53 = vor.u32 %v7653_v41, %v5181_v42 }
  0xa9   : > { %2458 = vmatpush.bf16.msra.mxu0 %v5216_v25  ;;  %v5437_v50 = vld [vmem:[%s8569_s27 + $0x230] sm:$0xf0]  ;;  %v7749_v51 = vld [vmem:[%s8569_s27 + $0x324] sm:$0xf]  ;;  %v5312_v56 = vor.u32 %v7685_v43, %v5309_v47 }
  0xaa   : > { %2472 = vmatpush.bf16.msra.mxu1 %v5344_v26  ;;  %v5565_v52 = vld [vmem:[%s8569_s27 + $0x330] sm:$0xf0]  ;;  %v7649_v54 = vld [vmem:[%s8569_s27 + $0x4] sm:$0xf]  ;;  %v5440_v57 = vor.u32 %v7717_v49, %v5437_v50 }
  0xab   : > { %2486 = vmatpush.bf16.msra.mxu2 %v5472_v27  ;;  %v5165_v55 = vld [vmem:[%s8569_s27 + $0x10] sm:$0xf0]  ;;  %v7681_v58 = vld [vmem:[%s8569_s27 + $0x104] sm:$0xf]  ;;  %v5568_v62 = vor.u32 %v7749_v51, %v5565_v52 }
  0xac   : > { %2500 = vmatpush.bf16.msra.mxu3 %v5600_v31  ;;  %v5293_v60 = vld [vmem:[%s8569_s27 + $0x110] sm:$0xf0]  ;;  %v7713_v61 = vld [vmem:[%s8569_s27 + $0x204] sm:$0xf]  ;;  %v5168_v6 = vor.u32 %v7649_v54, %v5165_v55 }
  0xad   : > { %2459 = vmatpush.bf16.msra.mxu0 %v5200_v37  ;;  %v5421_v63 = vld [vmem:[%s8569_s27 + $0x210] sm:$0xf0]  ;;  %v7745_v0 = vld [vmem:[%s8569_s27 + $0x304] sm:$0xf]  ;;  %v5296_v10 = vor.u32 %v7681_v58, %v5293_v60 }
  0xae   : > { %2473 = vmatpush.bf16.msra.mxu1 %v5328_v38  ;;  %v5549_v1 = vld [vmem:[%s8569_s27 + $0x310] sm:$0xf0]  ;;  %v7805_v3 = vld [vmem:[%s8569_s27 + $0x4e4] sm:$0xf]  ;;  %v5424_v12 = vor.u32 %v7713_v61, %v5421_v63 }
  0xaf   : > { %2487 = vmatpush.bf16.msra.mxu2 %v5456_v39  ;;  %v5789_v4 = vld [vmem:[%s8569_s27 + $0x4f0] sm:$0xf0]  ;;  %v7837_v5 = vld [vmem:[%s8569_s27 + $0x5e4] sm:$0xf]  ;;  %v5552_v15 = vor.u32 %v7745_v0, %v5549_v1 }
  0xb0   : > { %2501 = vmatpush.bf16.msra.mxu3 %v5584_v46  ;;  %v5917_v7 = vld [vmem:[%s8569_s27 + $0x5f0] sm:$0xf0]  ;;  %v7869_v8 = vld [vmem:[%s8569_s27 + $0x6e4] sm:$0xf]  ;;  %v5792_v16 = vor.u32 %v7805_v3, %v5789_v4 }
  0xb1   : > { %2460 = vmatpush.bf16.msra.mxu0 %v5184_v53  ;;  %v6045_v9 = vld [vmem:[%s8569_s27 + $0x6f0] sm:$0xf0]  ;;  %v7901_v13 = vld [vmem:[%s8569_s27 + $0x7e4] sm:$0xf]  ;;  %v5920_v17 = vor.u32 %v7837_v5, %v5917_v7 }
  0xb2   : > { %2474 = vmatpush.bf16.msra.mxu1 %v5312_v56  ;;  %v6173_v14 = vld [vmem:[%s8569_s27 + $0x7f0] sm:$0xf0]  ;;  %v6048_v19 = vor.u32 %v7869_v8, %v6045_v9  ;;  %v7801_v20 = vld [vmem:[%s8569_s27 + $0x4c4] sm:$0xf] }
  0xb3   : > { %2488 = vmatpush.bf16.msra.mxu2 %v5440_v57  ;;  %v5773_v21 = vld [vmem:[%s8569_s27 + $0x4d0] sm:$0xf0]  ;;  %v7833_v22 = vld [vmem:[%s8569_s27 + $0x5c4] sm:$0xf]  ;;  %v6176_v23 = vor.u32 %v7901_v13, %v6173_v14 }
  0xb4   : > { %2502 = vmatpush.bf16.msra.mxu3 %v5568_v62  ;;  %v5901_v24 = vld [vmem:[%s8569_s27 + $0x5d0] sm:$0xf0]  ;;  %v7865_v25 = vld [vmem:[%s8569_s27 + $0x6c4] sm:$0xf]  ;;  %v5776_v29 = vor.u32 %v7801_v20, %v5773_v21 }
  0xb5   : > { %2461 = vmatpush.bf16.msra.mxu0 %v5168_v6  ;;  %v6029_v26 = vld [vmem:[%s8569_s27 + $0x6d0] sm:$0xf0]  ;;  %v7897_v27 = vld [vmem:[%s8569_s27 + $0x7c4] sm:$0xf]  ;;  %v5904_v30 = vor.u32 %v7833_v22, %v5901_v24 }
  0xb6   : > { %2475 = vmatpush.bf16.msra.mxu1 %v5296_v10  ;;  %v6157_v28 = vld [vmem:[%s8569_s27 + $0x7d0] sm:$0xf0]  ;;  %v6032_v31 = vor.u32 %v7865_v25, %v6029_v26  ;;  %v7797_v32 = vld [vmem:[%s8569_s27 + $0x4a4] sm:$0xf] }
  0xb7   : > { %2489 = vmatpush.bf16.msra.mxu2 %v5424_v12  ;;  %v5757_v33 = vld [vmem:[%s8569_s27 + $0x4b0] sm:$0xf0]  ;;  %v7829_v34 = vld [vmem:[%s8569_s27 + $0x5a4] sm:$0xf]  ;;  %v6160_v35 = vor.u32 %v7897_v27, %v6157_v28 }
  0xb8   : > { %2503 = vmatpush.bf16.msra.mxu3 %v5552_v15  ;;  %v5885_v36 = vld [vmem:[%s8569_s27 + $0x5b0] sm:$0xf0]  ;;  %v7861_v37 = vld [vmem:[%s8569_s27 + $0x6a4] sm:$0xf]  ;;  %2462 = vmatmul.bf16.vlgmr.msra.gmra.mxu0 %v8662_v59  ;;  %v5760_v42 = vor.u32 %v7797_v32, %v5757_v33 }
  0xb9   : > { %2510 = vmatpush.bf16.msrb.mxu0 %v5792_v16  ;;  %v6013_v38 = vld [vmem:[%s8569_s27 + $0x6b0] sm:$0xf0]  ;;  %v7893_v39 = vld [vmem:[%s8569_s27 + $0x7a4] sm:$0xf]  ;;  %2476 = vmatmul.bf16.vlgmr.msra.gmra.mxu1 %v8674_v11  ;;  %v5888_v43 = vor.u32 %v7829_v34, %v5885_v36 }
  0xba   : > { %2524 = vmatpush.bf16.msrb.mxu1 %v5920_v17  ;;  %v6141_v41 = vld [vmem:[%s8569_s27 + $0x7b0] sm:$0xf0]  ;;  %2490 = vmatmul.bf16.vlgmr.msra.gmra.mxu2 %v8667_v2  ;;  %v6016_v46 = vor.u32 %v7861_v37, %v6013_v38  ;;  %v7793_v47 = vld [vmem:[%s8569_s27 + $0x484] sm:$0xf] }
  0xbb   : > { %2538 = vmatpush.bf16.msrb.mxu2 %v6048_v19  ;;  %2504 = vmatmul.bf16.vlgmr.msra.gmra.mxu3 %v8679_v18  ;;  %v5741_v49 = vld [vmem:[%s8569_s27 + $0x490] sm:$0xf0]  ;;  %v7825_v50 = vld [vmem:[%s8569_s27 + $0x584] sm:$0xf]  ;;  %v6144_v51 = vor.u32 %v7893_v39, %v6141_v41 }
  0xbc   : > { %2552 = vmatpush.bf16.msrb.mxu3 %v6176_v23  ;;  %v5869_v52 = vld [vmem:[%s8569_s27 + $0x590] sm:$0xf0]  ;;  %v7857_v53 = vld [vmem:[%s8569_s27 + $0x684] sm:$0xf]  ;;  %v5744_v57 = vor.u32 %v7793_v47, %v5741_v49  ;;  %v5283_v49 = vld [vmem:[%s8569_s27 + $0xe8] sm:$0xf] }
  0xbd   : > { %2511 = vmatpush.bf16.msrb.mxu0 %v5776_v29  ;;  %v5997_v54 = vld [vmem:[%s8569_s27 + $0x690] sm:$0xf0]  ;;  %v7889_v55 = vld [vmem:[%s8569_s27 + $0x784] sm:$0xf]  ;;  %v5872_v58 = vor.u32 %v7825_v50, %v5869_v52  ;;  %v7680_v50 = vld [vmem:[%s8569_s27 + $0xf4] sm:$0xf0] }
  0xbe   : > { %2525 = vmatpush.bf16.msrb.mxu1 %v5904_v30  ;;  %v6125_v56 = vld [vmem:[%s8569_s27 + $0x790] sm:$0xf0]  ;;  %v6000_v60 = vor.u32 %v7857_v53, %v5997_v54  ;;  %v7789_v61 = vld [vmem:[%s8569_s27 + $0x464] sm:$0xf]  ;;  %v7712_v53 = vld [vmem:[%s8569_s27 + $0x1f4] sm:$0xf0] }
  0xbf   : > { %2539 = vmatpush.bf16.msrb.mxu2 %v6032_v31  ;;  %v5725_v62 = vld [vmem:[%s8569_s27 + $0x470] sm:$0xf0]  ;;  %v7821_v63 = vld [vmem:[%s8569_s27 + $0x564] sm:$0xf]  ;;  %v6128_v0 = vor.u32 %v7889_v55, %v6125_v56  ;;  %v5539_v54 = vld [vmem:[%s8569_s27 + $0x2e8] sm:$0xf] }
  0xc0   : > { %2553 = vmatpush.bf16.msrb.mxu3 %v6160_v35  ;;  %v5853_v1 = vld [vmem:[%s8569_s27 + $0x570] sm:$0xf0]  ;;  %v7853_v3 = vld [vmem:[%s8569_s27 + $0x664] sm:$0xf]  ;;  %v5728_v7 = vor.u32 %v7789_v61, %v5725_v62  ;;  %v7744_v55 = vld [vmem:[%s8569_s27 + $0x2f4] sm:$0xf0]  ;;  %v5284_v62 = vor.u32 %v7680_v50, %v5283_v49 }
  0xc1   : > { %2512 = vmatpush.bf16.msrb.mxu0 %v5760_v42  ;;  %v5981_v4 = vld [vmem:[%s8569_s27 + $0x670] sm:$0xf0]  ;;  %v7885_v5 = vld [vmem:[%s8569_s27 + $0x764] sm:$0xf]  ;;  %v5856_v8 = vor.u32 %v7821_v63, %v5853_v1  ;;  %v5267_v1 = vld [vmem:[%s8569_s27 + $0xc8] sm:$0xf] }
  0xc2   : > { %2526 = vmatpush.bf16.msrb.mxu1 %v5888_v43  ;;  %v6109_v6 = vld [vmem:[%s8569_s27 + $0x770] sm:$0xf0]  ;;  %v5984_v9 = vor.u32 %v7853_v3, %v5981_v4  ;;  %v7785_v10 = vld [vmem:[%s8569_s27 + $0x444] sm:$0xf]  ;;  %v7676_v3 = vld [vmem:[%s8569_s27 + $0xd4] sm:$0xf0] }
  0xc3   : > { %2540 = vmatpush.bf16.msrb.mxu2 %v6016_v46  ;;  %v5709_v12 = vld [vmem:[%s8569_s27 + $0x450] sm:$0xf0]  ;;  %v7817_v13 = vld [vmem:[%s8569_s27 + $0x544] sm:$0xf]  ;;  %v6112_v14 = vor.u32 %v7885_v5, %v6109_v6  ;;  %v5395_v4 = vld [vmem:[%s8569_s27 + $0x1c8] sm:$0xf] }
  0xc4   : > { %2554 = vmatpush.bf16.msrb.mxu3 %v6144_v51  ;;  %v5837_v15 = vld [vmem:[%s8569_s27 + $0x550] sm:$0xf0]  ;;  %v7849_v16 = vld [vmem:[%s8569_s27 + $0x644] sm:$0xf]  ;;  %v5712_v21 = vor.u32 %v7785_v10, %v5709_v12  ;;  %v5411_v51 = vld [vmem:[%s8569_s27 + $0x1e8] sm:$0xf]  ;;  %v5268_v12 = vor.u32 %v7676_v3, %v5267_v1 }
  0xc5   : > { %2513 = vmatpush.bf16.msrb.mxu0 %v5744_v57  ;;  %v5965_v17 = vld [vmem:[%s8569_s27 + $0x650] sm:$0xf0]  ;;  %v7881_v19 = vld [vmem:[%s8569_s27 + $0x744] sm:$0xf]  ;;  %v5840_v22 = vor.u32 %v7817_v13, %v5837_v15  ;;  %v5412_v63 = vor.u32 %v7712_v53, %v5411_v51  ;;  %v7708_v6 = vld [vmem:[%s8569_s27 + $0x1d4] sm:$0xf0] }
  0xc6   : > { %2527 = vmatpush.bf16.msrb.mxu1 %v5872_v58  ;;  %v6093_v20 = vld [vmem:[%s8569_s27 + $0x750] sm:$0xf0]  ;;  %v5968_v23 = vor.u32 %v7849_v16, %v5965_v17  ;;  %v7781_v24 = vld [vmem:[%s8569_s27 + $0x424] sm:$0xf]  ;;  %v5667_v58 = vld [vmem:[%s8569_s27 + $0x3e8] sm:$0xf]  ;;  %v5396_v13 = vor.u32 %v7708_v6, %v5395_v4 }
  0xc7   : > { %2541 = vmatpush.bf16.msrb.mxu2 %v6000_v60  ;;  %v5693_v25 = vld [vmem:[%s8569_s27 + $0x430] sm:$0xf0]  ;;  %v7813_v26 = vld [vmem:[%s8569_s27 + $0x524] sm:$0xf]  ;;  %v6096_v27 = vor.u32 %v7881_v19, %v6093_v20  ;;  %v7776_v60 = vld [vmem:[%s8569_s27 + $0x3f4] sm:$0xf0] }
  0xc8   : > { %2555 = vmatpush.bf16.msrb.mxu3 %v6128_v0  ;;  %v5821_v28 = vld [vmem:[%s8569_s27 + $0x530] sm:$0xf0]  ;;  %v7845_v29 = vld [vmem:[%s8569_s27 + $0x624] sm:$0xf]  ;;  %v5696_v33 = vor.u32 %v7781_v24, %v5693_v25  ;;  %v5540_v0 = vor.u32 %v7744_v55, %v5539_v54  ;;  %v5668_v5 = vor.u32 %v7776_v60, %v5667_v58  ;;  %v7772_v10 = vld [vmem:[%s8569_s27 + $0x3d4] sm:$0xf0] }
  0xc9   : > { %2514 = vmatpush.bf16.msrb.mxu0 %v5728_v7  ;;  %v5949_v30 = vld [vmem:[%s8569_s27 + $0x630] sm:$0xf0]  ;;  %v7877_v31 = vld [vmem:[%s8569_s27 + $0x724] sm:$0xf]  ;;  %v5824_v36 = vor.u32 %v7813_v26, %v5821_v28  ;;  %v5523_v7 = vld [vmem:[%s8569_s27 + $0x2c8] sm:$0xf] }
  0xca   : > { %2528 = vmatpush.bf16.msrb.mxu1 %v5856_v8  ;;  %v6077_v32 = vld [vmem:[%s8569_s27 + $0x730] sm:$0xf0]  ;;  %v7777_v34 = vld [vmem:[%s8569_s27 + $0x404] sm:$0xf]  ;;  %v5952_v37 = vor.u32 %v7845_v29, %v5949_v30  ;;  %v7740_v8 = vld [vmem:[%s8569_s27 + $0x2d4] sm:$0xf0] }
  0xcb   : > { %2542 = vmatpush.bf16.msrb.mxu2 %v5984_v9  ;;  %v5677_v35 = vld [vmem:[%s8569_s27 + $0x410] sm:$0xf0]  ;;  %v7809_v38 = vld [vmem:[%s8569_s27 + $0x504] sm:$0xf]  ;;  %v6080_v42 = vor.u32 %v7877_v31, %v6077_v32  ;;  %v5651_v9 = vld [vmem:[%s8569_s27 + $0x3c8] sm:$0xf] }
  0xcc   : > { %2556 = vmatpush.bf16.msrb.mxu3 %v6112_v14  ;;  %v5805_v39 = vld [vmem:[%s8569_s27 + $0x510] sm:$0xf0]  ;;  %v7841_v41 = vld [vmem:[%s8569_s27 + $0x604] sm:$0xf]  ;;  %v5680_v52 = vor.u32 %v7777_v34, %v5677_v35  ;;  %v5524_v14 = vor.u32 %v7740_v8, %v5523_v7  ;;  %v5251_v15 = vld [vmem:[%s8569_s27 + $0xa8] sm:$0xf]  ;;  %v5652_v19 = vor.u32 %v7772_v10, %v5651_v9 }
  0xcd   : > { %2515 = vmatpush.bf16.msrb.mxu0 %v5712_v21  ;;  %v5933_v43 = vld [vmem:[%s8569_s27 + $0x610] sm:$0xf0]  ;;  %v7873_v46 = vld [vmem:[%s8569_s27 + $0x704] sm:$0xf]  ;;  %v5808_v56 = vor.u32 %v7809_v38, %v5805_v39  ;;  %v7672_v16 = vld [vmem:[%s8569_s27 + $0xb4] sm:$0xf0] }
  0xce   : > { %2529 = vmatpush.bf16.msrb.mxu1 %v5840_v22  ;;  %v6061_v47 = vld [vmem:[%s8569_s27 + $0x710] sm:$0xf0]  ;;  %v5936_v57 = vor.u32 %v7841_v41, %v5933_v43  ;;  %v5379_v17 = vld [vmem:[%s8569_s27 + $0x1a8] sm:$0xf]  ;;  %v7704_v20 = vld [vmem:[%s8569_s27 + $0x1b4] sm:$0xf0]  ;;  %v5252_v25 = vor.u32 %v7672_v16, %v5251_v15 }
  0xcf   : > { %2543 = vmatpush.bf16.msrb.mxu2 %v5968_v23  ;;  %v6064_v61 = vor.u32 %v7873_v46, %v6061_v47  ;;  %v5507_v21 = vld [vmem:[%s8569_s27 + $0x2a8] sm:$0xf]  ;;  %v7736_v22 = vld [vmem:[%s8569_s27 + $0x2b4] sm:$0xf0]  ;;  %v5380_v26 = vor.u32 %v7704_v20, %v5379_v17 }
  0xd0   : > { %2557 = vmatpush.bf16.msrb.mxu3 %v6096_v27  ;;  %v5635_v23 = vld [vmem:[%s8569_s27 + $0x3a8] sm:$0xf]  ;;  %v7768_v24 = vld [vmem:[%s8569_s27 + $0x3b4] sm:$0xf0]  ;;  %v5508_v27 = vor.u32 %v7736_v22, %v5507_v21 }
  0xd1   : > { %2516 = vmatpush.bf16.msrb.mxu0 %v5696_v33  ;;  %v5235_v28 = vld [vmem:[%s8569_s27 + $0x88] sm:$0xf]  ;;  %v7668_v29 = vld [vmem:[%s8569_s27 + $0x94] sm:$0xf0]  ;;  %v5636_v31 = vor.u32 %v7768_v24, %v5635_v23 }
  0xd2   : > { %2530 = vmatpush.bf16.msrb.mxu1 %v5824_v36  ;;  %v5363_v30 = vld [vmem:[%s8569_s27 + $0x188] sm:$0xf]  ;;  %v7700_v32 = vld [vmem:[%s8569_s27 + $0x194] sm:$0xf0] }
  0xd3   : > { %2544 = vmatpush.bf16.msrb.mxu2 %v5952_v37  ;;  %v5491_v33 = vld [vmem:[%s8569_s27 + $0x288] sm:$0xf]  ;;  %v7732_v34 = vld [vmem:[%s8569_s27 + $0x294] sm:$0xf0]  ;;  %v5236_v37 = vor.u32 %v7668_v29, %v5235_v28  ;;  %v5364_v38 = vor.u32 %v7700_v32, %v5363_v30 }
  0xd4   : > { %2558 = vmatpush.bf16.msrb.mxu3 %v6080_v42  ;;  %v5619_v35 = vld [vmem:[%s8569_s27 + $0x388] sm:$0xf]  ;;  %v7764_v36 = vld [vmem:[%s8569_s27 + $0x394] sm:$0xf0]  ;;  %v5492_v39 = vor.u32 %v7732_v34, %v5491_v33 }
  0xd5   : > { %2517 = vmatpush.bf16.msrb.mxu0 %v5680_v52  ;;  %v5219_v41 = vld [vmem:[%s8569_s27 + $0x68] sm:$0xf]  ;;  %v7664_v42 = vld [vmem:[%s8569_s27 + $0x74] sm:$0xf0]  ;;  %v5620_v46 = vor.u32 %v7764_v36, %v5619_v35 }
  0xd6   : > { %2531 = vmatpush.bf16.msrb.mxu1 %v5808_v56  ;;  %v5347_v43 = vld [vmem:[%s8569_s27 + $0x168] sm:$0xf]  ;;  %v7696_v47 = vld [vmem:[%s8569_s27 + $0x174] sm:$0xf0]  ;;  %v5220_v53 = vor.u32 %v7664_v42, %v5219_v41 }
  0xd7   : > { %2545 = vmatpush.bf16.msrb.mxu2 %v5936_v57  ;;  %v5475_v49 = vld [vmem:[%s8569_s27 + $0x268] sm:$0xf]  ;;  %v7728_v50 = vld [vmem:[%s8569_s27 + $0x274] sm:$0xf0]  ;;  %v5348_v54 = vor.u32 %v7696_v47, %v5347_v43 }
  0xd8   : > { %2559 = vmatpush.bf16.msrb.mxu3 %v6064_v61  ;;  %2518 = vmatmul.bf16.vlgmr.msrb.gmra.mxu0 %v8731_v40  ;;  %v5603_v51 = vld [vmem:[%s8569_s27 + $0x368] sm:$0xf]  ;;  %v7760_v52 = vld [vmem:[%s8569_s27 + $0x374] sm:$0xf0]  ;;  %v5476_v55 = vor.u32 %v7728_v50, %v5475_v49 }
  0xd9   : > { %2566 = vmatpush.bf16.msra.mxu0 %v5284_v62  ;;  %2532 = vmatmul.bf16.vlgmr.msrb.gmra.mxu1 %v8738_v45  ;;  %v5203_v56 = vld [vmem:[%s8569_s27 + $0x48] sm:$0xf]  ;;  %v7660_v57 = vld [vmem:[%s8569_s27 + $0x54] sm:$0xf0]  ;;  %v5604_v60 = vor.u32 %v7760_v52, %v5603_v51 }
  0xda   : > { %2580 = vmatpush.bf16.msra.mxu1 %v5412_v63  ;;  %2546 = vmatmul.bf16.vlgmr.msrb.gmra.mxu2 %v8736_v44  ;;  %v5331_v58 = vld [vmem:[%s8569_s27 + $0x148] sm:$0xf]  ;;  %v7692_v61 = vld [vmem:[%s8569_s27 + $0x154] sm:$0xf0]  ;;  %v5204_v3 = vor.u32 %v7660_v57, %v5203_v56 }
  0xdb   : > { %2594 = vmatpush.bf16.msra.mxu2 %v5540_v0  ;;  %2560 = vmatmul.bf16.vlgmr.msrb.gmra.mxu3 %v8742_v48  ;;  %v5459_v62 = vld [vmem:[%s8569_s27 + $0x248] sm:$0xf]  ;;  %v7724_v63 = vld [vmem:[%s8569_s27 + $0x254] sm:$0xf0]  ;;  %v5332_v4 = vor.u32 %v7692_v61, %v5331_v58 }
  0xdc   : > { %2608 = vmatpush.bf16.msra.mxu3 %v5668_v5  ;;  %v5587_v0 = vld [vmem:[%s8569_s27 + $0x348] sm:$0xf]  ;;  %v7756_v1 = vld [vmem:[%s8569_s27 + $0x354] sm:$0xf0]  ;;  %v5460_v5 = vor.u32 %v7724_v63, %v5459_v62 }
  0xdd   : > { %2567 = vmatpush.bf16.msra.mxu0 %v5268_v12  ;;  %v5187_v6 = vld [vmem:[%s8569_s27 + $0x28] sm:$0xf]  ;;  %v7656_v7 = vld [vmem:[%s8569_s27 + $0x34] sm:$0xf0]  ;;  %v5588_v9 = vor.u32 %v7756_v1, %v5587_v0 }
  0xde   : > { %2581 = vmatpush.bf16.msra.mxu1 %v5396_v13  ;;  %v5315_v8 = vld [vmem:[%s8569_s27 + $0x128] sm:$0xf]  ;;  %v7688_v10 = vld [vmem:[%s8569_s27 + $0x134] sm:$0xf0]  ;;  %v5188_v16 = vor.u32 %v7656_v7, %v5187_v6 }
  0xdf   : > { %2595 = vmatpush.bf16.msra.mxu2 %v5524_v14  ;;  %v5443_v12 = vld [vmem:[%s8569_s27 + $0x228] sm:$0xf]  ;;  %v7720_v13 = vld [vmem:[%s8569_s27 + $0x234] sm:$0xf0]  ;;  %v5316_v20 = vor.u32 %v7688_v10, %v5315_v8 }
  0xe0   : > { %2609 = vmatpush.bf16.msra.mxu3 %v5652_v19  ;;  %v5571_v14 = vld [vmem:[%s8569_s27 + $0x328] sm:$0xf]  ;;  %v7752_v15 = vld [vmem:[%s8569_s27 + $0x334] sm:$0xf0]  ;;  %v5444_v21 = vor.u32 %v7720_v13, %v5443_v12 }
  0xe1   : > { %2568 = vmatpush.bf16.msra.mxu0 %v5252_v25  ;;  %v5171_v17 = vld [vmem:[%s8569_s27 + $0x8] sm:$0xf]  ;;  %v7652_v19 = vld [vmem:[%s8569_s27 + $0x14] sm:$0xf0]  ;;  %v5572_v25 = vor.u32 %v7752_v15, %v5571_v14 }
  0xe2   : > { %2582 = vmatpush.bf16.msra.mxu1 %v5380_v26  ;;  %v5299_v22 = vld [vmem:[%s8569_s27 + $0x108] sm:$0xf]  ;;  %v7684_v23 = vld [vmem:[%s8569_s27 + $0x114] sm:$0xf0]  ;;  %v5172_v32 = vor.u32 %v7652_v19, %v5171_v17 }
  0xe3   : > { %2596 = vmatpush.bf16.msra.mxu2 %v5508_v27  ;;  %v5427_v24 = vld [vmem:[%s8569_s27 + $0x208] sm:$0xf]  ;;  %v7716_v26 = vld [vmem:[%s8569_s27 + $0x214] sm:$0xf0]  ;;  %v5300_v36 = vor.u32 %v7684_v23, %v5299_v22 }
  0xe4   : > { %2610 = vmatpush.bf16.msra.mxu3 %v5636_v31  ;;  %v5555_v27 = vld [vmem:[%s8569_s27 + $0x308] sm:$0xf]  ;;  %v7748_v28 = vld [vmem:[%s8569_s27 + $0x314] sm:$0xf0] }
  0xe5   : > { %2569 = vmatpush.bf16.msra.mxu0 %v5236_v37  ;;  %v5795_v29 = vld [vmem:[%s8569_s27 + $0x4e8] sm:$0xf]  ;;  %v7808_v30 = vld [vmem:[%s8569_s27 + $0x4f4] sm:$0xf0]  ;;  %v5428_v37 = vor.u32 %v7716_v26, %v5427_v24  ;;  %v5556_v41 = vor.u32 %v7748_v28, %v5555_v27 }
  0xe6   : > { %2583 = vmatpush.bf16.msra.mxu1 %v5364_v38  ;;  %v5923_v31 = vld [vmem:[%s8569_s27 + $0x5e8] sm:$0xf]  ;;  %v7840_v33 = vld [vmem:[%s8569_s27 + $0x5f4] sm:$0xf0]  ;;  %v5796_v42 = vor.u32 %v7808_v30, %v5795_v29 }
  0xe7   : > { %2597 = vmatpush.bf16.msra.mxu2 %v5492_v39  ;;  %v6051_v34 = vld [vmem:[%s8569_s27 + $0x6e8] sm:$0xf]  ;;  %v7872_v35 = vld [vmem:[%s8569_s27 + $0x6f4] sm:$0xf0]  ;;  %v5924_v43 = vor.u32 %v7840_v33, %v5923_v31 }
  0xe8   : > { %2611 = vmatpush.bf16.msra.mxu3 %v5620_v46  ;;  %v6179_v38 = vld [vmem:[%s8569_s27 + $0x7e8] sm:$0xf]  ;;  %v7904_v39 = vld [vmem:[%s8569_s27 + $0x7f4] sm:$0xf0]  ;;  %v6052_v46 = vor.u32 %v7872_v35, %v6051_v34 }
  0xe9   : > { %2570 = vmatpush.bf16.msra.mxu0 %v5220_v53  ;;  %v5779_v47 = vld [vmem:[%s8569_s27 + $0x4c8] sm:$0xf]  ;;  %v7804_v49 = vld [vmem:[%s8569_s27 + $0x4d4] sm:$0xf0]  ;;  %v6180_v51 = vor.u32 %v7904_v39, %v6179_v38 }
  0xea   : > { %2584 = vmatpush.bf16.msra.mxu1 %v5348_v54  ;;  %v5907_v50 = vld [vmem:[%s8569_s27 + $0x5c8] sm:$0xf]  ;;  %v7836_v52 = vld [vmem:[%s8569_s27 + $0x5d4] sm:$0xf0]  ;;  %v5780_v57 = vor.u32 %v7804_v49, %v5779_v47 }
  0xeb   : > { %2598 = vmatpush.bf16.msra.mxu2 %v5476_v55  ;;  %v6035_v53 = vld [vmem:[%s8569_s27 + $0x6c8] sm:$0xf]  ;;  %v7868_v54 = vld [vmem:[%s8569_s27 + $0x6d4] sm:$0xf0]  ;;  %v5908_v58 = vor.u32 %v7836_v52, %v5907_v50 }
  0xec   : > { %2612 = vmatpush.bf16.msra.mxu3 %v5604_v60  ;;  %v6163_v55 = vld [vmem:[%s8569_s27 + $0x7c8] sm:$0xf]  ;;  %v7900_v56 = vld [vmem:[%s8569_s27 + $0x7d4] sm:$0xf0]  ;;  %v6036_v60 = vor.u32 %v7868_v54, %v6035_v53 }
  0xed   : > { %2571 = vmatpush.bf16.msra.mxu0 %v5204_v3  ;;  %v5763_v61 = vld [vmem:[%s8569_s27 + $0x4a8] sm:$0xf]  ;;  %v7800_v62 = vld [vmem:[%s8569_s27 + $0x4b4] sm:$0xf0]  ;;  %v6164_v0 = vor.u32 %v7900_v56, %v6163_v55 }
  0xee   : > { %2585 = vmatpush.bf16.msra.mxu1 %v5332_v4  ;;  %v5891_v63 = vld [vmem:[%s8569_s27 + $0x5a8] sm:$0xf]  ;;  %v7832_v1 = vld [vmem:[%s8569_s27 + $0x5b4] sm:$0xf0]  ;;  %v5764_v7 = vor.u32 %v7800_v62, %v5763_v61 }
  0xef   : > { %2599 = vmatpush.bf16.msra.mxu2 %v5460_v5  ;;  %v6019_v3 = vld [vmem:[%s8569_s27 + $0x6a8] sm:$0xf]  ;;  %v7864_v4 = vld [vmem:[%s8569_s27 + $0x6b4] sm:$0xf0]  ;;  %v5892_v8 = vor.u32 %v7832_v1, %v5891_v63 }
  0xf0   : > { %2613 = vmatpush.bf16.msra.mxu3 %v5588_v9  ;;  %v6147_v5 = vld [vmem:[%s8569_s27 + $0x7a8] sm:$0xf]  ;;  %v7896_v6 = vld [vmem:[%s8569_s27 + $0x7b4] sm:$0xf0]  ;;  %v6020_v9 = vor.u32 %v7864_v4, %v6019_v3 }
  0xf1   : > { %2572 = vmatpush.bf16.msra.mxu0 %v5188_v16  ;;  %v5747_v10 = vld [vmem:[%s8569_s27 + $0x488] sm:$0xf]  ;;  %v7796_v12 = vld [vmem:[%s8569_s27 + $0x494] sm:$0xf0]  ;;  %v6148_v14 = vor.u32 %v7896_v6, %v6147_v5 }
  0xf2   : > { %2586 = vmatpush.bf16.msra.mxu1 %v5316_v20  ;;  %v5875_v13 = vld [vmem:[%s8569_s27 + $0x588] sm:$0xf]  ;;  %v7828_v15 = vld [vmem:[%s8569_s27 + $0x594] sm:$0xf0] }
  0xf3   : > { %2600 = vmatpush.bf16.msra.mxu2 %v5444_v21  ;;  %v6003_v16 = vld [vmem:[%s8569_s27 + $0x688] sm:$0xf]  ;;  %v7860_v17 = vld [vmem:[%s8569_s27 + $0x694] sm:$0xf0]  ;;  %v5748_v21 = vor.u32 %v7796_v12, %v5747_v10  ;;  %v5876_v22 = vor.u32 %v7828_v15, %v5875_v13 }
  0xf4   : > { %2614 = vmatpush.bf16.msra.mxu3 %v5572_v25  ;;  %v6131_v19 = vld [vmem:[%s8569_s27 + $0x788] sm:$0xf]  ;;  %v7892_v20 = vld [vmem:[%s8569_s27 + $0x794] sm:$0xf0]  ;;  %v6004_v23 = vor.u32 %v7860_v17, %v6003_v16  ;;  %v2365_v34 = vpop.f32.mrf.mxu1 }
  0xf5   : > { %2573 = vmatpush.bf16.msra.mxu0 %v5172_v32  ;;  %v5731_v24 = vld [vmem:[%s8569_s27 + $0x468] sm:$0xf]  ;;  %v7792_v25 = vld [vmem:[%s8569_s27 + $0x474] sm:$0xf0]  ;;  %v6132_v27 = vor.u32 %v7892_v20, %v6131_v19  ;;  %v7678_v20 = vld [vmem:[%s8569_s27 + $0xec] sm:$0xf] }
  0xf6   : > { %2587 = vmatpush.bf16.msra.mxu1 %v5300_v36  ;;  %v5859_v26 = vld [vmem:[%s8569_s27 + $0x568] sm:$0xf]  ;;  %v7824_v28 = vld [vmem:[%s8569_s27 + $0x574] sm:$0xf0]  ;;  %v5732_v35 = vor.u32 %v7792_v25, %v5731_v24  ;;  %v5413_v24 = vld [vmem:[%s8569_s27 + $0x1f8] sm:$0xf0] }
  0xf7   : > { %2601 = vmatpush.bf16.msra.mxu2 %v5428_v37  ;;  %v5987_v29 = vld [vmem:[%s8569_s27 + $0x668] sm:$0xf]  ;;  %v7856_v30 = vld [vmem:[%s8569_s27 + $0x674] sm:$0xf0]  ;;  %v5860_v37 = vor.u32 %v7824_v28, %v5859_v26  ;;  %v7742_v25 = vld [vmem:[%s8569_s27 + $0x2ec] sm:$0xf] }
  0xf8   : > { %2615 = vmatpush.bf16.msra.mxu3 %v5556_v41  ;;  %2574 = vmatmul.bf16.vlgmr.msra.gmra.mxu0 %v8662_v59  ;;  %v6115_v31 = vld [vmem:[%s8569_s27 + $0x768] sm:$0xf]  ;;  %v7888_v32 = vld [vmem:[%s8569_s27 + $0x774] sm:$0xf0]  ;;  %v5988_v38 = vor.u32 %v7856_v30, %v5987_v29  ;;  %v5541_v26 = vld [vmem:[%s8569_s27 + $0x2f8] sm:$0xf0] }
  0xf9   : > { %2622 = vmatpush.bf16.msrb.mxu0 %v5796_v42  ;;  %2588 = vmatmul.bf16.vlgmr.msra.gmra.mxu1 %v8674_v11  ;;  %v5715_v39 = vld [vmem:[%s8569_s27 + $0x448] sm:$0xf]  ;;  %v7788_v41 = vld [vmem:[%s8569_s27 + $0x454] sm:$0xf0]  ;;  %v7774_v29 = vld [vmem:[%s8569_s27 + $0x3ec] sm:$0xf] }
  0xfa   : > { %2636 = vmatpush.bf16.msrb.mxu1 %v5924_v43  ;;  %2602 = vmatmul.bf16.vlgmr.msra.gmra.mxu2 %v8667_v2  ;;  %v5843_v42 = vld [vmem:[%s8569_s27 + $0x548] sm:$0xf]  ;;  %v6116_v43 = vor.u32 %v7888_v32, %v6115_v31  ;;  %v7852_v49 = vld [vmem:[%s8569_s27 + $0x654] sm:$0xf0]  ;;  %v5716_v54 = vor.u32 %v7788_v41, %v5715_v39  ;;  %v5669_v30 = vld [vmem:[%s8569_s27 + $0x3f8] sm:$0xf0] }
  0xfb   : > { %2650 = vmatpush.bf16.msrb.mxu2 %v6052_v46  ;;  %2616 = vmatmul.bf16.vlgmr.msra.gmra.mxu3 %v8679_v18  ;;  %v7820_v46 = vld [vmem:[%s8569_s27 + $0x554] sm:$0xf0]  ;;  %v5971_v47 = vld [vmem:[%s8569_s27 + $0x648] sm:$0xf]  ;;  %v2379_v50 = vpop.f32.mrf.mxu2  ;;  %v5672_v39 = vor.u32 %v7774_v29, %v5669_v30  ;;  %v5397_v41 = vld [vmem:[%s8569_s27 + $0x1d8] sm:$0xf0] }
  0xfc   : > { %2664 = vmatpush.bf16.msrb.mxu3 %v6180_v51  ;;  %v6099_v51 = vld [vmem:[%s8569_s27 + $0x748] sm:$0xf]  ;;  %v7884_v52 = vld [vmem:[%s8569_s27 + $0x754] sm:$0xf0]  ;;  %v5844_v55 = vor.u32 %v7820_v46, %v5843_v42  ;;  %v5972_v56 = vor.u32 %v7852_v49, %v5971_v47  ;;  %v2393_v1 = vpop.f32.mrf.mxu3  ;;  %v7738_v42 = vld [vmem:[%s8569_s27 + $0x2cc] sm:$0xf]  ;;  %v9020_v49 = vpop.f32.mrf.mxu1 }
  0xfd   : > { %2623 = vmatpush.bf16.msrb.mxu0 %v5780_v57  ;;  %v2351_v33 = vpop.f32.mrf.mxu0  ;;  %v5699_v57 = vld [vmem:[%s8569_s27 + $0x428] sm:$0xf]  ;;  %v6100_v61 = vor.u32 %v7884_v52, %v6099_v51  ;;  %v7816_v62 = vld [vmem:[%s8569_s27 + $0x534] sm:$0xf0]  ;;  %v7770_v46 = vld [vmem:[%s8569_s27 + $0x3cc] sm:$0xf] }
  0xfe   : > { %2637 = vmatpush.bf16.msrb.mxu1 %v5908_v58  ;;  %v2366_v36 = vadd.f32 %v2365_v34, %v2351_v33  ;;  %v7784_v58 = vld [vmem:[%s8569_s27 + $0x434] sm:$0xf0]  ;;  %v5955_v63 = vld [vmem:[%s8569_s27 + $0x628] sm:$0xf]  ;;  %v5544_v34 = vor.u32 %v7742_v25, %v5541_v26  ;;  %v5653_v47 = vld [vmem:[%s8569_s27 + $0x3d8] sm:$0xf0] }
  0xff   : > { %2651 = vmatpush.bf16.msrb.mxu2 %v6036_v60  ;;  %v5827_v60 = vld [vmem:[%s8569_s27 + $0x528] sm:$0xf]  ;;  %v7880_v4 = vld [vmem:[%s8569_s27 + $0x734] sm:$0xf0]  ;;  %v5700_v6 = vor.u32 %v7784_v58, %v5699_v57  ;;  %v5381_v57 = vld [vmem:[%s8569_s27 + $0x1b8] sm:$0xf0] }
 0x100   : > { %2665 = vmatpush.bf16.msrb.mxu3 %v6164_v0  ;;  %v2380_v53 = vadd.f32 %v2379_v50, %v2366_v36  ;;  %v7848_v0 = vld [vmem:[%s8569_s27 + $0x634] sm:$0xf0]  ;;  %v6083_v3 = vld [vmem:[%s8569_s27 + $0x728] sm:$0xf]  ;;  %v7674_v36 = vld [vmem:[%s8569_s27 + $0xcc] sm:$0xf] }
 0x101   : > { %2624 = vmatpush.bf16.msrb.mxu0 %v5764_v7  ;;  %v5683_v7 = vld [vmem:[%s8569_s27 + $0x408] sm:$0xf]  ;;  %v5956_v10 = vor.u32 %v7848_v0, %v5955_v63  ;;  %v7812_v13 = vld [vmem:[%s8569_s27 + $0x514] sm:$0xf0]  ;;  %v6084_v15 = vor.u32 %v7880_v4, %v6083_v3  ;;  %v7734_v58 = vld [vmem:[%s8569_s27 + $0x2ac] sm:$0xf] }
 0x102   : > { %2638 = vmatpush.bf16.msrb.mxu1 %v5892_v8  ;;  %v8992_v5 = vadd.f32 %v2393_v1, %v2380_v53  ;;  %v7780_v8 = vld [vmem:[%s8569_s27 + $0x414] sm:$0xf0]  ;;  %v5811_v12 = vld [vmem:[%s8569_s27 + $0x508] sm:$0xf]  ;;  %v7670_v53 = vld [vmem:[%s8569_s27 + $0xac] sm:$0xf] }
 0x103   : > { %2652 = vmatpush.bf16.msrb.mxu2 %v6020_v9  ;;  %v5828_v9 = vor.u32 %v7816_v62, %v5827_v60  ;;  %v7844_v16 = vld [vmem:[%s8569_s27 + $0x614] sm:$0xf0]  ;;  %v6067_v17 = vld [vmem:[%s8569_s27 + $0x708] sm:$0xf]  ;;  %v5509_v60 = vld [vmem:[%s8569_s27 + $0x2b8] sm:$0xf0]  ;;  %v9034_v0 = vpop.f32.mrf.mxu2 }
 0x104   : > { %2666 = vmatpush.bf16.msrb.mxu3 %v6148_v14  ;;  %v5939_v14 = vld [vmem:[%s8569_s27 + $0x608] sm:$0xf]  ;;  %v7876_v19 = vld [vmem:[%s8569_s27 + $0x714] sm:$0xf0]  ;;  %v5637_v62 = vld [vmem:[%s8569_s27 + $0x3b8] sm:$0xf0]  ;;  %v5512_v3 = vor.u32 %v7734_v58, %v5509_v60 }
 0x105   : > { %2625 = vmatpush.bf16.msrb.mxu0 %v5748_v21  ;;  %v5285_v21 = vld [vmem:[%s8569_s27 + $0xf8] sm:$0xf0]  ;;  %v5940_v28 = vor.u32 %v7844_v16, %v5939_v14  ;;  %v6068_v31 = vor.u32 %v7876_v19, %v6067_v17  ;;  %v7666_v4 = vld [vmem:[%s8569_s27 + $0x8c] sm:$0xf] }
 0x106   : > { %2639 = vmatpush.bf16.msrb.mxu1 %v5876_v22  ;;  %v7710_v22 = vld [vmem:[%s8569_s27 + $0x1ec] sm:$0xf]  ;;  %v5288_v32 = vor.u32 %v7678_v20, %v5285_v21  ;;  %v5621_v16 = vld [vmem:[%s8569_s27 + $0x398] sm:$0xf0] }
 0x107   : > { %2653 = vmatpush.bf16.msrb.mxu2 %v6004_v23  ;;  %v5684_v23 = vor.u32 %v7780_v8, %v5683_v7  ;;  %v5416_v33 = vor.u32 %v7710_v22, %v5413_v24  ;;  %v7698_v7 = vld [vmem:[%s8569_s27 + $0x18c] sm:$0xf]  ;;  %v5221_v24 = vld [vmem:[%s8569_s27 + $0x78] sm:$0xf0] }
 0x108   : > { %2667 = vmatpush.bf16.msrb.mxu3 %v6132_v27  ;;  %v5812_v27 = vor.u32 %v7812_v13, %v5811_v12  ;;  %v7730_v12 = vld [vmem:[%s8569_s27 + $0x28c] sm:$0xf]  ;;  %v5493_v13 = vld [vmem:[%s8569_s27 + $0x298] sm:$0xf0] }
 0x109   : > { %2626 = vmatpush.bf16.msrb.mxu0 %v5732_v35  ;;  %v9010_v35 = vpop.f32.mrf.mxu0  ;;  %v5496_v21 = vor.u32 %v7730_v12, %v5493_v13  ;;  %v7694_v25 = vld [vmem:[%s8569_s27 + $0x16c] sm:$0xf]  ;;  %v5189_v58 = vld [vmem:[%s8569_s27 + $0x38] sm:$0xf0] }
 0x10a   : > { %2640 = vmatpush.bf16.msrb.mxu1 %v5860_v37  ;;  %v5269_v37 = vld [vmem:[%s8569_s27 + $0xd8] sm:$0xf0]  ;;  %v7726_v29 = vld [vmem:[%s8569_s27 + $0x26c] sm:$0xf] }
 0x10b   : > { %2654 = vmatpush.bf16.msrb.mxu2 %v5988_v38  ;;  %v7706_v38 = vld [vmem:[%s8569_s27 + $0x1cc] sm:$0xf]  ;;  %v5272_v50 = vor.u32 %v7674_v36, %v5269_v37  ;;  %v5205_v37 = vld [vmem:[%s8569_s27 + $0x58] sm:$0xf0] }
 0x10c   : > { %2668 = vmatpush.bf16.msrb.mxu3 %v6116_v43  ;;  %v5525_v43 = vld [vmem:[%s8569_s27 + $0x2d8] sm:$0xf0]  ;;  %v5400_v51 = vor.u32 %v7706_v38, %v5397_v41  ;;  %v7758_v30 = vld [vmem:[%s8569_s27 + $0x36c] sm:$0xf] }
 0x10d   : > { %2627 = vmatpush.bf16.msrb.mxu0 %v5716_v54  ;;  %v5528_v52 = vor.u32 %v7738_v42, %v5525_v43  ;;  %v5253_v54 = vld [vmem:[%s8569_s27 + $0xb8] sm:$0xf0]  ;;  %v7658_v36 = vld [vmem:[%s8569_s27 + $0x4c] sm:$0xf] }
 0x10e   : > { %2641 = vmatpush.bf16.msrb.mxu1 %v5844_v55  ;;  %v7702_v55 = vld [vmem:[%s8569_s27 + $0x1ac] sm:$0xf]  ;;  %v5256_v63 = vor.u32 %v7670_v53, %v5253_v54  ;;  %v5333_v42 = vld [vmem:[%s8569_s27 + $0x158] sm:$0xf0]  ;;  %v5208_v53 = vor.u32 %v7658_v36, %v5205_v37 }
 0x10f   : > { %2655 = vmatpush.bf16.msrb.mxu2 %v5972_v56  ;;  %v5656_v56 = vor.u32 %v7770_v46, %v5653_v47  ;;  %v5384_v1 = vor.u32 %v7702_v55, %v5381_v57  ;;  %v7690_v38 = vld [vmem:[%s8569_s27 + $0x14c] sm:$0xf]  ;;  %v5461_v46 = vld [vmem:[%s8569_s27 + $0x258] sm:$0xf0] }
 0x110   : > { %2669 = vmatpush.bf16.msrb.mxu3 %v6100_v61  ;;  %v7766_v61 = vld [vmem:[%s8569_s27 + $0x3ac] sm:$0xf]  ;;  %v5336_v55 = vor.u32 %v7690_v38, %v5333_v42  ;;  %v5781_v37 = vld [vmem:[%s8569_s27 + $0x4d8] sm:$0xf0] }
 0x111   : > { %2628 = vmatpush.bf16.msrb.mxu0 %v5700_v6  ;;  %v5237_v6 = vld [vmem:[%s8569_s27 + $0x98] sm:$0xf0]  ;;  %v5640_v8 = vor.u32 %v7766_v61, %v5637_v62  ;;  %v7722_v43 = vld [vmem:[%s8569_s27 + $0x24c] sm:$0xf] }
 0x112   : > { %2642 = vmatpush.bf16.msrb.mxu1 %v5828_v9  ;;  %v9039_v9 = vpop.f32.mrf.mxu3  ;;  %v5240_v19 = vor.u32 %v7666_v4, %v5237_v6  ;;  %v7654_v57 = vld [vmem:[%s8569_s27 + $0x2c] sm:$0xf]  ;;  %v5317_v62 = vld [vmem:[%s8569_s27 + $0x138] sm:$0xf0] }
 0x113   : > { %2656 = vmatpush.bf16.msrb.mxu2 %v5956_v10  ;;  %v5365_v10 = vld [vmem:[%s8569_s27 + $0x198] sm:$0xf0]  ;;  %v7686_v60 = vld [vmem:[%s8569_s27 + $0x12c] sm:$0xf]  ;;  %v5192_v6 = vor.u32 %v7654_v57, %v5189_v58 }
 0x114   : > { %2670 = vmatpush.bf16.msrb.mxu3 %v6084_v15  ;;  %v7762_v15 = vld [vmem:[%s8569_s27 + $0x38c] sm:$0xf]  ;;  %v5368_v20 = vor.u32 %v7698_v7, %v5365_v10  ;;  %v5573_v4 = vld [vmem:[%s8569_s27 + $0x338] sm:$0xf0]  ;;  %v5320_v10 = vor.u32 %v7686_v60, %v5317_v62 }
 0x115   : > { %2629 = vmatpush.bf16.msrb.mxu0 %v5684_v23  ;;  %v2407_v14 = vpop.f32.mrf.mxu0  ;;  %v7662_v23 = vld [vmem:[%s8569_s27 + $0x6c] sm:$0xf]  ;;  %v5624_v26 = vor.u32 %v7762_v15, %v5621_v16  ;;  %v5765_v57 = vld [vmem:[%s8569_s27 + $0x4b8] sm:$0xf0] }
 0x116   : > { %2643 = vmatpush.bf16.msrb.mxu1 %v5812_v27  ;;  %v2408_v17 = vadd.f32 %v2407_v14, %v8992_v5  ;;  %v2421_v22 = vpop.f32.mrf.mxu1  ;;  %v5477_v5 = vld [vmem:[%s8569_s27 + $0x278] sm:$0xf0]  ;;  %v7650_v7 = vld [vmem:[%s8569_s27 + $0xc] sm:$0xf] }
 0x117   : > { %2657 = vmatpush.bf16.msrb.mxu2 %v5940_v28  ;;  %v5349_v28 = vld [vmem:[%s8569_s27 + $0x178] sm:$0xf0]  ;;  %v7682_v13 = vld [vmem:[%s8569_s27 + $0x10c] sm:$0xf] }
 0x118   : > { %2671 = vmatpush.bf16.msrb.mxu3 %v6068_v31  ;;  %2630 = vmatmul.bf16.vlgmr.msrb.gmra.mxu0 %v8731_v40  ;;  %v2422_v27 = vadd.f32 %v2421_v22, %v2408_v17  ;;  %v5605_v31 = vld [vmem:[%s8569_s27 + $0x378] sm:$0xf0]  ;;  %v7714_v15 = vld [vmem:[%s8569_s27 + $0x20c] sm:$0xf] }
 0x119   : > { %2678 = vmatpush.bf16.msra.mxu0 %v5288_v32  ;;  %2644 = vmatmul.bf16.vlgmr.msrb.gmra.mxu1 %v8738_v45  ;;  %v5224_v32 = vor.u32 %v7662_v23, %v5221_v24  ;;  %v5301_v14 = vld [vmem:[%s8569_s27 + $0x118] sm:$0xf0]  ;;  %v7838_v23 = vld [vmem:[%s8569_s27 + $0x5ec] sm:$0xf] }
 0x11a   : > { %2692 = vmatpush.bf16.msra.mxu1 %v5416_v33  ;;  %2658 = vmatmul.bf16.vlgmr.msrb.gmra.mxu2 %v8736_v44  ;;  %v5352_v33 = vor.u32 %v7694_v25, %v5349_v28  ;;  %v5429_v17 = vld [vmem:[%s8569_s27 + $0x218] sm:$0xf0]  ;;  %v5304_v28 = vor.u32 %v7682_v13, %v5301_v14  ;;  %v7802_v36 = vld [vmem:[%s8569_s27 + $0x4cc] sm:$0xf] }
 0x11b   : > { %2706 = vmatpush.bf16.msra.mxu2 %v5544_v34  ;;  %2672 = vmatmul.bf16.vlgmr.msrb.gmra.mxu3 %v8742_v48  ;;  %v5480_v34 = vor.u32 %v7726_v29, %v5477_v5  ;;  %v5797_v22 = vld [vmem:[%s8569_s27 + $0x4f8] sm:$0xf0]  ;;  %v5432_v29 = vor.u32 %v7714_v15, %v5429_v17  ;;  %v7902_v5 = vld [vmem:[%s8569_s27 + $0x7ec] sm:$0xf] }
 0x11c   : > { %2720 = vmatpush.bf16.msra.mxu3 %v5672_v39  ;;  %v5608_v39 = vor.u32 %v7758_v30, %v5605_v31  ;;  %v5925_v25 = vld [vmem:[%s8569_s27 + $0x5f8] sm:$0xf0]  ;;  %v7834_v38 = vld [vmem:[%s8569_s27 + $0x5cc] sm:$0xf] }
 0x11d   : > { %2679 = vmatpush.bf16.msra.mxu0 %v5272_v50  ;;  %v2435_v41 = vpop.f32.mrf.mxu2  ;;  %v7754_v50 = vld [vmem:[%s8569_s27 + $0x34c] sm:$0xf]  ;;  %v6181_v30 = vld [vmem:[%s8569_s27 + $0x7f8] sm:$0xf0] }
 0x11e   : > { %2693 = vmatpush.bf16.msra.mxu1 %v5400_v51  ;;  %v2436_v47 = vadd.f32 %v2435_v41, %v2422_v27  ;;  %v5589_v51 = vld [vmem:[%s8569_s27 + $0x358] sm:$0xf0]  ;;  %v7866_v42 = vld [vmem:[%s8569_s27 + $0x6cc] sm:$0xf] }
 0x11f   : > { %2707 = vmatpush.bf16.msra.mxu2 %v5528_v52  ;;  %v2449_v52 = vpop.f32.mrf.mxu3  ;;  %v5592_v61 = vor.u32 %v7754_v50, %v5589_v51  ;;  %v6053_v27 = vld [vmem:[%s8569_s27 + $0x6f8] sm:$0xf0]  ;;  %v9097_v50 = vpop.f32.mrf.mxu0  ;;  %v7830_v58 = vld [vmem:[%s8569_s27 + $0x5ac] sm:$0xf] }
 0x120   : > { %2721 = vmatpush.bf16.msra.mxu3 %v5656_v56  ;;  %v9063_v54 = vadd.f32 %v2449_v52, %v2436_v47  ;;  %v5464_v56 = vor.u32 %v7722_v43, %v5461_v46  ;;  %v5909_v41 = vld [vmem:[%s8569_s27 + $0x5d8] sm:$0xf0]  ;;  %v7898_v46 = vld [vmem:[%s8569_s27 + $0x7cc] sm:$0xf]  ;;  %v9099_v51 = vpop.f32.mrf.mxu1  ;;  %v5784_v52 = vor.u32 %v7802_v36, %v5781_v37 }
 0x121   : > { %2680 = vmatpush.bf16.msra.mxu0 %v5256_v63  ;;  %v7718_v63 = vld [vmem:[%s8569_s27 + $0x22c] sm:$0xf]  ;;  %v6037_v43 = vld [vmem:[%s8569_s27 + $0x6d8] sm:$0xf0] }
 0x122   : > { %2694 = vmatpush.bf16.msra.mxu1 %v5384_v1  ;;  %v5445_v1 = vld [vmem:[%s8569_s27 + $0x238] sm:$0xf0]  ;;  %v7862_v62 = vld [vmem:[%s8569_s27 + $0x6ac] sm:$0xf] }
 0x123   : > { %2708 = vmatpush.bf16.msra.mxu2 %v5512_v3  ;;  %v7750_v3 = vld [vmem:[%s8569_s27 + $0x32c] sm:$0xf]  ;;  %v5448_v12 = vor.u32 %v7718_v63, %v5445_v1  ;;  %v6165_v47 = vld [vmem:[%s8569_s27 + $0x7d8] sm:$0xf0] }
 0x124   : > { %2722 = vmatpush.bf16.msra.mxu3 %v5640_v8  ;;  %v5173_v8 = vld [vmem:[%s8569_s27 + $0x18] sm:$0xf0]  ;;  %v5576_v16 = vor.u32 %v7750_v3, %v5573_v4  ;;  %v6168_v60 = vor.u32 %v7898_v46, %v6165_v47  ;;  %v7894_v1 = vld [vmem:[%s8569_s27 + $0x7ac] sm:$0xf] }
 0x125   : > { %2681 = vmatpush.bf16.msra.mxu0 %v5240_v19  ;;  %v7746_v19 = vld [vmem:[%s8569_s27 + $0x30c] sm:$0xf]  ;;  %v5176_v24 = vor.u32 %v7650_v7, %v5173_v8  ;;  %v6021_v63 = vld [vmem:[%s8569_s27 + $0x6b8] sm:$0xf0] }
 0x126   : > { %2695 = vmatpush.bf16.msra.mxu1 %v5368_v20  ;;  %v5557_v20 = vld [vmem:[%s8569_s27 + $0x318] sm:$0xf0]  ;;  %v6024_v7 = vor.u32 %v7862_v62, %v6021_v63  ;;  %v7858_v13 = vld [vmem:[%s8569_s27 + $0x68c] sm:$0xf] }
 0x127   : > { %2709 = vmatpush.bf16.msra.mxu2 %v5496_v21  ;;  %v7806_v21 = vld [vmem:[%s8569_s27 + $0x4ec] sm:$0xf]  ;;  %v5560_v31 = vor.u32 %v7746_v19, %v5557_v20  ;;  %v6149_v3 = vld [vmem:[%s8569_s27 + $0x7b8] sm:$0xf0]  ;;  %v9121_v15 = vpop.f32.mrf.mxu3 }
 0x128   : > { %2723 = vmatpush.bf16.msra.mxu3 %v5624_v26  ;;  %v7870_v26 = vld [vmem:[%s8569_s27 + $0x6ec] sm:$0xf]  ;;  %v5749_v8 = vld [vmem:[%s8569_s27 + $0x498] sm:$0xf0] }
 0x129   : > { %2682 = vmatpush.bf16.msra.mxu0 %v5224_v32  ;;  %v5800_v32 = vor.u32 %v7806_v21, %v5797_v22  ;;  %v6005_v14 = vld [vmem:[%s8569_s27 + $0x698] sm:$0xf0]  ;;  %v7786_v36 = vld [vmem:[%s8569_s27 + $0x44c] sm:$0xf] }
 0x12a   : > { %2696 = vmatpush.bf16.msra.mxu1 %v5352_v33  ;;  %v5928_v33 = vor.u32 %v7838_v23, %v5925_v25  ;;  %v6008_v22 = vor.u32 %v7858_v13, %v6005_v14  ;;  %v7790_v23 = vld [vmem:[%s8569_s27 + $0x46c] sm:$0xf]  ;;  %v5717_v37 = vld [vmem:[%s8569_s27 + $0x458] sm:$0xf0] }
 0x12b   : > { %2710 = vmatpush.bf16.msra.mxu2 %v5480_v34  ;;  %v6056_v34 = vor.u32 %v7870_v26, %v6053_v27  ;;  %v7822_v25 = vld [vmem:[%s8569_s27 + $0x56c] sm:$0xf] }
 0x12c   : > { %2724 = vmatpush.bf16.msra.mxu3 %v5608_v39  ;;  %v6184_v39 = vor.u32 %v7902_v5, %v6181_v30  ;;  %v5989_v5 = vld [vmem:[%s8569_s27 + $0x678] sm:$0xf0]  ;;  %v7886_v30 = vld [vmem:[%s8569_s27 + $0x76c] sm:$0xf] }
 0x12d   : > { %2683 = vmatpush.bf16.msra.mxu0 %v5208_v53  ;;  %v5912_v53 = vor.u32 %v7834_v38, %v5909_v41  ;;  %v7818_v38 = vld [vmem:[%s8569_s27 + $0x54c] sm:$0xf]  ;;  %v5845_v41 = vld [vmem:[%s8569_s27 + $0x558] sm:$0xf0] }
 0x12e   : > { %2697 = vmatpush.bf16.msra.mxu1 %v5336_v55  ;;  %v6040_v55 = vor.u32 %v7866_v42, %v6037_v43  ;;  %v7850_v42 = vld [vmem:[%s8569_s27 + $0x64c] sm:$0xf]  ;;  %v5973_v43 = vld [vmem:[%s8569_s27 + $0x658] sm:$0xf0] }
 0x12f   : > { %2711 = vmatpush.bf16.msra.mxu2 %v5464_v56  ;;  %v7798_v56 = vld [vmem:[%s8569_s27 + $0x4ac] sm:$0xf] }
 0x130   : > { %2725 = vmatpush.bf16.msra.mxu3 %v5592_v61  ;;  %v5893_v61 = vld [vmem:[%s8569_s27 + $0x5b8] sm:$0xf0]  ;;  %v5768_v4 = vor.u32 %v7798_v56, %v5765_v57  ;;  %v7882_v47 = vld [vmem:[%s8569_s27 + $0x74c] sm:$0xf]  ;;  %v5848_v57 = vor.u32 %v7818_v38, %v5845_v41  ;;  %v6315_v38 = vld [vmem:[%s8563_s23 + $0xc0] sm:$0xf] }
 0x131   : > { %2684 = vmatpush.bf16.msra.mxu0 %v5192_v6  ;;  %v5896_v6 = vor.u32 %v7830_v58, %v5893_v61  ;;  %v5976_v58 = vor.u32 %v7850_v42, %v5973_v43  ;;  %v5701_v61 = vld [vmem:[%s8569_s27 + $0x438] sm:$0xf0]  ;;  %v7814_v62 = vld [vmem:[%s8569_s27 + $0x52c] sm:$0xf]  ;;  %v6443_v41 = vld [vmem:[%s8563_s23 + $0x1c0] sm:$0xf] }
 0x132   : > { %2698 = vmatpush.bf16.msra.mxu1 %v5320_v10  ;;  %v7826_v10 = vld [vmem:[%s8569_s27 + $0x58c] sm:$0xf]  ;;  %v7443_v43 = vld [vmem:[%s8563_s23 + $0x1cc] sm:$0xf0] }
 0x133   : > { %2712 = vmatpush.bf16.msra.mxu2 %v5448_v12  ;;  %v9116_v12 = vpop.f32.mrf.mxu2  ;;  %v7810_v14 = vld [vmem:[%s8569_s27 + $0x50c] sm:$0xf] }
 0x134   : > { %2726 = vmatpush.bf16.msra.mxu3 %v5576_v16  ;;  %v6133_v16 = vld [vmem:[%s8569_s27 + $0x798] sm:$0xf0] }
 0x135   : > { %2685 = vmatpush.bf16.msra.mxu0 %v5176_v24  ;;  %v2463_v19 = vpop.f32.mrf.mxu0  ;;  %v5733_v24 = vld [vmem:[%s8569_s27 + $0x478] sm:$0xf0] }
 0x136   : > { %2699 = vmatpush.bf16.msra.mxu1 %v5304_v28  ;;  %v2477_v20 = vpop.f32.mrf.mxu1  ;;  %v5861_v28 = vld [vmem:[%s8569_s27 + $0x578] sm:$0xf0] }
 0x137   : > { %2713 = vmatpush.bf16.msra.mxu2 %v5432_v29  ;;  %v2478_v26 = vadd.f32 %v2477_v20, %v2463_v19  ;;  %v7854_v29 = vld [vmem:[%s8569_s27 + $0x66c] sm:$0xf]  ;;  %v5941_v19 = vld [vmem:[%s8569_s27 + $0x618] sm:$0xf0] }
 0x138   : > { %2727 = vmatpush.bf16.msra.mxu3 %v5560_v31  ;;  %2686 = vmatmul.bf16.vlgmr.msra.gmra.mxu0 %v8662_v59  ;;  %v7794_v59 = vld [vmem:[%s8569_s27 + $0x48c] sm:$0xf]  ;;  %v6117_v31 = vld [vmem:[%s8569_s27 + $0x778] sm:$0xf0] }
 0x139   : > { %2734 = vmatpush.bf16.msrb.mxu0 %v5800_v32  ;;  %2700 = vmatmul.bf16.vlgmr.msra.gmra.mxu1 %v8674_v11  ;;  %v5877_v11 = vld [vmem:[%s8569_s27 + $0x598] sm:$0xf0]  ;;  %v5752_v17 = vor.u32 %v7794_v59, %v5749_v8  ;;  %v5736_v32 = vor.u32 %v7790_v23, %v5733_v24  ;;  %v7874_v20 = vld [vmem:[%s8569_s27 + $0x70c] sm:$0xf]  ;;  %v7415_v23 = vld [vmem:[%s8563_s23 + $0xec] sm:$0xf0] }
 0x13a   : > { %2748 = vmatpush.bf16.msrb.mxu1 %v5928_v33  ;;  %2714 = vmatmul.bf16.vlgmr.msra.gmra.mxu2 %v8667_v2  ;;  %v6152_v2 = vor.u32 %v7894_v1, %v6149_v3  ;;  %v5880_v21 = vor.u32 %v7826_v10, %v5877_v11  ;;  %v5864_v33 = vor.u32 %v7822_v25, %v5861_v28  ;;  %v5829_v3 = vld [vmem:[%s8569_s27 + $0x538] sm:$0xf0]  ;;  %v7778_v10 = vld [vmem:[%s8569_s27 + $0x40c] sm:$0xf]  ;;  %v6459_v24 = vld [vmem:[%s8563_s23 + $0x1e0] sm:$0xf] }
 0x13b   : > { %2762 = vmatpush.bf16.msrb.mxu2 %v6056_v34  ;;  %2728 = vmatmul.bf16.vlgmr.msra.gmra.mxu3 %v8679_v18  ;;  %v7890_v18 = vld [vmem:[%s8569_s27 + $0x78c] sm:$0xf]  ;;  %v5992_v34 = vor.u32 %v7854_v29, %v5989_v5  ;;  %v6085_v59 = vld [vmem:[%s8569_s27 + $0x738] sm:$0xf0]  ;;  %v5832_v11 = vor.u32 %v7814_v62, %v5829_v3  ;;  %v7479_v28 = vld [vmem:[%s8563_s23 + $0x2ec] sm:$0xf0] }
 0x13c   : > { %2776 = vmatpush.bf16.msrb.mxu3 %v6184_v39  ;;  %v6136_v27 = vor.u32 %v7890_v18, %v6133_v16  ;;  %v6120_v39 = vor.u32 %v7886_v30, %v6117_v31  ;;  %v5813_v18 = vld [vmem:[%s8569_s27 + $0x518] sm:$0xf0]  ;;  %v7842_v16 = vld [vmem:[%s8569_s27 + $0x60c] sm:$0xf]  ;;  %v6715_v30 = vld [vmem:[%s8563_s23 + $0x3e0] sm:$0xf] }
 0x13d   : > { %2735 = vmatpush.bf16.msrb.mxu0 %v5784_v52  ;;  %v2491_v46 = vpop.f32.mrf.mxu2  ;;  %v6101_v52 = vld [vmem:[%s8569_s27 + $0x758] sm:$0xf0]  ;;  %v5816_v29 = vor.u32 %v7810_v14, %v5813_v18  ;;  %v5944_v5 = vor.u32 %v7842_v16, %v5941_v19  ;;  %v7511_v31 = vld [vmem:[%s8563_s23 + $0x3ec] sm:$0xf0]  ;;  %v6427_v62 = vld [vmem:[%s8563_s23 + $0x1a0] sm:$0xf] }
 0x13e   : > { %2749 = vmatpush.bf16.msrb.mxu1 %v5912_v53  ;;  %v2492_v53 = vadd.f32 %v2491_v46, %v2478_v26  ;;  %v2505_v56 = vpop.f32.mrf.mxu3  ;;  %v6104_v1 = vor.u32 %v7882_v47, %v6101_v52  ;;  %v7447_v26 = vld [vmem:[%s8563_s23 + $0x1ec] sm:$0xf0]  ;;  %v6716_v42 = vor.u32 %v7511_v31, %v6715_v30  ;;  %v6571_v46 = vld [vmem:[%s8563_s23 + $0x2c0] sm:$0xf] }
 0x13f   : > { %2763 = vmatpush.bf16.msrb.mxu2 %v6040_v55  ;;  %v5720_v55 = vor.u32 %v7786_v36, %v5717_v37  ;;  %v9167_v37 = vpop.f32.mrf.mxu0  ;;  %v7475_v47 = vld [vmem:[%s8563_s23 + $0x2cc] sm:$0xf0]  ;;  %v6699_v52 = vld [vmem:[%s8563_s23 + $0x3c0] sm:$0xf] }
 0x140   : > { %2777 = vmatpush.bf16.msrb.mxu3 %v6168_v60  ;;  %v7782_v60 = vld [vmem:[%s8569_s27 + $0x42c] sm:$0xf]  ;;  %v9144_v63 = vadd.f32 %v2505_v56, %v2492_v53  ;;  %v7507_v53 = vld [vmem:[%s8563_s23 + $0x3cc] sm:$0xf0]  ;;  %v6539_v18 = vld [vmem:[%s8563_s23 + $0x280] sm:$0xf] }
 0x141   : > { %2736 = vmatpush.bf16.msrb.mxu0 %v5768_v4  ;;  %v7846_v4 = vld [vmem:[%s8569_s27 + $0x62c] sm:$0xf]  ;;  %v5704_v8 = vor.u32 %v7782_v60, %v5701_v61  ;;  %v6299_v60 = vld [vmem:[%s8563_s23 + $0xa0] sm:$0xf]  ;;  %v7407_v61 = vld [vmem:[%s8563_s23 + $0xac] sm:$0xf0] }
 0x142   : > { %2750 = vmatpush.bf16.msrb.mxu1 %v5896_v6  ;;  %v5957_v6 = vld [vmem:[%s8569_s27 + $0x638] sm:$0xf0]  ;;  %v7439_v3 = vld [vmem:[%s8563_s23 + $0x1ac] sm:$0xf0]  ;;  %v6667_v19 = vld [vmem:[%s8563_s23 + $0x380] sm:$0xf] }
 0x143   : > { %2764 = vmatpush.bf16.msrb.mxu2 %v6024_v7  ;;  %v7878_v7 = vld [vmem:[%s8569_s27 + $0x72c] sm:$0xf]  ;;  %v5960_v13 = vor.u32 %v7846_v4, %v5957_v6  ;;  %v6555_v4 = vld [vmem:[%s8563_s23 + $0x2a0] sm:$0xf]  ;;  %v7471_v6 = vld [vmem:[%s8563_s23 + $0x2ac] sm:$0xf0] }
 0x144   : > { %2778 = vmatpush.bf16.msrb.mxu3 %v6152_v2  ;;  %v5685_v2 = vld [vmem:[%s8569_s27 + $0x418] sm:$0xf0]  ;;  %v7467_v16 = vld [vmem:[%s8563_s23 + $0x28c] sm:$0xf0]  ;;  %v6523_v31 = vld [vmem:[%s8563_s23 + $0x260] sm:$0xf] }
 0x145   : > { %2737 = vmatpush.bf16.msrb.mxu0 %v5752_v17  ;;  %v6088_v17 = vor.u32 %v7878_v7, %v6085_v59  ;;  %v5688_v25 = vor.u32 %v7778_v10, %v5685_v2  ;;  %v6683_v7 = vld [vmem:[%s8563_s23 + $0x3a0] sm:$0xf]  ;;  %v7503_v59 = vld [vmem:[%s8563_s23 + $0x3ac] sm:$0xf0]  ;;  %v6428_v10 = vor.u32 %v7439_v3, %v6427_v62  ;;  %v6556_v2 = vor.u32 %v7471_v6, %v6555_v4 }
 0x146   : > { %2751 = vmatpush.bf16.msrb.mxu1 %v5880_v21  ;;  %v6069_v21 = vld [vmem:[%s8569_s27 + $0x718] sm:$0xf0]  ;;  %v9196_v14 = vpop.f32.mrf.mxu3  ;;  %v7431_v30 = vld [vmem:[%s8563_s23 + $0x16c] sm:$0xf0]  ;;  %v6235_v62 = vld [vmem:[%s8563_s23 + $0x20] sm:$0xf] }
 0x147   : > { %2765 = vmatpush.bf16.msrb.mxu2 %v6008_v22  ;;  %v6331_v22 = vld [vmem:[%s8563_s23 + $0xe0] sm:$0xf]  ;;  %v7391_v6 = vld [vmem:[%s8563_s23 + $0x2c] sm:$0xf0] }
 0x148   : > { %2779 = vmatpush.bf16.msrb.mxu3 %v6136_v27  ;;  %v6587_v27 = vld [vmem:[%s8563_s23 + $0x2e0] sm:$0xf] }
 0x149   : > { %2738 = vmatpush.bf16.msrb.mxu0 %v5736_v32  ;;  %v6072_v32 = vor.u32 %v7874_v20, %v6069_v21  ;;  %v6588_v36 = vor.u32 %v7479_v28, %v6587_v27  ;;  %v7499_v20 = vld [vmem:[%s8563_s23 + $0x38c] sm:$0xf0]  ;;  %v6395_v28 = vld [vmem:[%s8563_s23 + $0x160] sm:$0xf] }
 0x14a   : > { %2752 = vmatpush.bf16.msrb.mxu1 %v5864_v33  ;;  %v6332_v33 = vor.u32 %v7415_v23, %v6331_v22  ;;  %v7399_v27 = vld [vmem:[%s8563_s23 + $0x6c] sm:$0xf0] }
 0x14b   : > { %2766 = vmatpush.bf16.msrb.mxu2 %v5992_v34  ;;  %v6460_v34 = vor.u32 %v7447_v26, %v6459_v24  ;;  %v6540_v24 = vor.u32 %v7467_v16, %v6539_v18  ;;  %v6267_v26 = vld [vmem:[%s8563_s23 + $0x60] sm:$0xf]  ;;  %v7419_v16 = vld [vmem:[%s8563_s23 + $0x10c] sm:$0xf0] }
 0x14c   : > { %2780 = vmatpush.bf16.msrb.mxu3 %v6120_v39  ;;  %v7411_v39 = vld [vmem:[%s8563_s23 + $0xcc] sm:$0xf0]  ;;  %v6347_v18 = vld [vmem:[%s8563_s23 + $0x100] sm:$0xf] }
 0x14d   : > { %2739 = vmatpush.bf16.msrb.mxu0 %v5720_v55  ;;  %v9177_v55 = vpop.f32.mrf.mxu1  ;;  %v6316_v56 = vor.u32 %v7411_v39, %v6315_v38  ;;  %v6251_v39 = vld [vmem:[%s8563_s23 + $0x40] sm:$0xf] }
 0x14e   : > { %2753 = vmatpush.bf16.msrb.mxu1 %v5848_v57  ;;  %v6444_v57 = vor.u32 %v7443_v43, %v6443_v41  ;;  %v7395_v41 = vld [vmem:[%s8563_s23 + $0x4c] sm:$0xf0] }
 0x14f   : > { %2767 = vmatpush.bf16.msrb.mxu2 %v5976_v58  ;;  %v6572_v58 = vor.u32 %v7475_v47, %v6571_v46  ;;  %v7427_v47 = vld [vmem:[%s8563_s23 + $0x14c] sm:$0xf0] }
 0x150   : > { %2781 = vmatpush.bf16.msrb.mxu3 %v6104_v1  ;;  %v6700_v1 = vor.u32 %v7507_v53, %v6699_v52  ;;  %v6507_v52 = vld [vmem:[%s8563_s23 + $0x240] sm:$0xf]  ;;  %v7459_v53 = vld [vmem:[%s8563_s23 + $0x24c] sm:$0xf0] }
 0x151   : > { %2740 = vmatpush.bf16.msrb.mxu0 %v5704_v8  ;;  %v9191_v8 = vpop.f32.mrf.mxu2  ;;  %v6508_v4 = vor.u32 %v7459_v53, %v6507_v52  ;;  %v6197_v52 = vld [vmem:[#allocation3 + $0x28] sm:$0xf0] }
 0x152   : > { %2754 = vmatpush.bf16.msrb.mxu1 %v5832_v11  ;;  %v7403_v11 = vld [vmem:[%s8563_s23 + $0x8c] sm:$0xf0] }
 0x153   : > { %2768 = vmatpush.bf16.msrb.mxu2 %v5960_v13  ;;  %v6684_v13 = vor.u32 %v7503_v59, %v6683_v7  ;;  %v6363_v7 = vld [vmem:[%s8563_s23 + $0x120] sm:$0xf]  ;;  %v7423_v59 = vld [vmem:[%s8563_s23 + $0x12c] sm:$0xf0] }
 0x154   : > { %2782 = vmatpush.bf16.msrb.mxu3 %v6088_v17 }
 0x155   : > { %2741 = vmatpush.bf16.msrb.mxu0 %v5688_v25  ;;  %v2519_v17 = vpop.f32.mrf.mxu0 }
 0x156   : > { %2755 = vmatpush.bf16.msrb.mxu1 %v5816_v29  ;;  %v2520_v21 = vadd.f32 %v2519_v17, %v9144_v63  ;;  %v2533_v25 = vpop.f32.mrf.mxu1  ;;  %v6668_v29 = vor.u32 %v7499_v20, %v6667_v19  ;;  %v7463_v63 = vld [vmem:[%s8563_s23 + $0x26c] sm:$0xf0]  ;;  %v6475_v17 = vld [vmem:[%s8563_s23 + $0x200] sm:$0xf]  ;;  %v6364_v20 = vor.u32 %v7423_v59, %v6363_v7 }
 0x157   : > { %2769 = vmatpush.bf16.msrb.mxu2 %v5944_v5  ;;  %v6524_v38 = vor.u32 %v7463_v63, %v6523_v31  ;;  %v7451_v19 = vld [vmem:[%s8563_s23 + $0x20c] sm:$0xf0] }
 0x158   : > { %2783 = vmatpush.bf16.msrb.mxu3 %v6072_v32  ;;  %2742 = vmatmul.bf16.vlgmr.msrb.gmra.mxu0 %v8731_v40  ;;  %v6300_v40 = vor.u32 %v7407_v61, %v6299_v60  ;;  %v2534_v5 = vadd.f32 %v2533_v25, %v2520_v21  ;;  %v6651_v32 = vld [vmem:[%s8563_s23 + $0x360] sm:$0xf]  ;;  %v6252_v61 = vor.u32 %v7395_v41, %v6251_v39  ;;  %v7639_v63 = vld [vmem:[%s8563_s23 + $0x7ec] sm:$0xf0]  ;;  %v7382_v39 = vld [vmem:[#allocation3 + $0x24] sm:$0xf0] }
 0x159   : > { %4110 = vmatpush.bf16.msra.mxu0 %v6332_v33  ;;  %2756 = vmatmul.bf16.vlgmr.msrb.gmra.mxu1 %v8738_v45  ;;  %v6411_v45 = vld [vmem:[%s8563_s23 + $0x180] sm:$0xf]  ;;  %v7495_v33 = vld [vmem:[%s8563_s23 + $0x36c] sm:$0xf0]  ;;  %v7377_v41 = vld [vmem:[#allocation3 + $0x4] sm:$0xf] }
 0x15a   : > { %4124 = vmatpush.bf16.msra.mxu1 %v6460_v34  ;;  %2770 = vmatmul.bf16.vlgmr.msrb.gmra.mxu2 %v8736_v44  ;;  %v6283_v44 = vld [vmem:[%s8563_s23 + $0x80] sm:$0xf]  ;;  %v6268_v34 = vor.u32 %v7399_v27, %v6267_v26  ;;  %v6652_v43 = vor.u32 %v7495_v33, %v6651_v32  ;;  %v7543_v26 = vld [vmem:[%s8563_s23 + $0x4ec] sm:$0xf0] }
 0x15b   : > { %4138 = vmatpush.bf16.msra.mxu2 %v6588_v36  ;;  %2784 = vmatmul.bf16.vlgmr.msrb.gmra.mxu3 %v8742_v48  ;;  %v7435_v48 = vld [vmem:[%s8563_s23 + $0x18c] sm:$0xf0]  ;;  %v6284_v22 = vor.u32 %v7403_v11, %v6283_v44  ;;  %v6396_v36 = vor.u32 %v7431_v30, %v6395_v28  ;;  %v6619_v44 = vld [vmem:[%s8563_s23 + $0x320] sm:$0xf] }
 0x15c   : > { %4152 = vmatpush.bf16.msra.mxu3 %v6716_v42  ;;  %v6412_v23 = vor.u32 %v7435_v48, %v6411_v45  ;;  %v6379_v42 = vld [vmem:[%s8563_s23 + $0x140] sm:$0xf]  ;;  %v7487_v11 = vld [vmem:[%s8563_s23 + $0x32c] sm:$0xf0]  ;;  %v6236_v48 = vor.u32 %v7391_v6, %v6235_v62 }
 0x15d   : > { %4111 = vmatpush.bf16.msra.mxu0 %v6316_v56  ;;  %v2547_v46 = vpop.f32.mrf.mxu2  ;;  %v6380_v3 = vor.u32 %v7427_v47, %v6379_v42  ;;  %v6219_v45 = vld [vmem:[%s8563_s23] sm:$0xf]  ;;  %v6620_v25 = vor.u32 %v7487_v11, %v6619_v44  ;;  %v7575_v28 = vld [vmem:[%s8563_s23 + $0x5ec] sm:$0xf0]  ;;  %v7378_v47 = vld [vmem:[#allocation3 + $0xc] sm:$0xf] }
 0x15e   : > { %4125 = vmatpush.bf16.msra.mxu1 %v6444_v57  ;;  %v2548_v56 = vadd.f32 %v2547_v46, %v2534_v5  ;;  %v6635_v57 = vld [vmem:[%s8563_s23 + $0x340] sm:$0xf]  ;;  %v2561_v60 = vpop.f32.mrf.mxu3  ;;  %v7607_v5 = vld [vmem:[%s8563_s23 + $0x6ec] sm:$0xf0]  ;;  %v6189_v46 = vld [vmem:[#allocation3 + $0x20] sm:$0xf0]  ;;  %v9262_v44 = vpop.f32.mrf.mxu1  ;;  %v9264_v11 = vor.u32 %v7378_v47, %v6197_v52 }
 0x15f   : > { %4139 = vmatpush.bf16.msra.mxu2 %v6572_v58  ;;  %v7491_v58 = vld [vmem:[%s8563_s23 + $0x34c] sm:$0xf0]  ;;  %v6971_v27 = vld [vmem:[%s8563_s23 + $0x5e0] sm:$0xf]  ;;  %v9256_v59 = vor.u32 %v7377_v41, %v6189_v46 }
 0x160   : > { %4153 = vmatpush.bf16.msra.mxu3 %v6700_v1  ;;  %v9221_v1 = vadd.f32 %v2561_v60, %v2548_v56  ;;  %v7227_v30 = vld [vmem:[%s8563_s23 + $0x7e0] sm:$0xf]  ;;  %v6972_v53 = vor.u32 %v7575_v28, %v6971_v27  ;;  %v7603_v6 = vld [vmem:[%s8563_s23 + $0x6cc] sm:$0xf0] }
 0x161   : > { %4112 = vmatpush.bf16.msra.mxu0 %v6300_v40  ;;  %v6636_v40 = vor.u32 %v7491_v58, %v6635_v57  ;;  %v6187_v32 = vld [vmem:[#allocation3] sm:$0xf]  ;;  %v7539_v58 = vld [vmem:[%s8563_s23 + $0x4cc] sm:$0xf0] }
 0x162   : > { %4126 = vmatpush.bf16.msra.mxu1 %v6428_v10  ;;  %v6491_v10 = vld [vmem:[%s8563_s23 + $0x220] sm:$0xf]  ;;  %v7527_v52 = vld [vmem:[%s8563_s23 + $0x46c] sm:$0xf0] }
 0x163   : > { %4140 = vmatpush.bf16.msra.mxu2 %v6556_v2  ;;  %v7455_v2 = vld [vmem:[%s8563_s23 + $0x22c] sm:$0xf0]  ;;  %v7381_v33 = vld [vmem:[#allocation3 + $0x1c] sm:$0xf0] }
 0x164   : > { %4154 = vmatpush.bf16.msra.mxu3 %v6684_v13  ;;  %v7387_v13 = vld [vmem:[%s8563_s23 + $0xc] sm:$0xf0]  ;;  %v6492_v21 = vor.u32 %v7455_v2, %v6491_v10  ;;  %v6827_v57 = vld [vmem:[%s8563_s23 + $0x4c0] sm:$0xf]  ;;  %v9249_v62 = vor.u32 %v7381_v33, %v6187_v32  ;;  %v9260_v2 = vpop.f32.mrf.mxu0 }
 0x165   : > { %4113 = vmatpush.bf16.msra.mxu0 %v6284_v22  ;;  %v6603_v22 = vld [vmem:[%s8563_s23 + $0x300] sm:$0xf]  ;;  %v6220_v31 = vor.u32 %v7387_v13, %v6219_v45  ;;  %v7635_v10 = vld [vmem:[%s8563_s23 + $0x7cc] sm:$0xf0]  ;;  %v6828_v45 = vor.u32 %v7539_v58, %v6827_v57 }
 0x166   : > { %4127 = vmatpush.bf16.msra.mxu1 %v6412_v23  ;;  %v7483_v23 = vld [vmem:[%s8563_s23 + $0x30c] sm:$0xf0]  ;;  %v6955_v60 = vld [vmem:[%s8563_s23 + $0x5c0] sm:$0xf] }
 0x167   : > { %4141 = vmatpush.bf16.msra.mxu2 %v6540_v24  ;;  %v6843_v24 = vld [vmem:[%s8563_s23 + $0x4e0] sm:$0xf]  ;;  %v6604_v42 = vor.u32 %v7483_v23, %v6603_v22  ;;  %v7599_v22 = vld [vmem:[%s8563_s23 + $0x6ac] sm:$0xf0] }
 0x168   : > { %4155 = vmatpush.bf16.msra.mxu3 %v6668_v29  ;;  %v7099_v29 = vld [vmem:[%s8563_s23 + $0x6e0] sm:$0xf]  ;;  %v7595_v33 = vld [vmem:[%s8563_s23 + $0x68c] sm:$0xf0] }
 0x169   : > { %4114 = vmatpush.bf16.msra.mxu0 %v6268_v34  ;;  %v6348_v34 = vor.u32 %v7419_v16, %v6347_v18  ;;  %v7100_v56 = vor.u32 %v7607_v5, %v7099_v29  ;;  %v6811_v18 = vld [vmem:[%s8563_s23 + $0x4a0] sm:$0xf]  ;;  %v7535_v16 = vld [vmem:[%s8563_s23 + $0x4ac] sm:$0xf0] }
 0x16a   : > { %4128 = vmatpush.bf16.msra.mxu1 %v6396_v36  ;;  %v6476_v36 = vor.u32 %v7451_v19, %v6475_v17  ;;  %v6939_v17 = vld [vmem:[%s8563_s23 + $0x5a0] sm:$0xf]  ;;  %v7531_v29 = vld [vmem:[%s8563_s23 + $0x48c] sm:$0xf0] }
 0x16b   : > { %4142 = vmatpush.bf16.msra.mxu2 %v6524_v38  ;;  %v6195_v38 = vld [vmem:[#allocation3 + $0x8] sm:$0xf]  ;;  %v7195_v23 = vld [vmem:[%s8563_s23 + $0x7a0] sm:$0xf]  ;;  %v7559_v58 = vld [vmem:[%s8563_s23 + $0x56c] sm:$0xf0] }
 0x16c   : > { %4156 = vmatpush.bf16.msra.mxu3 %v6652_v43  ;;  %v6844_v43 = vor.u32 %v7543_v26, %v6843_v24  ;;  %v9254_v7 = vor.u32 %v7382_v39, %v6195_v38  ;;  %v7631_v24 = vld [vmem:[%s8563_s23 + $0x7ac] sm:$0xf0]  ;;  %v6795_v28 = vld [vmem:[%s8563_s23 + $0x480] sm:$0xf] }
 0x16d   : > { %4115 = vmatpush.bf16.msra.mxu0 %v6252_v61  ;;  %v7228_v61 = vor.u32 %v7639_v63, %v7227_v30  ;;  %v6923_v5 = vld [vmem:[%s8563_s23 + $0x580] sm:$0xf]  ;;  %v9281_v30 = vpop.f32.mrf.mxu2  ;;  %v7563_v63 = vld [vmem:[%s8563_s23 + $0x58c] sm:$0xf0]  ;;  %v6796_v39 = vor.u32 %v7531_v29, %v6795_v28 }
 0x16e   : > { %4129 = vmatpush.bf16.msra.mxu1 %v6380_v3  ;;  %v7571_v3 = vld [vmem:[%s8563_s23 + $0x5cc] sm:$0xf0]  ;;  %v7051_v32 = vld [vmem:[%s8563_s23 + $0x680] sm:$0xf] }
 0x16f   : > { %4143 = vmatpush.bf16.msra.mxu2 %v6508_v4  ;;  %v7083_v4 = vld [vmem:[%s8563_s23 + $0x6c0] sm:$0xf]  ;;  %v6956_v13 = vor.u32 %v7571_v3, %v6955_v60  ;;  %v7627_v38 = vld [vmem:[%s8563_s23 + $0x78c] sm:$0xf0]  ;;  %v7052_v46 = vor.u32 %v7595_v33, %v7051_v32 }
 0x170   : > { %4157 = vmatpush.bf16.msra.mxu3 %v6636_v40  ;;  %v7211_v40 = vld [vmem:[%s8563_s23 + $0x7c0] sm:$0xf]  ;;  %v7519_v29 = vld [vmem:[%s8563_s23 + $0x42c] sm:$0xf0] }
 0x171   : > { %4116 = vmatpush.bf16.msra.mxu0 %v6236_v48  ;;  %v7084_v48 = vor.u32 %v7603_v6, %v7083_v4  ;;  %v7212_v19 = vor.u32 %v7635_v10, %v7211_v40  ;;  %v6779_v47 = vld [vmem:[%s8563_s23 + $0x460] sm:$0xf]  ;;  %v7623_v4 = vld [vmem:[%s8563_s23 + $0x76c] sm:$0xf0] }
 0x172   : > { %4130 = vmatpush.bf16.msra.mxu1 %v6364_v20  ;;  %v7567_v20 = vld [vmem:[%s8563_s23 + $0x5ac] sm:$0xf0]  ;;  %v7035_v60 = vld [vmem:[%s8563_s23 + $0x660] sm:$0xf]  ;;  %v6780_v6 = vor.u32 %v7527_v52, %v6779_v47 }
 0x173   : > { %4144 = vmatpush.bf16.msra.mxu2 %v6492_v21  ;;  %v7067_v21 = vld [vmem:[%s8563_s23 + $0x6a0] sm:$0xf]  ;;  %v6940_v26 = vor.u32 %v7567_v20, %v6939_v17  ;;  %v7547_v47 = vld [vmem:[%s8563_s23 + $0x50c] sm:$0xf0] }
 0x174   : > { %4158 = vmatpush.bf16.msra.mxu3 %v6620_v25  ;;  %v6812_v25 = vor.u32 %v7535_v16, %v6811_v18  ;;  %v7068_v27 = vor.u32 %v7599_v22, %v7067_v21  ;;  %v7163_v3 = vld [vmem:[%s8563_s23 + $0x760] sm:$0xf]  ;;  %v7555_v16 = vld [vmem:[%s8563_s23 + $0x54c] sm:$0xf0] }
 0x175   : > { %4117 = vmatpush.bf16.msra.mxu0 %v6220_v31  ;;  %v7196_v31 = vor.u32 %v7631_v24, %v7195_v23  ;;  %v2575_v41 = vpop.f32.mrf.mxu0  ;;  %v7164_v18 = vor.u32 %v7623_v4, %v7163_v3  ;;  %v7019_v17 = vld [vmem:[%s8563_s23 + $0x640] sm:$0xf]  ;;  %v7619_v22 = vld [vmem:[%s8563_s23 + $0x74c] sm:$0xf0]  ;;  %v6333_v4 = vld [vmem:[%s8563_s23 + $0xf0] sm:$0xf0] }
 0x176   : > { %4131 = vmatpush.bf16.msra.mxu1 %v6348_v34  ;;  %v9286_v34 = vpop.f32.mrf.mxu3  ;;  %v7147_v21 = vld [vmem:[%s8563_s23 + $0x740] sm:$0xf] }
 0x177   : > { %4145 = vmatpush.bf16.msra.mxu2 %v6476_v36  ;;  %v7179_v36 = vld [vmem:[%s8563_s23 + $0x780] sm:$0xf]  ;;  %v7148_v32 = vor.u32 %v7619_v22, %v7147_v21  ;;  %v6211_v21 = vld [vmem:[#allocation3 + $0x18] sm:$0xf] }
 0x178   : > { %4159 = vmatpush.bf16.msra.mxu3 %v6604_v42  ;;  %4118 = vmatmul.bf16.vlgmr.msra.gmra.mxu0 %v9249_v62  ;;  %v2589_v42 = vpop.f32.mrf.mxu1  ;;  %v7180_v57 = vor.u32 %v7627_v38, %v7179_v36  ;;  %v7003_v33 = vld [vmem:[%s8563_s23 + $0x620] sm:$0xf]  ;;  %v7583_v36 = vld [vmem:[%s8563_s23 + $0x62c] sm:$0xf0]  ;;  %v7384_v22 = vld [vmem:[#allocation3 + $0x34] sm:$0xf0] }
 0x179   : > { %4166 = vmatpush.bf16.msrb.mxu0 %v6844_v43  ;;  %4132 = vmatmul.bf16.vlgmr.msra.gmra.mxu1 %v9256_v59  ;;  %v6924_v43 = vor.u32 %v7563_v63, %v6923_v5  ;;  %v6875_v5 = vld [vmem:[%s8563_s23 + $0x520] sm:$0xf] }
 0x17a   : > { %4180 = vmatpush.bf16.msrb.mxu1 %v6972_v53  ;;  %4146 = vmatmul.bf16.vlgmr.msra.gmra.mxu2 %v9254_v7  ;;  %v6907_v53 = vld [vmem:[%s8563_s23 + $0x560] sm:$0xf] }
 0x17b   : > { %4194 = vmatpush.bf16.msrb.mxu2 %v7100_v56  ;;  %4160 = vmatmul.bf16.vlgmr.msra.gmra.mxu3 %v9264_v11  ;;  %v2590_v56 = vadd.f32 %v2589_v42, %v2575_v41  ;;  %v6908_v40 = vor.u32 %v7559_v58, %v6907_v53  ;;  %v7131_v38 = vld [vmem:[%s8563_s23 + $0x720] sm:$0xf]  ;;  %v7515_v42 = vld [vmem:[%s8563_s23 + $0x40c] sm:$0xf0] }
 0x17c   : > { %4208 = vmatpush.bf16.msrb.mxu3 %v7228_v61  ;;  %v7591_v61 = vld [vmem:[%s8563_s23 + $0x66c] sm:$0xf0]  ;;  %v6731_v41 = vld [vmem:[%s8563_s23 + $0x400] sm:$0xf] }
 0x17d   : > { %4167 = vmatpush.bf16.msrb.mxu0 %v6828_v45  ;;  %v7036_v10 = vor.u32 %v7591_v61, %v7035_v60  ;;  %v6763_v45 = vld [vmem:[%s8563_s23 + $0x440] sm:$0xf]  ;;  %v2603_v20 = vpop.f32.mrf.mxu2  ;;  %v7579_v53 = vld [vmem:[%s8563_s23 + $0x60c] sm:$0xf0]  ;;  %v7413_v61 = vld [vmem:[%s8563_s23 + $0xe4] sm:$0xf] }
 0x17e   : > { %4181 = vmatpush.bf16.msrb.mxu1 %v6956_v13  ;;  %v7523_v13 = vld [vmem:[%s8563_s23 + $0x44c] sm:$0xf0]  ;;  %v2604_v23 = vadd.f32 %v2603_v20, %v2590_v56  ;;  %v6987_v52 = vld [vmem:[%s8563_s23 + $0x600] sm:$0xf] }
 0x17f   : > { %4195 = vmatpush.bf16.msrb.mxu2 %v7084_v48  ;;  %v6891_v48 = vld [vmem:[%s8563_s23 + $0x540] sm:$0xf]  ;;  %v6764_v24 = vor.u32 %v7523_v13, %v6763_v45  ;;  %v7611_v60 = vld [vmem:[%s8563_s23 + $0x70c] sm:$0xf0]  ;;  %v6589_v45 = vld [vmem:[%s8563_s23 + $0x2f0] sm:$0xf0]  ;;  %v6988_v20 = vor.u32 %v7579_v53, %v6987_v52 }
 0x180   : > { %4209 = vmatpush.bf16.msrb.mxu3 %v7212_v19  ;;  %v7587_v19 = vld [vmem:[%s8563_s23 + $0x64c] sm:$0xf0]  ;;  %v7115_v58 = vld [vmem:[%s8563_s23 + $0x700] sm:$0xf]  ;;  %v7509_v13 = vld [vmem:[%s8563_s23 + $0x3e4] sm:$0xf] }
 0x181   : > { %4168 = vmatpush.bf16.msrb.mxu0 %v6812_v25  ;;  %v6747_v25 = vld [vmem:[%s8563_s23 + $0x420] sm:$0xf]  ;;  %v7020_v28 = vor.u32 %v7587_v19, %v7019_v17  ;;  %v7383_v17 = vld [vmem:[#allocation3 + $0x2c] sm:$0xf0]  ;;  %v7505_v53 = vld [vmem:[%s8563_s23 + $0x3c4] sm:$0xf] }
 0x182   : > { %4182 = vmatpush.bf16.msrb.mxu1 %v6940_v26  ;;  %v2617_v26 = vpop.f32.mrf.mxu3 }
 0x183   : > { %4196 = vmatpush.bf16.msrb.mxu2 %v7068_v27  ;;  %v6892_v27 = vor.u32 %v7555_v16, %v6891_v48  ;;  %v9310_v63 = vadd.f32 %v2617_v26, %v2604_v23  ;;  %v6732_v48 = vor.u32 %v7515_v42, %v6731_v41  ;;  %v6203_v16 = vld [vmem:[#allocation3 + $0x10] sm:$0xf]  ;;  %v7379_v23 = vld [vmem:[#allocation3 + $0x14] sm:$0xf]  ;;  %v7473_v42 = vld [vmem:[%s8563_s23 + $0x2c4] sm:$0xf] }
 0x184   : > { %4210 = vmatpush.bf16.msrb.mxu3 %v7196_v31  ;;  %v7551_v31 = vld [vmem:[%s8563_s23 + $0x52c] sm:$0xf0]  ;;  %v6205_v26 = vld [vmem:[#allocation3 + $0x30] sm:$0xf0] }
 0x185   : > { %4169 = vmatpush.bf16.msrb.mxu0 %v6796_v39  ;;  %v7615_v39 = vld [vmem:[%s8563_s23 + $0x72c] sm:$0xf0]  ;;  %v6876_v56 = vor.u32 %v7551_v31, %v6875_v5  ;;  %v2577_v31 = vpop.f32.mrf.mxu0  ;;  %v6445_v41 = vld [vmem:[%s8563_s23 + $0x1d0] sm:$0xf0]  ;;  %v9342_v52 = vor.u32 %v7379_v23, %v6205_v26 }
 0x186   : > { %4183 = vmatpush.bf16.msrb.mxu1 %v6924_v43  ;;  %v6748_v43 = vor.u32 %v7519_v29, %v6747_v25  ;;  %v7132_v3 = vor.u32 %v7615_v39, %v7131_v38  ;;  %v6336_v25 = vor.u32 %v7413_v61, %v6333_v4  ;;  %v9335_v39 = vor.u32 %v7383_v17, %v6203_v16  ;;  %v6301_v4 = vld [vmem:[%s8563_s23 + $0xb0] sm:$0xf0]  ;;  %v2605_v17 = vpop.f32.mrf.mxu2 }
 0x187   : > { %4197 = vmatpush.bf16.msrb.mxu2 %v7052_v46  ;;  %v6859_v46 = vld [vmem:[%s8563_s23 + $0x500] sm:$0xf]  ;;  %v6285_v23 = vld [vmem:[%s8563_s23 + $0x90] sm:$0xf0] }
 0x188   : > { %4211 = vmatpush.bf16.msrb.mxu3 %v7180_v57  ;;  %v7004_v57 = vor.u32 %v7583_v36, %v7003_v33  ;;  %v6860_v19 = vor.u32 %v7547_v47, %v6859_v46  ;;  %v6317_v33 = vld [vmem:[%s8563_s23 + $0xd0] sm:$0xf0]  ;;  %v7441_v36 = vld [vmem:[%s8563_s23 + $0x1c4] sm:$0xf]  ;;  %v2591_v46 = vpop.f32.mrf.mxu1  ;;  %v9340_v47 = vor.u32 %v7384_v22, %v6211_v21 }
 0x189   : > { %4170 = vmatpush.bf16.msrb.mxu0 %v6780_v6  ;;  %v7445_v6 = vld [vmem:[%s8563_s23 + $0x1e4] sm:$0xf] }
 0x18a   : > { %4184 = vmatpush.bf16.msrb.mxu1 %v6908_v40  ;;  %v6461_v40 = vld [vmem:[%s8563_s23 + $0x1f0] sm:$0xf0]  ;;  %v2619_v21 = vpop.f32.mrf.mxu3  ;;  %v7401_v22 = vld [vmem:[%s8563_s23 + $0x84] sm:$0xf] }
 0x18b   : > { %4198 = vmatpush.bf16.msrb.mxu2 %v7036_v10  ;;  %v7477_v10 = vld [vmem:[%s8563_s23 + $0x2e4] sm:$0xf]  ;;  %v6464_v29 = vor.u32 %v7445_v6, %v6461_v40 }
 0x18c   : > { %4212 = vmatpush.bf16.msrb.mxu3 %v7164_v18  ;;  %v6717_v18 = vld [vmem:[%s8563_s23 + $0x3f0] sm:$0xf0]  ;;  %v6592_v5 = vor.u32 %v7477_v10, %v6589_v45  ;;  %v7437_v6 = vld [vmem:[%s8563_s23 + $0x1a4] sm:$0xf] }
 0x18d   : > { %4171 = vmatpush.bf16.msrb.mxu0 %v6764_v24  ;;  %v7116_v24 = vor.u32 %v7611_v60, %v7115_v58  ;;  %v6720_v38 = vor.u32 %v7509_v13, %v6717_v18  ;;  %v6448_v60 = vor.u32 %v7441_v36, %v6445_v41  ;;  %v6429_v10 = vld [vmem:[%s8563_s23 + $0x1b0] sm:$0xf0]  ;;  %v7469_v45 = vld [vmem:[%s8563_s23 + $0x2a4] sm:$0xf] }
 0x18e   : > { %4185 = vmatpush.bf16.msrb.mxu1 %v6892_v27  ;;  %v7380_v27 = vld [vmem:[#allocation3 + $0x1c] sm:$0xf]  ;;  %v6557_v13 = vld [vmem:[%s8563_s23 + $0x2b0] sm:$0xf0] }
 0x18f   : > { %4199 = vmatpush.bf16.msrb.mxu2 %v7020_v28  ;;  %v6213_v28 = vld [vmem:[#allocation3 + $0x38] sm:$0xf0]  ;;  %v6685_v18 = vld [vmem:[%s8563_s23 + $0x3b0] sm:$0xf0] }
 0x190   : > { %4213 = vmatpush.bf16.msrb.mxu3 %v7148_v32  ;;  %v7409_v32 = vld [vmem:[%s8563_s23 + $0xc4] sm:$0xf] }
 0x191   : > { %4172 = vmatpush.bf16.msrb.mxu0 %v6748_v43  ;;  %v6573_v43 = vld [vmem:[%s8563_s23 + $0x2d0] sm:$0xf0]  ;;  %v6320_v58 = vor.u32 %v7409_v32, %v6317_v33  ;;  %v7497_v32 = vld [vmem:[%s8563_s23 + $0x384] sm:$0xf] }
 0x192   : > { %4186 = vmatpush.bf16.msrb.mxu1 %v6876_v56  ;;  %v6701_v56 = vld [vmem:[%s8563_s23 + $0x3d0] sm:$0xf0]  ;;  %v6576_v61 = vor.u32 %v7473_v42, %v6573_v43  ;;  %v7397_v43 = vld [vmem:[%s8563_s23 + $0x64] sm:$0xf] }
 0x193   : > { %4200 = vmatpush.bf16.msrb.mxu2 %v7004_v57  ;;  %v9346_v57 = vor.u32 %v7380_v27, %v6213_v28  ;;  %v6704_v40 = vor.u32 %v7505_v53, %v6701_v56  ;;  %v6413_v27 = vld [vmem:[%s8563_s23 + $0x190] sm:$0xf0]  ;;  %v7465_v28 = vld [vmem:[%s8563_s23 + $0x284] sm:$0xf] }
 0x194   : > { %4214 = vmatpush.bf16.msrb.mxu3 %v7132_v3  ;;  %v7405_v3 = vld [vmem:[%s8563_s23 + $0xa4] sm:$0xf]  ;;  %v6669_v33 = vld [vmem:[%s8563_s23 + $0x390] sm:$0xf0] }
 0x195   : > { %4173 = vmatpush.bf16.msrb.mxu0 %v6732_v48  ;;  %v7501_v48 = vld [vmem:[%s8563_s23 + $0x3a4] sm:$0xf]  ;;  %v6304_v16 = vor.u32 %v7405_v3, %v6301_v4  ;;  %v6525_v3 = vld [vmem:[%s8563_s23 + $0x270] sm:$0xf0] }
 0x196   : > { %4187 = vmatpush.bf16.msrb.mxu1 %v6860_v19  ;;  %v6432_v19 = vor.u32 %v7437_v6, %v6429_v10  ;;  %v6688_v26 = vor.u32 %v7501_v48, %v6685_v18  ;;  %v2645_v41 = vpop.f32.mrf.mxu1  ;;  %v7429_v53 = vld [vmem:[%s8563_s23 + $0x164] sm:$0xf]  ;;  %v6653_v6 = vld [vmem:[%s8563_s23 + $0x370] sm:$0xf0] }
 0x197   : > { %4201 = vmatpush.bf16.msrb.mxu2 %v6988_v20  ;;  %v6560_v20 = vor.u32 %v7469_v45, %v6557_v13  ;;  %v7493_v4 = vld [vmem:[%s8563_s23 + $0x364] sm:$0xf]  ;;  %v6253_v48 = vld [vmem:[%s8563_s23 + $0x50] sm:$0xf0] }
 0x198   : > { %4215 = vmatpush.bf16.msrb.mxu3 %v7116_v24  ;;  %4174 = vmatmul.bf16.vlgmr.msrb.gmra.mxu0 %v9335_v39  ;;  %v7433_v24 = vld [vmem:[%s8563_s23 + $0x184] sm:$0xf] }
 0x199   : > { %4222 = vmatpush.bf16.msra.mxu0 %v6336_v25  ;;  %4188 = vmatmul.bf16.vlgmr.msrb.gmra.mxu1 %v9342_v52  ;;  %v2592_v25 = vadd.f32 %v2591_v46, %v2577_v31  ;;  %v6416_v31 = vor.u32 %v7433_v24, %v6413_v27  ;;  %v6269_v46 = vld [vmem:[%s8563_s23 + $0x70] sm:$0xf0]  ;;  %v7393_v13 = vld [vmem:[%s8563_s23 + $0x44] sm:$0xf] }
 0x19a   : > { %4236 = vmatpush.bf16.msra.mxu1 %v6464_v29  ;;  %4202 = vmatmul.bf16.vlgmr.msrb.gmra.mxu2 %v9340_v47  ;;  %v6541_v29 = vld [vmem:[%s8563_s23 + $0x290] sm:$0xf0]  ;;  %v7425_v18 = vld [vmem:[%s8563_s23 + $0x144] sm:$0xf] }
 0x19b   : > { %4250 = vmatpush.bf16.msra.mxu2 %v6592_v5  ;;  %4216 = vmatmul.bf16.vlgmr.msrb.gmra.mxu3 %v9346_v57  ;;  %v2631_v5 = vpop.f32.mrf.mxu0  ;;  %v6544_v42 = vor.u32 %v7465_v28, %v6541_v29  ;;  %v2606_v56 = vadd.f32 %v2605_v17, %v2592_v25  ;;  %v6656_v17 = vor.u32 %v7493_v4, %v6653_v6  ;;  %v7489_v27 = vld [vmem:[%s8563_s23 + $0x344] sm:$0xf]  ;;  %v6637_v28 = vld [vmem:[%s8563_s23 + $0x350] sm:$0xf0] }
 0x19c   : > { %4264 = vmatpush.bf16.msra.mxu3 %v6720_v38  ;;  %v2632_v36 = vadd.f32 %v2631_v5, %v9310_v63  ;;  %v6288_v38 = vor.u32 %v7401_v22, %v6285_v23  ;;  %v6397_v63 = vld [vmem:[%s8563_s23 + $0x170] sm:$0xf0]  ;;  %v7457_v22 = vld [vmem:[%s8563_s23 + $0x244] sm:$0xf] }
 0x19d   : > { %4223 = vmatpush.bf16.msra.mxu0 %v6320_v58  ;;  %v6672_v58 = vor.u32 %v7497_v32, %v6669_v33  ;;  %v6400_v10 = vor.u32 %v7429_v53, %v6397_v63  ;;  %v6509_v23 = vld [vmem:[%s8563_s23 + $0x250] sm:$0xf0]  ;;  %v7453_v53 = vld [vmem:[%s8563_s23 + $0x224] sm:$0xf] }
 0x19e   : > { %4237 = vmatpush.bf16.msra.mxu1 %v6448_v60  ;;  %v2646_v60 = vadd.f32 %v2645_v41, %v2632_v36  ;;  %v2647_v5 = vpop.f32.mrf.mxu1  ;;  %v6512_v36 = vor.u32 %v7457_v22, %v6509_v23  ;;  %v6237_v41 = vld [vmem:[%s8563_s23 + $0x30] sm:$0xf0]  ;;  %v7541_v22 = vld [vmem:[%s8563_s23 + $0x4e4] sm:$0xf] }
 0x19f   : > { %4251 = vmatpush.bf16.msra.mxu2 %v6576_v61  ;;  %v7461_v61 = vld [vmem:[%s8563_s23 + $0x264] sm:$0xf]  ;;  %v6845_v23 = vld [vmem:[%s8563_s23 + $0x4f0] sm:$0xf0] }
 0x1a0   : > { %4265 = vmatpush.bf16.msra.mxu3 %v6704_v40  ;;  %v6272_v40 = vor.u32 %v7397_v43, %v6269_v46  ;;  %v6528_v45 = vor.u32 %v7461_v61, %v6525_v3  ;;  %v6365_v46 = vld [vmem:[%s8563_s23 + $0x130] sm:$0xf0]  ;;  %v7385_v61 = vld [vmem:[%s8563_s23 + $0x4] sm:$0xf] }
 0x1a1   : > { %4224 = vmatpush.bf16.msra.mxu0 %v6304_v16  ;;  %v2620_v16 = vadd.f32 %v2619_v21, %v2606_v56  ;;  %v6256_v21 = vor.u32 %v7393_v13, %v6253_v48  ;;  %v6493_v56 = vld [vmem:[%s8563_s23 + $0x230] sm:$0xf0] }
 0x1a2   : > { %4238 = vmatpush.bf16.msra.mxu1 %v6432_v19  ;;  %v2659_v19 = vpop.f32.mrf.mxu2  ;;  %v6221_v3 = vld [vmem:[%s8563_s23 + $0x10] sm:$0xf0]  ;;  %v6496_v6 = vor.u32 %v7453_v53, %v6493_v56  ;;  %v7569_v53 = vld [vmem:[%s8563_s23 + $0x5c4] sm:$0xf] }
 0x1a3   : > { %4252 = vmatpush.bf16.msra.mxu2 %v6560_v20  ;;  %v6381_v20 = vld [vmem:[%s8563_s23 + $0x150] sm:$0xf0]  ;;  %v2660_v24 = vadd.f32 %v2659_v19, %v2646_v60  ;;  %v2633_v25 = vpop.f32.mrf.mxu0 }
 0x1a4   : > { %4266 = vmatpush.bf16.msra.mxu3 %v6688_v26  ;;  %v2673_v26 = vpop.f32.mrf.mxu3  ;;  %v2634_v29 = vadd.f32 %v2633_v25, %v2620_v16  ;;  %v6384_v33 = vor.u32 %v7425_v18, %v6381_v20  ;;  %v6621_v60 = vld [vmem:[%s8563_s23 + $0x330] sm:$0xf0]  ;;  %v7481_v16 = vld [vmem:[%s8563_s23 + $0x304] sm:$0xf]  ;;  %v6224_v25 = vor.u32 %v7385_v61, %v6221_v3 }
 0x1a5   : > { %4225 = vmatpush.bf16.msra.mxu0 %v6288_v38  ;;  %v9385_v32 = vadd.f32 %v2673_v26, %v2660_v24  ;;  %v7389_v38 = vld [vmem:[%s8563_s23 + $0x24] sm:$0xf]  ;;  %v6477_v18 = vld [vmem:[%s8563_s23 + $0x210] sm:$0xf0] }
 0x1a6   : > { %4239 = vmatpush.bf16.msra.mxu1 %v6416_v31  ;;  %v7421_v31 = vld [vmem:[%s8563_s23 + $0x124] sm:$0xf]  ;;  %v2648_v43 = vadd.f32 %v2647_v5, %v2634_v29  ;;  %v6240_v63 = vor.u32 %v7389_v38, %v6237_v41  ;;  %v6973_v26 = vld [vmem:[%s8563_s23 + $0x5f0] sm:$0xf0]  ;;  %v6848_v41 = vor.u32 %v7541_v22, %v6845_v23 }
 0x1a7   : > { %4253 = vmatpush.bf16.msra.mxu2 %v6544_v42  ;;  %v6640_v42 = vor.u32 %v7489_v27, %v6637_v28  ;;  %v6368_v4 = vor.u32 %v7421_v31, %v6365_v46  ;;  %v7573_v24 = vld [vmem:[%s8563_s23 + $0x5e4] sm:$0xf]  ;;  %v7101_v28 = vld [vmem:[%s8563_s23 + $0x6f0] sm:$0xf0] }
 0x1a8   : > { %4267 = vmatpush.bf16.msra.mxu3 %v6672_v58  ;;  %v7485_v58 = vld [vmem:[%s8563_s23 + $0x324] sm:$0xf]  ;;  %v6976_v31 = vor.u32 %v7573_v24, %v6973_v26  ;;  %v6829_v46 = vld [vmem:[%s8563_s23 + $0x4d0] sm:$0xf0] }
 0x1a9   : > { %4226 = vmatpush.bf16.msra.mxu0 %v6272_v40  ;;  %v7417_v40 = vld [vmem:[%s8563_s23 + $0x104] sm:$0xf]  ;;  %v6624_v13 = vor.u32 %v7485_v58, %v6621_v60  ;;  %v6957_v58 = vld [vmem:[%s8563_s23 + $0x5d0] sm:$0xf0] }
 0x1aa   : > { %4240 = vmatpush.bf16.msra.mxu1 %v6400_v10  ;;  %v6349_v10 = vld [vmem:[%s8563_s23 + $0x110] sm:$0xf0]  ;;  %v2661_v48 = vpop.f32.mrf.mxu2  ;;  %v7605_v27 = vld [vmem:[%s8563_s23 + $0x6e4] sm:$0xf] }
 0x1ab   : > { %4254 = vmatpush.bf16.msra.mxu2 %v6528_v45  ;;  %v7449_v45 = vld [vmem:[%s8563_s23 + $0x204] sm:$0xf]  ;;  %v2662_v19 = vadd.f32 %v2661_v48, %v2648_v43  ;;  %v7213_v3 = vld [vmem:[%s8563_s23 + $0x7d0] sm:$0xf0] }
 0x1ac   : > { %4268 = vmatpush.bf16.msra.mxu3 %v6656_v17  ;;  %v6605_v17 = vld [vmem:[%s8563_s23 + $0x310] sm:$0xf0]  ;;  %v2675_v20 = vpop.f32.mrf.mxu3  ;;  %v6480_v5 = vor.u32 %v7449_v45, %v6477_v18  ;;  %v7537_v43 = vld [vmem:[%s8563_s23 + $0x4c4] sm:$0xf] }
 0x1ad   : > { %4227 = vmatpush.bf16.msra.mxu0 %v6256_v21  ;;  %v9409_v29 = vadd.f32 %v2675_v20, %v2662_v19  ;;  %v6352_v21 = vor.u32 %v7417_v40, %v6349_v10  ;;  %v6608_v38 = vor.u32 %v7481_v16, %v6605_v17  ;;  %v7601_v60 = vld [vmem:[%s8563_s23 + $0x6c4] sm:$0xf]  ;;  %v6813_v45 = vld [vmem:[%s8563_s23 + $0x4b0] sm:$0xf0] }
 0x1ae   : > { %4241 = vmatpush.bf16.msra.mxu1 %v6384_v33  ;;  %v7637_v33 = vld [vmem:[%s8563_s23 + $0x7e4] sm:$0xf]  ;;  %v6941_v18 = vld [vmem:[%s8563_s23 + $0x5b0] sm:$0xf0] }
 0x1af   : > { %4255 = vmatpush.bf16.msra.mxu2 %v6512_v36  ;;  %v7229_v36 = vld [vmem:[%s8563_s23 + $0x7f0] sm:$0xf0]  ;;  %v7633_v61 = vld [vmem:[%s8563_s23 + $0x7c4] sm:$0xf] }
 0x1b0   : > { %4269 = vmatpush.bf16.msra.mxu3 %v6640_v42  ;;  %v7104_v42 = vor.u32 %v7605_v27, %v7101_v28  ;;  %v7232_v56 = vor.u32 %v7637_v33, %v7229_v36  ;;  %v7533_v10 = vld [vmem:[%s8563_s23 + $0x4a4] sm:$0xf]  ;;  %v7216_v48 = vor.u32 %v7633_v61, %v7213_v3  ;;  %v7069_v17 = vld [vmem:[%s8563_s23 + $0x6b0] sm:$0xf0] }
 0x1b1   : > { %4228 = vmatpush.bf16.msra.mxu0 %v6240_v63  ;;  %v7085_v63 = vld [vmem:[%s8563_s23 + $0x6d0] sm:$0xf0]  ;;  %v7597_v16 = vld [vmem:[%s8563_s23 + $0x6a4] sm:$0xf]  ;;  %v6816_v22 = vor.u32 %v7533_v10, %v6813_v45 }
 0x1b2   : > { %4242 = vmatpush.bf16.msra.mxu1 %v6368_v4  ;;  %v6832_v4 = vor.u32 %v7537_v43, %v6829_v46  ;;  %v7088_v40 = vor.u32 %v7601_v60, %v7085_v63  ;;  %v7629_v19 = vld [vmem:[%s8563_s23 + $0x7a4] sm:$0xf]  ;;  %v7197_v20 = vld [vmem:[%s8563_s23 + $0x7b0] sm:$0xf0]  ;;  %v7072_v24 = vor.u32 %v7597_v16, %v7069_v17 }
 0x1b3   : > { %4256 = vmatpush.bf16.msra.mxu2 %v6496_v6  ;;  %v6960_v6 = vor.u32 %v7569_v53, %v6957_v58  ;;  %v6797_v26 = vld [vmem:[%s8563_s23 + $0x490] sm:$0xf0]  ;;  %v7561_v27 = vld [vmem:[%s8563_s23 + $0x584] sm:$0xf]  ;;  %v7200_v28 = vor.u32 %v7629_v19, %v7197_v20 }
 0x1b4   : > { %4270 = vmatpush.bf16.msra.mxu3 %v6624_v13  ;;  %v7565_v13 = vld [vmem:[%s8563_s23 + $0x5a4] sm:$0xf]  ;;  %v7053_v33 = vld [vmem:[%s8563_s23 + $0x690] sm:$0xf0] }
 0x1b5   : > { %4229 = vmatpush.bf16.msra.mxu0 %v6224_v25  ;;  %v6944_v23 = vor.u32 %v7565_v13, %v6941_v18  ;;  %v7529_v25 = vld [vmem:[%s8563_s23 + $0x484] sm:$0xf]  ;;  %v6909_v61 = vld [vmem:[%s8563_s23 + $0x570] sm:$0xf0] }
 0x1b6   : > { %4243 = vmatpush.bf16.msra.mxu1 %v6352_v21  ;;  %v6925_v21 = vld [vmem:[%s8563_s23 + $0x590] sm:$0xf0]  ;;  %v7625_v36 = vld [vmem:[%s8563_s23 + $0x784] sm:$0xf] }
 0x1b7   : > { %4257 = vmatpush.bf16.msra.mxu2 %v6480_v5  ;;  %v7593_v5 = vld [vmem:[%s8563_s23 + $0x684] sm:$0xf]  ;;  %v6928_v43 = vor.u32 %v7561_v27, %v6925_v21  ;;  %v6765_v18 = vld [vmem:[%s8563_s23 + $0x450] sm:$0xf0] }
 0x1b8   : > { %4271 = vmatpush.bf16.msra.mxu3 %v6608_v38  ;;  %4230 = vmatmul.bf16.vlgmr.msra.gmra.mxu0 %v9249_v62  ;;  %v7181_v38 = vld [vmem:[%s8563_s23 + $0x790] sm:$0xf0]  ;;  %v7056_v46 = vor.u32 %v7593_v5, %v7053_v33  ;;  %v7525_v53 = vld [vmem:[%s8563_s23 + $0x464] sm:$0xf] }
 0x1b9   : > { %4278 = vmatpush.bf16.msrb.mxu0 %v6848_v41  ;;  %4244 = vmatmul.bf16.vlgmr.msra.gmra.mxu1 %v9256_v59  ;;  %v2687_v41 = vpop.f32.mrf.mxu0  ;;  %v7557_v58 = vld [vmem:[%s8563_s23 + $0x564] sm:$0xf]  ;;  %v7184_v63 = vor.u32 %v7625_v36, %v7181_v38  ;;  %v6893_v17 = vld [vmem:[%s8563_s23 + $0x550] sm:$0xf0] }
 0x1ba   : > { %4292 = vmatpush.bf16.msrb.mxu1 %v6976_v31  ;;  %4258 = vmatmul.bf16.vlgmr.msra.gmra.mxu2 %v9254_v7  ;;  %v6800_v31 = vor.u32 %v7529_v25, %v6797_v26  ;;  %v7589_v3 = vld [vmem:[%s8563_s23 + $0x664] sm:$0xf]  ;;  %v6912_v13 = vor.u32 %v7557_v58, %v6909_v61  ;;  %v7149_v25 = vld [vmem:[%s8563_s23 + $0x750] sm:$0xf0] }
 0x1bb   : > { %4306 = vmatpush.bf16.msrb.mxu2 %v7104_v42  ;;  %4272 = vmatmul.bf16.vlgmr.msra.gmra.mxu3 %v9264_v11  ;;  %v2701_v42 = vpop.f32.mrf.mxu1  ;;  %v7521_v45 = vld [vmem:[%s8563_s23 + $0x444] sm:$0xf]  ;;  %v7005_v58 = vld [vmem:[%s8563_s23 + $0x630] sm:$0xf0] }
 0x1bc   : > { %4320 = vmatpush.bf16.msrb.mxu3 %v7232_v56  ;;  %v6781_v56 = vld [vmem:[%s8563_s23 + $0x470] sm:$0xf0]  ;;  %v2702_v60 = vadd.f32 %v2701_v42, %v2687_v41  ;;  %v7553_v16 = vld [vmem:[%s8563_s23 + $0x544] sm:$0xf] }
 0x1bd   : > { %4279 = vmatpush.bf16.msrb.mxu0 %v6832_v4  ;;  %v7037_v4 = vld [vmem:[%s8563_s23 + $0x670] sm:$0xf0]  ;;  %v6784_v10 = vor.u32 %v7525_v53, %v6781_v56  ;;  %v7585_v20 = vld [vmem:[%s8563_s23 + $0x644] sm:$0xf]  ;;  %v6896_v21 = vor.u32 %v7553_v16, %v6893_v17 }
 0x1be   : > { %4293 = vmatpush.bf16.msrb.mxu1 %v6960_v6  ;;  %v7621_v6 = vld [vmem:[%s8563_s23 + $0x764] sm:$0xf]  ;;  %v2729_v27 = vpop.f32.mrf.mxu3  ;;  %v6749_v41 = vld [vmem:[%s8563_s23 + $0x430] sm:$0xf0] }
 0x1bf   : > { %4307 = vmatpush.bf16.msrb.mxu2 %v7088_v40  ;;  %v7165_v40 = vld [vmem:[%s8563_s23 + $0x770] sm:$0xf0]  ;;  %v7517_v38 = vld [vmem:[%s8563_s23 + $0x424] sm:$0xf] }
 0x1c0   : > { %4321 = vmatpush.bf16.msrb.mxu3 %v7216_v48  ;;  %v7040_v48 = vor.u32 %v7589_v3, %v7037_v4  ;;  %v7168_v19 = vor.u32 %v7621_v6, %v7165_v40  ;;  %v6877_v53 = vld [vmem:[%s8563_s23 + $0x530] sm:$0xf0]  ;;  %v7581_v56 = vld [vmem:[%s8563_s23 + $0x624] sm:$0xf]  ;;  %v6752_v61 = vor.u32 %v7517_v38, %v6749_v41  ;;  %v7512_v38 = vld [vmem:[%s8563_s23 + $0x3f4] sm:$0xf0] }
 0x1c1   : > { %4280 = vmatpush.bf16.msrb.mxu0 %v6816_v22  ;;  %v7021_v22 = vld [vmem:[%s8563_s23 + $0x650] sm:$0xf0]  ;;  %v2689_v5 = vpop.f32.mrf.mxu0  ;;  %v7513_v3 = vld [vmem:[%s8563_s23 + $0x404] sm:$0xf]  ;;  %v7008_v40 = vor.u32 %v7581_v56, %v7005_v58  ;;  %v6323_v56 = vld [vmem:[%s8563_s23 + $0xc8] sm:$0xf] }
 0x1c2   : > { %4294 = vmatpush.bf16.msrb.mxu1 %v6944_v23  ;;  %v2715_v23 = vpop.f32.mrf.mxu2  ;;  %v7024_v36 = vor.u32 %v7585_v20, %v7021_v22  ;;  %v6733_v4 = vld [vmem:[%s8563_s23 + $0x410] sm:$0xf0]  ;;  %v7609_v16 = vld [vmem:[%s8563_s23 + $0x704] sm:$0xf]  ;;  %v6339_v20 = vld [vmem:[%s8563_s23 + $0xe8] sm:$0xf] }
 0x1c3   : > { %4308 = vmatpush.bf16.msrb.mxu2 %v7072_v24  ;;  %v7617_v24 = vld [vmem:[%s8563_s23 + $0x744] sm:$0xf]  ;;  %v2716_v26 = vadd.f32 %v2715_v23, %v2702_v60  ;;  %v2703_v33 = vpop.f32.mrf.mxu1  ;;  %v7117_v17 = vld [vmem:[%s8563_s23 + $0x710] sm:$0xf0]  ;;  %v7416_v22 = vld [vmem:[%s8563_s23 + $0xf4] sm:$0xf0] }
 0x1c4   : > { %4322 = vmatpush.bf16.msrb.mxu3 %v7200_v28  ;;  %v6768_v28 = vor.u32 %v7521_v45, %v6765_v18  ;;  %v7613_v60 = vld [vmem:[%s8563_s23 + $0x724] sm:$0xf]  ;;  %v6861_v45 = vld [vmem:[%s8563_s23 + $0x510] sm:$0xf0]  ;;  %v6467_v23 = vld [vmem:[%s8563_s23 + $0x1e8] sm:$0xf] }
 0x1c5   : > { %4281 = vmatpush.bf16.msrb.mxu0 %v6800_v31  ;;  %v7549_v31 = vld [vmem:[%s8563_s23 + $0x524] sm:$0xf]  ;;  %v9460_v42 = vadd.f32 %v2729_v27, %v2716_v26  ;;  %v6989_v18 = vld [vmem:[%s8563_s23 + $0x610] sm:$0xf0]  ;;  %v7448_v26 = vld [vmem:[%s8563_s23 + $0x1f4] sm:$0xf0] }
 0x1c6   : > { %4295 = vmatpush.bf16.msrb.mxu1 %v6928_v43  ;;  %v2704_v43 = vadd.f32 %v2703_v33, %v2689_v5  ;;  %v6880_v6 = vor.u32 %v7549_v31, %v6877_v53  ;;  %v6595_v27 = vld [vmem:[%s8563_s23 + $0x2e8] sm:$0xf]  ;;  %v7120_v31 = vor.u32 %v7609_v16, %v7117_v17  ;;  %v7412_v58 = vld [vmem:[%s8563_s23 + $0xd4] sm:$0xf0] }
 0x1c7   : > { %4309 = vmatpush.bf16.msrb.mxu2 %v7056_v46  ;;  %v7152_v46 = vor.u32 %v7617_v24, %v7149_v25  ;;  %v6736_v25 = vor.u32 %v7513_v3, %v6733_v4  ;;  %v6579_v3 = vld [vmem:[%s8563_s23 + $0x2c8] sm:$0xf]  ;;  %v7476_v4 = vld [vmem:[%s8563_s23 + $0x2d4] sm:$0xf0] }
 0x1c8   : > { %4323 = vmatpush.bf16.msrb.mxu3 %v7184_v63  ;;  %v7133_v63 = vld [vmem:[%s8563_s23 + $0x730] sm:$0xf0]  ;;  %v6435_v16 = vld [vmem:[%s8563_s23 + $0x1a8] sm:$0xf] }
 0x1c9   : > { %4282 = vmatpush.bf16.msrb.mxu0 %v6784_v10  ;;  %v7545_v10 = vld [vmem:[%s8563_s23 + $0x504] sm:$0xf] }
 0x1ca   : > { %4296 = vmatpush.bf16.msrb.mxu1 %v6912_v13  ;;  %v7577_v13 = vld [vmem:[%s8563_s23 + $0x604] sm:$0xf]  ;;  %v6864_v5 = vor.u32 %v7545_v10, %v6861_v45  ;;  %v6324_v10 = vor.u32 %v7412_v58, %v6323_v56 }
 0x1cb   : > { %4310 = vmatpush.bf16.msrb.mxu2 %v7040_v48  ;;  %v7136_v48 = vor.u32 %v7613_v60, %v7133_v63  ;;  %v6992_v33 = vor.u32 %v7577_v13, %v6989_v18  ;;  %v6451_v60 = vld [vmem:[%s8563_s23 + $0x1c8] sm:$0xf]  ;;  %v6580_v13 = vor.u32 %v7476_v4, %v6579_v3  ;;  %v7408_v18 = vld [vmem:[%s8563_s23 + $0xb4] sm:$0xf0] }
 0x1cc   : > { %4324 = vmatpush.bf16.msrb.mxu3 %v7168_v19  ;;  %v2717_v19 = vpop.f32.mrf.mxu2  ;;  %v6275_v3 = vld [vmem:[%s8563_s23 + $0x68] sm:$0xf]  ;;  %v7400_v4 = vld [vmem:[%s8563_s23 + $0x74] sm:$0xf0] }
 0x1cd   : > { %4283 = vmatpush.bf16.msrb.mxu0 %v6768_v28  ;;  %v2718_v24 = vadd.f32 %v2717_v19, %v2704_v43  ;;  %v7480_v28 = vld [vmem:[%s8563_s23 + $0x2f4] sm:$0xf0]  ;;  %v6340_v43 = vor.u32 %v7416_v22, %v6339_v20  ;;  %v6563_v20 = vld [vmem:[%s8563_s23 + $0x2a8] sm:$0xf] }
 0x1ce   : > { %4297 = vmatpush.bf16.msrb.mxu1 %v6896_v21  ;;  %v2731_v21 = vpop.f32.mrf.mxu3  ;;  %v6596_v53 = vor.u32 %v7480_v28, %v6595_v27  ;;  %v7440_v19 = vld [vmem:[%s8563_s23 + $0x1b4] sm:$0xf0]  ;;  %v6291_v28 = vld [vmem:[%s8563_s23 + $0x88] sm:$0xf] }
 0x1cf   : > { %4311 = vmatpush.bf16.msrb.mxu2 %v7024_v36  ;;  %v6723_v36 = vld [vmem:[%s8563_s23 + $0x3e8] sm:$0xf]  ;;  %v9483_v41 = vadd.f32 %v2731_v21, %v2718_v24  ;;  %v7472_v22 = vld [vmem:[%s8563_s23 + $0x2b4] sm:$0xf0] }
 0x1d0   : > { %4325 = vmatpush.bf16.msrb.mxu3 %v7152_v46  ;;  %v6468_v46 = vor.u32 %v7448_v26, %v6467_v23  ;;  %v6724_v63 = vor.u32 %v7512_v38, %v6723_v36  ;;  %v6691_v23 = vld [vmem:[%s8563_s23 + $0x3a8] sm:$0xf]  ;;  %v7504_v24 = vld [vmem:[%s8563_s23 + $0x3b4] sm:$0xf0]  ;;  %v6436_v26 = vor.u32 %v7440_v19, %v6435_v16  ;;  %v6564_v27 = vor.u32 %v7472_v22, %v6563_v20 }
 0x1d1   : > { %4284 = vmatpush.bf16.msrb.mxu0 %v6752_v61  ;;  %v7444_v61 = vld [vmem:[%s8563_s23 + $0x1d4] sm:$0xf0]  ;;  %v6547_v38 = vld [vmem:[%s8563_s23 + $0x288] sm:$0xf]  ;;  %v6276_v16 = vor.u32 %v7400_v4, %v6275_v3 }
 0x1d2   : > { %4298 = vmatpush.bf16.msrb.mxu1 %v6880_v6  ;;  %v6707_v6 = vld [vmem:[%s8563_s23 + $0x3c8] sm:$0xf]  ;;  %v6452_v45 = vor.u32 %v7444_v61, %v6451_v60  ;;  %v7404_v21 = vld [vmem:[%s8563_s23 + $0x94] sm:$0xf0] }
 0x1d3   : > { %4312 = vmatpush.bf16.msrb.mxu2 %v7008_v40  ;;  %v7508_v40 = vld [vmem:[%s8563_s23 + $0x3d4] sm:$0xf0]  ;;  %v6292_v58 = vor.u32 %v7404_v21, %v6291_v28  ;;  %v6259_v20 = vld [vmem:[%s8563_s23 + $0x48] sm:$0xf] }
 0x1d4   : > { %4326 = vmatpush.bf16.msrb.mxu3 %v7136_v48  ;;  %v6307_v48 = vld [vmem:[%s8563_s23 + $0xa8] sm:$0xf]  ;;  %v6708_v17 = vor.u32 %v7508_v40, %v6707_v6  ;;  %v7436_v36 = vld [vmem:[%s8563_s23 + $0x194] sm:$0xf0] }
 0x1d5   : > { %4285 = vmatpush.bf16.msrb.mxu0 %v6736_v25  ;;  %v6308_v25 = vor.u32 %v7408_v18, %v6307_v48  ;;  %v6403_v6 = vld [vmem:[%s8563_s23 + $0x168] sm:$0xf]  ;;  %v7496_v18 = vld [vmem:[%s8563_s23 + $0x374] sm:$0xf0] }
 0x1d6   : > { %4299 = vmatpush.bf16.msrb.mxu1 %v6864_v5  ;;  %v6419_v5 = vld [vmem:[%s8563_s23 + $0x188] sm:$0xf]  ;;  %v2757_v60 = vpop.f32.mrf.mxu1  ;;  %v7396_v22 = vld [vmem:[%s8563_s23 + $0x54] sm:$0xf0] }
 0x1d7   : > { %4313 = vmatpush.bf16.msrb.mxu2 %v6992_v33  ;;  %v6692_v33 = vor.u32 %v7504_v24, %v6691_v23  ;;  %v6659_v48 = vld [vmem:[%s8563_s23 + $0x368] sm:$0xf]  ;;  %v7460_v28 = vld [vmem:[%s8563_s23 + $0x254] sm:$0xf0] }
 0x1d8   : > { %4327 = vmatpush.bf16.msrb.mxu3 %v7120_v31  ;;  %4286 = vmatmul.bf16.vlgmr.msrb.gmra.mxu0 %v9335_v39  ;;  %v7468_v31 = vld [vmem:[%s8563_s23 + $0x294] sm:$0xf0]  ;;  %v6387_v23 = vld [vmem:[%s8563_s23 + $0x148] sm:$0xf]  ;;  %v6660_v24 = vor.u32 %v7496_v18, %v6659_v48 }
 0x1d9   : > { %4334 = vmatpush.bf16.msra.mxu0 %v6340_v43  ;;  %4300 = vmatmul.bf16.vlgmr.msrb.gmra.mxu1 %v9342_v52  ;;  %v2743_v43 = vpop.f32.mrf.mxu0  ;;  %v6548_v61 = vor.u32 %v7468_v31, %v6547_v38  ;;  %v7492_v38 = vld [vmem:[%s8563_s23 + $0x354] sm:$0xf0] }
 0x1da   : > { %4348 = vmatpush.bf16.msra.mxu1 %v6468_v46  ;;  %4314 = vmatmul.bf16.vlgmr.msrb.gmra.mxu2 %v9340_v47  ;;  %v6675_v46 = vld [vmem:[%s8563_s23 + $0x388] sm:$0xf]  ;;  %v2744_v56 = vadd.f32 %v2743_v43, %v9460_v42  ;;  %v7464_v42 = vld [vmem:[%s8563_s23 + $0x274] sm:$0xf0]  ;;  %v6260_v43 = vor.u32 %v7396_v22, %v6259_v20 }
 0x1db   : > { %4362 = vmatpush.bf16.msra.mxu2 %v6596_v53  ;;  %4328 = vmatmul.bf16.vlgmr.msrb.gmra.mxu3 %v9346_v57  ;;  %v7500_v53 = vld [vmem:[%s8563_s23 + $0x394] sm:$0xf0]  ;;  %v6483_v20 = vld [vmem:[%s8563_s23 + $0x208] sm:$0xf] }
 0x1dc   : > { %4376 = vmatpush.bf16.msra.mxu3 %v6724_v63  ;;  %v6420_v63 = vor.u32 %v7436_v36, %v6419_v5  ;;  %v6676_v40 = vor.u32 %v7500_v53, %v6675_v46  ;;  %v6643_v36 = vld [vmem:[%s8563_s23 + $0x348] sm:$0xf]  ;;  %v7424_v4 = vld [vmem:[%s8563_s23 + $0x134] sm:$0xf0] }
 0x1dd   : > { %4335 = vmatpush.bf16.msra.mxu0 %v6324_v10  ;;  %v2758_v10 = vadd.f32 %v2757_v60, %v2744_v56  ;;  %v6243_v60 = vld [vmem:[%s8563_s23 + $0x28] sm:$0xf]  ;;  %v6644_v3 = vor.u32 %v7492_v38, %v6643_v36  ;;  %v7388_v48 = vld [vmem:[%s8563_s23 + $0x14] sm:$0xf0] }
 0x1de   : > { %4349 = vmatpush.bf16.msra.mxu1 %v6452_v45  ;;  %v7432_v45 = vld [vmem:[%s8563_s23 + $0x174] sm:$0xf0]  ;;  %v2759_v46 = vpop.f32.mrf.mxu1 }
 0x1df   : > { %4363 = vmatpush.bf16.msra.mxu2 %v6580_v13  ;;  %v6531_v13 = vld [vmem:[%s8563_s23 + $0x268] sm:$0xf]  ;;  %v7576_v38 = vld [vmem:[%s8563_s23 + $0x5f4] sm:$0xf0] }
 0x1e0   : > { %4377 = vmatpush.bf16.msra.mxu3 %v6708_v17  ;;  %v6404_v17 = vor.u32 %v7432_v45, %v6403_v6  ;;  %v6532_v19 = vor.u32 %v7464_v42, %v6531_v13  ;;  %v6499_v6 = vld [vmem:[%s8563_s23 + $0x228] sm:$0xf]  ;;  %v7488_v45 = vld [vmem:[%s8563_s23 + $0x334] sm:$0xf0] }
 0x1e1   : > { %4336 = vmatpush.bf16.msra.mxu0 %v6308_v25  ;;  %v2771_v25 = vpop.f32.mrf.mxu2  ;;  %v2745_v5 = vpop.f32.mrf.mxu0  ;;  %v6227_v42 = vld [vmem:[%s8563_s23 + $0x8] sm:$0xf] }
 0x1e2   : > { %4350 = vmatpush.bf16.msra.mxu1 %v6436_v26  ;;  %v7428_v26 = vld [vmem:[%s8563_s23 + $0x154] sm:$0xf0]  ;;  %v2772_v21 = vadd.f32 %v2771_v25, %v2758_v10  ;;  %v2746_v31 = vadd.f32 %v2745_v5, %v9483_v41  ;;  %v6627_v10 = vld [vmem:[%s8563_s23 + $0x328] sm:$0xf]  ;;  %v6228_v36 = vor.u32 %v7388_v48, %v6227_v42 }
 0x1e3   : > { %4364 = vmatpush.bf16.msra.mxu2 %v6564_v27  ;;  %v6515_v27 = vld [vmem:[%s8563_s23 + $0x248] sm:$0xf]  ;;  %v6388_v56 = vor.u32 %v7428_v26, %v6387_v23  ;;  %v6628_v22 = vor.u32 %v7488_v45, %v6627_v10  ;;  %v7484_v26 = vld [vmem:[%s8563_s23 + $0x314] sm:$0xf0] }
 0x1e4   : > { %4378 = vmatpush.bf16.msra.mxu3 %v6692_v33  ;;  %v2785_v33 = vpop.f32.mrf.mxu3  ;;  %v2760_v41 = vadd.f32 %v2759_v46, %v2746_v31  ;;  %v6611_v25 = vld [vmem:[%s8563_s23 + $0x308] sm:$0xf]  ;;  %v7544_v5 = vld [vmem:[%s8563_s23 + $0x4f4] sm:$0xf0] }
 0x1e5   : > { %4337 = vmatpush.bf16.msra.mxu0 %v6292_v58  ;;  %v9531_v53 = vadd.f32 %v2785_v33, %v2772_v21  ;;  %v6516_v58 = vor.u32 %v7460_v28, %v6515_v27  ;;  %v6851_v21 = vld [vmem:[%s8563_s23 + $0x4e8] sm:$0xf]  ;;  %v7604_v48 = vld [vmem:[%s8563_s23 + $0x6d4] sm:$0xf0] }
 0x1e6   : > { %4351 = vmatpush.bf16.msra.mxu1 %v6420_v63  ;;  %v7392_v63 = vld [vmem:[%s8563_s23 + $0x34] sm:$0xf0]  ;;  %v6979_v33 = vld [vmem:[%s8563_s23 + $0x5e8] sm:$0xf] }
 0x1e7   : > { %4365 = vmatpush.bf16.msra.mxu2 %v6548_v61  ;;  %v6371_v61 = vld [vmem:[%s8563_s23 + $0x128] sm:$0xf]  ;;  %v6244_v13 = vor.u32 %v7392_v63, %v6243_v60  ;;  %v7640_v63 = vld [vmem:[%s8563_s23 + $0x7f4] sm:$0xf0] }
 0x1e8   : > { %4379 = vmatpush.bf16.msra.mxu3 %v6676_v40  ;;  %v7456_v40 = vld [vmem:[%s8563_s23 + $0x234] sm:$0xf0]  ;;  %v6372_v18 = vor.u32 %v7424_v4, %v6371_v61  ;;  %v7107_v31 = vld [vmem:[%s8563_s23 + $0x6e8] sm:$0xf]  ;;  %v6612_v61 = vor.u32 %v7484_v26, %v6611_v25 }
 0x1e9   : > { %4338 = vmatpush.bf16.msra.mxu0 %v6276_v16  ;;  %v6500_v16 = vor.u32 %v7456_v40, %v6499_v6  ;;  %v2773_v23 = vpop.f32.mrf.mxu2  ;;  %v7235_v60 = vld [vmem:[%s8563_s23 + $0x7e8] sm:$0xf]  ;;  %v7540_v40 = vld [vmem:[%s8563_s23 + $0x4d4] sm:$0xf0] }
 0x1ea   : > { %4352 = vmatpush.bf16.msra.mxu1 %v6404_v17  ;;  %v6355_v17 = vld [vmem:[%s8563_s23 + $0x108] sm:$0xf]  ;;  %v2774_v27 = vadd.f32 %v2773_v23, %v2760_v41  ;;  %v6980_v41 = vor.u32 %v7576_v38, %v6979_v33  ;;  %v7236_v45 = vor.u32 %v7640_v63, %v7235_v60  ;;  %v7536_v23 = vld [vmem:[%s8563_s23 + $0x4b4] sm:$0xf0] }
 0x1eb   : > { %4366 = vmatpush.bf16.msra.mxu2 %v6532_v19  ;;  %v7420_v19 = vld [vmem:[%s8563_s23 + $0x114] sm:$0xf0]  ;;  %v6835_v6 = vld [vmem:[%s8563_s23 + $0x4c8] sm:$0xf] }
 0x1ec   : > { %4380 = vmatpush.bf16.msra.mxu3 %v6660_v24  ;;  %v7452_v24 = vld [vmem:[%s8563_s23 + $0x214] sm:$0xf0]  ;;  %v2787_v28 = vpop.f32.mrf.mxu3  ;;  %v6963_v10 = vld [vmem:[%s8563_s23 + $0x5c8] sm:$0xf] }
 0x1ed   : > { %4339 = vmatpush.bf16.msra.mxu0 %v6260_v43  ;;  %v7608_v43 = vld [vmem:[%s8563_s23 + $0x6f4] sm:$0xf0]  ;;  %v9555_v46 = vadd.f32 %v2787_v28, %v2774_v27  ;;  %v7091_v42 = vld [vmem:[%s8563_s23 + $0x6c8] sm:$0xf] }
 0x1ee   : > { %4353 = vmatpush.bf16.msra.mxu1 %v6388_v56  ;;  %v6356_v56 = vor.u32 %v7420_v19, %v6355_v17  ;;  %v7108_v4 = vor.u32 %v7608_v43, %v7107_v31  ;;  %v6836_v17 = vor.u32 %v7540_v40, %v6835_v6  ;;  %v7568_v26 = vld [vmem:[%s8563_s23 + $0x5b4] sm:$0xf0]  ;;  %v7075_v27 = vld [vmem:[%s8563_s23 + $0x6a8] sm:$0xf] }
 0x1ef   : > { %4367 = vmatpush.bf16.msra.mxu2 %v6516_v58  ;;  %9922 = vst [vmem:[#allocation24_spill] sm:$0xff] %v9555_v46  ;;  %v6484_v58 = vor.u32 %v7452_v24, %v6483_v20  ;;  %v7092_v20 = vor.u32 %v7604_v48, %v7091_v42  ;;  %v6947_v24 = vld [vmem:[%s8563_s23 + $0x5a8] sm:$0xf]  ;;  %v7600_v28 = vld [vmem:[%s8563_s23 + $0x6b4] sm:$0xf0] }
 0x1f0   : > { %4381 = vmatpush.bf16.msra.mxu3 %v6644_v3  ;;  %v6852_v3 = vor.u32 %v7544_v5, %v6851_v21  ;;  %v7203_v21 = vld [vmem:[%s8563_s23 + $0x7a8] sm:$0xf]  ;;  %v7632_v5 = vld [vmem:[%s8563_s23 + $0x7b4] sm:$0xf0]  ;;  %v7076_v38 = vor.u32 %v7600_v28, %v7075_v27  ;;  %v7093_v46 = vld [vmem:[%s8563_s23 + $0x6d8] sm:$0xf0] }
 0x1f1   : > { %4340 = vmatpush.bf16.msra.mxu0 %v6244_v13  ;;  %v7572_v13 = vld [vmem:[%s8563_s23 + $0x5d4] sm:$0xf0]  ;;  %v6803_v31 = vld [vmem:[%s8563_s23 + $0x488] sm:$0xf] }
 0x1f2   : > { %4354 = vmatpush.bf16.msra.mxu1 %v6372_v18  ;;  %v7219_v18 = vld [vmem:[%s8563_s23 + $0x7c8] sm:$0xf]  ;;  %v6964_v19 = vor.u32 %v7572_v13, %v6963_v10  ;;  %v7532_v43 = vld [vmem:[%s8563_s23 + $0x494] sm:$0xf0] }
 0x1f3   : > { %4368 = vmatpush.bf16.msra.mxu2 %v6500_v16  ;;  %v7636_v16 = vld [vmem:[%s8563_s23 + $0x7d4] sm:$0xf0]  ;;  %v7059_v63 = vld [vmem:[%s8563_s23 + $0x688] sm:$0xf] }
 0x1f4   : > { %4382 = vmatpush.bf16.msra.mxu3 %v6628_v22  ;;  %v6819_v22 = vld [vmem:[%s8563_s23 + $0x4a8] sm:$0xf]  ;;  %v7220_v25 = vor.u32 %v7636_v16, %v7219_v18  ;;  %v7564_v60 = vld [vmem:[%s8563_s23 + $0x594] sm:$0xf0] }
 0x1f5   : > { %4341 = vmatpush.bf16.msra.mxu0 %v6228_v36  ;;  %v6820_v33 = vor.u32 %v7536_v23, %v6819_v22  ;;  %v6948_v36 = vor.u32 %v7568_v26, %v6947_v24  ;;  %v6787_v10 = vld [vmem:[%s8563_s23 + $0x468] sm:$0xf]  ;;  %v7560_v48 = vld [vmem:[%s8563_s23 + $0x574] sm:$0xf0] }
 0x1f6   : > { %4355 = vmatpush.bf16.msra.mxu1 %v6356_v56  ;;  %v6931_v56 = vld [vmem:[%s8563_s23 + $0x588] sm:$0xf]  ;;  %v7592_v16 = vld [vmem:[%s8563_s23 + $0x674] sm:$0xf0] }
 0x1f7   : > { %4369 = vmatpush.bf16.msra.mxu2 %v6484_v58  ;;  %v7204_v58 = vor.u32 %v7632_v5, %v7203_v21  ;;  %v6932_v6 = vor.u32 %v7564_v60, %v6931_v56  ;;  %v6915_v13 = vld [vmem:[%s8563_s23 + $0x568] sm:$0xf]  ;;  %v7556_v28 = vld [vmem:[%s8563_s23 + $0x554] sm:$0xf0] }
 0x1f8   : > { %4383 = vmatpush.bf16.msra.mxu3 %v6612_v61  ;;  %4342 = vmatmul.bf16.vlgmr.msra.gmra.mxu0 %v9249_v62  ;;  %v7596_v61 = vld [vmem:[%s8563_s23 + $0x694] sm:$0xf0]  ;;  %v7043_v18 = vld [vmem:[%s8563_s23 + $0x668] sm:$0xf]  ;;  %v6916_v22 = vor.u32 %v7560_v48, %v6915_v13 }
 0x1f9   : > { %4390 = vmatpush.bf16.msrb.mxu0 %v6852_v3  ;;  %4356 = vmatmul.bf16.vlgmr.msra.gmra.mxu1 %v9256_v59  ;;  %v7187_v3 = vld [vmem:[%s8563_s23 + $0x788] sm:$0xf]  ;;  %v7060_v40 = vor.u32 %v7596_v61, %v7059_v63  ;;  %v7044_v23 = vor.u32 %v7592_v16, %v7043_v18  ;;  %v7588_v5 = vld [vmem:[%s8563_s23 + $0x654] sm:$0xf0] }
 0x1fa   : > { %4404 = vmatpush.bf16.msrb.mxu1 %v6980_v41  ;;  %4370 = vmatmul.bf16.vlgmr.msra.gmra.mxu2 %v9254_v7  ;;  %v7628_v41 = vld [vmem:[%s8563_s23 + $0x794] sm:$0xf0]  ;;  %v6771_v24 = vld [vmem:[%s8563_s23 + $0x448] sm:$0xf] }
 0x1fb   : > { %4418 = vmatpush.bf16.msrb.mxu2 %v7108_v4  ;;  %4384 = vmatmul.bf16.vlgmr.msra.gmra.mxu3 %v9264_v11  ;;  %v6804_v4 = vor.u32 %v7532_v43, %v6803_v31  ;;  %v7188_v42 = vor.u32 %v7628_v41, %v7187_v3  ;;  %v6899_v26 = vld [vmem:[%s8563_s23 + $0x548] sm:$0xf]  ;;  %v7552_v61 = vld [vmem:[%s8563_s23 + $0x534] sm:$0xf0] }
 0x1fc   : > { %4432 = vmatpush.bf16.msrb.mxu3 %v7236_v45  ;;  %v7528_v45 = vld [vmem:[%s8563_s23 + $0x474] sm:$0xf0]  ;;  %v7027_v21 = vld [vmem:[%s8563_s23 + $0x648] sm:$0xf]  ;;  %v6900_v31 = vor.u32 %v7556_v28, %v6899_v26  ;;  %v7478_v28 = vld [vmem:[%s8563_s23 + $0x2ec] sm:$0xf] }
 0x1fd   : > { %4391 = vmatpush.bf16.msrb.mxu0 %v6836_v17  ;;  %v7171_v17 = vld [vmem:[%s8563_s23 + $0x768] sm:$0xf]  ;;  %v7028_v43 = vor.u32 %v7588_v5, %v7027_v21  ;;  %v7584_v41 = vld [vmem:[%s8563_s23 + $0x634] sm:$0xf0]  ;;  %v6597_v21 = vld [vmem:[%s8563_s23 + $0x2f8] sm:$0xf0] }
 0x1fe   : > { %4405 = vmatpush.bf16.msrb.mxu1 %v6964_v19  ;;  %v7624_v19 = vld [vmem:[%s8563_s23 + $0x774] sm:$0xf0]  ;;  %v6755_v56 = vld [vmem:[%s8563_s23 + $0x428] sm:$0xf] }
 0x1ff   : > { %4419 = vmatpush.bf16.msrb.mxu2 %v7092_v20  ;;  %v6788_v20 = vor.u32 %v7528_v45, %v6787_v10  ;;  %v7172_v27 = vor.u32 %v7624_v19, %v7171_v17  ;;  %v6883_v60 = vld [vmem:[%s8563_s23 + $0x528] sm:$0xf]  ;;  %v7516_v45 = vld [vmem:[%s8563_s23 + $0x414] sm:$0xf0] }
 0x200   : > { %4433 = vmatpush.bf16.msrb.mxu3 %v7220_v25  ;;  %v7524_v25 = vld [vmem:[%s8563_s23 + $0x454] sm:$0xf0]  ;;  %v7011_v3 = vld [vmem:[%s8563_s23 + $0x628] sm:$0xf]  ;;  %v6884_v13 = vor.u32 %v7552_v61, %v6883_v60  ;;  %v7410_v60 = vld [vmem:[%s8563_s23 + $0xcc] sm:$0xf] }
 0x201   : > { %4392 = vmatpush.bf16.msrb.mxu0 %v6820_v33  ;;  %v7155_v33 = vld [vmem:[%s8563_s23 + $0x748] sm:$0xf]  ;;  %v7548_v18 = vld [vmem:[%s8563_s23 + $0x514] sm:$0xf0]  ;;  %v7442_v61 = vld [vmem:[%s8563_s23 + $0x1cc] sm:$0xf] }
 0x202   : > { %4406 = vmatpush.bf16.msrb.mxu1 %v6948_v36  ;;  %v7620_v36 = vld [vmem:[%s8563_s23 + $0x754] sm:$0xf0]  ;;  %v6739_v10 = vld [vmem:[%s8563_s23 + $0x408] sm:$0xf] }
 0x203   : > { %4420 = vmatpush.bf16.msrb.mxu2 %v7076_v38  ;;  %v6772_v38 = vor.u32 %v7524_v25, %v6771_v24  ;;  %v7156_v63 = vor.u32 %v7620_v36, %v7155_v33  ;;  %v6867_v48 = vld [vmem:[%s8563_s23 + $0x508] sm:$0xf]  ;;  %v7580_v19 = vld [vmem:[%s8563_s23 + $0x614] sm:$0xf0]  ;;  %v6341_v24 = vld [vmem:[%s8563_s23 + $0xf8] sm:$0xf0]  ;;  %v6740_v26 = vor.u32 %v7516_v45, %v6739_v10 }
 0x204   : > { %4434 = vmatpush.bf16.msrb.mxu3 %v7204_v58  ;;  %v7520_v58 = vld [vmem:[%s8563_s23 + $0x434] sm:$0xf0]  ;;  %v6995_v16 = vld [vmem:[%s8563_s23 + $0x608] sm:$0xf]  ;;  %v7446_v25 = vld [vmem:[%s8563_s23 + $0x1ec] sm:$0xf]  ;;  %v6868_v5 = vor.u32 %v7548_v18, %v6867_v48 }
 0x205   : > { %4393 = vmatpush.bf16.msrb.mxu0 %v6804_v4  ;;  %v7139_v4 = vld [vmem:[%s8563_s23 + $0x728] sm:$0xf]  ;;  %v6996_v33 = vor.u32 %v7580_v19, %v6995_v16  ;;  %v7510_v36 = vld [vmem:[%s8563_s23 + $0x3ec] sm:$0xf]  ;;  %v6709_v10 = vld [vmem:[%s8563_s23 + $0x3d8] sm:$0xf0] }
 0x206   : > { %4407 = vmatpush.bf16.msrb.mxu1 %v6932_v6  ;;  %v7616_v6 = vld [vmem:[%s8563_s23 + $0x734] sm:$0xf0]  ;;  %v7406_v48 = vld [vmem:[%s8563_s23 + $0xac] sm:$0xf]  ;;  %v6309_v18 = vld [vmem:[%s8563_s23 + $0xb8] sm:$0xf0] }
 0x207   : > { %4421 = vmatpush.bf16.msrb.mxu2 %v7060_v40  ;;  %v6756_v40 = vor.u32 %v7520_v58, %v6755_v56  ;;  %v7140_v17 = vor.u32 %v7616_v6, %v7139_v4  ;;  %v6600_v58 = vor.u32 %v7478_v28, %v6597_v21  ;;  %v7474_v4 = vld [vmem:[%s8563_s23 + $0x2cc] sm:$0xf]  ;;  %v6581_v6 = vld [vmem:[%s8563_s23 + $0x2d8] sm:$0xf0] }
 0x208   : > { %4435 = vmatpush.bf16.msrb.mxu3 %v7188_v42  ;;  %v7012_v42 = vor.u32 %v7584_v41, %v7011_v3  ;;  %v6453_v41 = vld [vmem:[%s8563_s23 + $0x1d8] sm:$0xf0]  ;;  %v7438_v16 = vld [vmem:[%s8563_s23 + $0x1ac] sm:$0xf] }
 0x209   : > { %4394 = vmatpush.bf16.msrb.mxu0 %v6788_v20  ;;  %v7123_v20 = vld [vmem:[%s8563_s23 + $0x708] sm:$0xf]  ;;  %v6437_v19 = vld [vmem:[%s8563_s23 + $0x1b8] sm:$0xf0]  ;;  %v7402_v28 = vld [vmem:[%s8563_s23 + $0x8c] sm:$0xf] }
 0x20a   : > { %4408 = vmatpush.bf16.msrb.mxu1 %v6916_v22  ;;  %v7612_v22 = vld [vmem:[%s8563_s23 + $0x714] sm:$0xf0]  ;;  %v6293_v21 = vld [vmem:[%s8563_s23 + $0x98] sm:$0xf0] }
 0x20b   : > { %4422 = vmatpush.bf16.msrb.mxu2 %v7044_v23  ;;  %v7414_v23 = vld [vmem:[%s8563_s23 + $0xec] sm:$0xf] }
 0x20c   : > { %4436 = vmatpush.bf16.msrb.mxu3 %v7172_v27  ;;  %v6469_v27 = vld [vmem:[%s8563_s23 + $0x1f8] sm:$0xf0] }
 0x20d   : > { %4395 = vmatpush.bf16.msrb.mxu0 %v6772_v38  ;;  %v6725_v38 = vld [vmem:[%s8563_s23 + $0x3f8] sm:$0xf0]  ;;  %v6472_v56 = vor.u32 %v7446_v25, %v6469_v27  ;;  %v6312_v25 = vor.u32 %v7406_v48, %v6309_v18  ;;  %v9663_v48 = vpop.f32.mrf.mxu0 }
 0x20e   : > { %4409 = vmatpush.bf16.msrb.mxu1 %v6900_v31  ;;  %v7124_v31 = vor.u32 %v7612_v22, %v7123_v20  ;;  %v6728_v3 = vor.u32 %v7510_v36, %v6725_v38  ;;  %v7470_v20 = vld [vmem:[%s8563_s23 + $0x2ac] sm:$0xf]  ;;  %v6565_v22 = vld [vmem:[%s8563_s23 + $0x2b8] sm:$0xf0] }
 0x20f   : > { %4423 = vmatpush.bf16.msrb.mxu2 %v7028_v43  ;;  %v6344_v43 = vor.u32 %v7414_v23, %v6341_v24  ;;  %v7502_v23 = vld [vmem:[%s8563_s23 + $0x3ac] sm:$0xf]  ;;  %v6693_v24 = vld [vmem:[%s8563_s23 + $0x3b8] sm:$0xf0]  ;;  %v6568_v27 = vor.u32 %v7470_v20, %v6565_v22  ;;  %v9668_v22 = vpop.f32.mrf.mxu1 }
 0x210   : > { %4437 = vmatpush.bf16.msrb.mxu3 %v7156_v63  ;;  %v6325_v63 = vld [vmem:[%s8563_s23 + $0xd8] sm:$0xf0]  ;;  %v7466_v38 = vld [vmem:[%s8563_s23 + $0x28c] sm:$0xf] }
 0x211   : > { %4396 = vmatpush.bf16.msrb.mxu0 %v6756_v40  ;;  %v7506_v40 = vld [vmem:[%s8563_s23 + $0x3cc] sm:$0xf]  ;;  %v6328_v45 = vor.u32 %v7410_v60, %v6325_v63  ;;  %v6421_v36 = vld [vmem:[%s8563_s23 + $0x198] sm:$0xf0] }
 0x212   : > { %4410 = vmatpush.bf16.msrb.mxu1 %v6884_v13  ;;  %v6456_v13 = vor.u32 %v7442_v61, %v6453_v41  ;;  %v7398_v61 = vld [vmem:[%s8563_s23 + $0x6c] sm:$0xf] }
 0x213   : > { %4424 = vmatpush.bf16.msrb.mxu2 %v7012_v42  ;;  %v6584_v42 = vor.u32 %v7474_v4, %v6581_v6  ;;  %v7430_v41 = vld [vmem:[%s8563_s23 + $0x16c] sm:$0xf]  ;;  %v6405_v6 = vld [vmem:[%s8563_s23 + $0x178] sm:$0xf0] }
 0x214   : > { %4438 = vmatpush.bf16.msrb.mxu3 %v7140_v17  ;;  %v6712_v17 = vor.u32 %v7506_v40, %v6709_v10  ;;  %v7462_v40 = vld [vmem:[%s8563_s23 + $0x26c] sm:$0xf]  ;;  %v6533_v10 = vld [vmem:[%s8563_s23 + $0x278] sm:$0xf0]  ;;  %v6408_v18 = vor.u32 %v7430_v41, %v6405_v6 }
 0x215   : > { %4397 = vmatpush.bf16.msrb.mxu0 %v6740_v26  ;;  %v6440_v26 = vor.u32 %v7438_v16, %v6437_v19  ;;  %v6536_v16 = vor.u32 %v7462_v40, %v6533_v10  ;;  %v6261_v19 = vld [vmem:[%s8563_s23 + $0x58] sm:$0xf0]  ;;  %v7426_v20 = vld [vmem:[%s8563_s23 + $0x14c] sm:$0xf]  ;;  %v9687_v40 = vpop.f32.mrf.mxu3 }
 0x216   : > { %4411 = vmatpush.bf16.msrb.mxu1 %v6868_v5  ;;  %v7434_v5 = vld [vmem:[%s8563_s23 + $0x18c] sm:$0xf]  ;;  %v6229_v6 = vld [vmem:[%s8563_s23 + $0x18] sm:$0xf0] }
 0x217   : > { %4425 = vmatpush.bf16.msrb.mxu2 %v6996_v33  ;;  %v6696_v33 = vor.u32 %v7502_v23, %v6693_v24  ;;  %v6424_v60 = vor.u32 %v7434_v5, %v6421_v36  ;;  %v6389_v24 = vld [vmem:[%s8563_s23 + $0x158] sm:$0xf0]  ;;  %v7390_v36 = vld [vmem:[%s8563_s23 + $0x2c] sm:$0xf] }
 0x218   : > { %4439 = vmatpush.bf16.msrb.mxu3 %v7124_v31  ;;  %4398 = vmatmul.bf16.vlgmr.msrb.gmra.mxu0 %v9335_v39  ;;  %v6549_v31 = vld [vmem:[%s8563_s23 + $0x298] sm:$0xf0]  ;;  %v6392_v5 = vor.u32 %v7426_v20, %v6389_v24  ;;  %v7542_v24 = vld [vmem:[%s8563_s23 + $0x4ec] sm:$0xf] }
 0x219   : > { %4446 = vmatpush.bf16.msra.mxu0 %v6344_v43  ;;  %4412 = vmatmul.bf16.vlgmr.msrb.gmra.mxu1 %v9342_v52  ;;  %v7498_v43 = vld [vmem:[%s8563_s23 + $0x38c] sm:$0xf]  ;;  %v6552_v63 = vor.u32 %v7466_v38, %v6549_v31  ;;  %v6245_v38 = vld [vmem:[%s8563_s23 + $0x38] sm:$0xf0] }
 0x21a   : > { %4460 = vmatpush.bf16.msra.mxu1 %v6472_v56  ;;  %4426 = vmatmul.bf16.vlgmr.msrb.gmra.mxu2 %v9340_v47  ;;  %v6677_v56 = vld [vmem:[%s8563_s23 + $0x398] sm:$0xf0]  ;;  %v7422_v31 = vld [vmem:[%s8563_s23 + $0x12c] sm:$0xf]  ;;  %v6248_v41 = vor.u32 %v7390_v36, %v6245_v38 }
 0x21b   : > { %4474 = vmatpush.bf16.msra.mxu2 %v6600_v58  ;;  %4440 = vmatmul.bf16.vlgmr.msrb.gmra.mxu3 %v9346_v57  ;;  %v6296_v58 = vor.u32 %v7402_v28, %v6293_v21  ;;  %v6680_v4 = vor.u32 %v7498_v43, %v6677_v56  ;;  %v6645_v28 = vld [vmem:[%s8563_s23 + $0x358] sm:$0xf0] }
 0x21c   : > { %4488 = vmatpush.bf16.msra.mxu3 %v6728_v3  ;;  %v6277_v3 = vld [vmem:[%s8563_s23 + $0x78] sm:$0xf0] }
 0x21d   : > { %4447 = vmatpush.bf16.msra.mxu0 %v6328_v45  ;;  %v7494_v45 = vld [vmem:[%s8563_s23 + $0x36c] sm:$0xf]  ;;  %v6373_v56 = vld [vmem:[%s8563_s23 + $0x138] sm:$0xf0] }
 0x21e   : > { %4461 = vmatpush.bf16.msra.mxu1 %v6456_v13  ;;  %v6661_v13 = vld [vmem:[%s8563_s23 + $0x378] sm:$0xf0]  ;;  %v6376_v10 = vor.u32 %v7422_v31, %v6373_v56  ;;  %v7638_v31 = vld [vmem:[%s8563_s23 + $0x7ec] sm:$0xf] }
 0x21f   : > { %4475 = vmatpush.bf16.msra.mxu2 %v6584_v42  ;;  %v6280_v42 = vor.u32 %v7398_v61, %v6277_v3  ;;  %v6664_v23 = vor.u32 %v7494_v45, %v6661_v13  ;;  %v6629_v61 = vld [vmem:[%s8563_s23 + $0x338] sm:$0xf0]  ;;  %v9683_v3 = vpop.f32.mrf.mxu2  ;;  %v7418_v13 = vld [vmem:[%s8563_s23 + $0x10c] sm:$0xf] }
 0x220   : > { %4489 = vmatpush.bf16.msra.mxu3 %v6712_v17  ;;  %v7394_v17 = vld [vmem:[%s8563_s23 + $0x4c] sm:$0xf]  ;;  %v6613_v20 = vld [vmem:[%s8563_s23 + $0x318] sm:$0xf0] }
 0x221   : > { %4448 = vmatpush.bf16.msra.mxu0 %v6312_v25  ;;  %v7458_v25 = vld [vmem:[%s8563_s23 + $0x24c] sm:$0xf]  ;;  %v6264_v21 = vor.u32 %v7394_v17, %v6261_v19  ;;  %v6485_v17 = vld [vmem:[%s8563_s23 + $0x218] sm:$0xf0] }
 0x222   : > { %4462 = vmatpush.bf16.msra.mxu1 %v6440_v26  ;;  %v6517_v26 = vld [vmem:[%s8563_s23 + $0x258] sm:$0xf0]  ;;  %v7482_v19 = vld [vmem:[%s8563_s23 + $0x30c] sm:$0xf] }
 0x223   : > { %4476 = vmatpush.bf16.msra.mxu2 %v6568_v27  ;;  %v7490_v27 = vld [vmem:[%s8563_s23 + $0x34c] sm:$0xf]  ;;  %v6616_v56 = vor.u32 %v7482_v19, %v6613_v20  ;;  %v9719_v19 = vpop.f32.mrf.mxu3 }
 0x224   : > { %4490 = vmatpush.bf16.msra.mxu3 %v6696_v33  ;;  %v6520_v33 = vor.u32 %v7458_v25, %v6517_v26  ;;  %v6648_v43 = vor.u32 %v7490_v27, %v6645_v28  ;;  %v6853_v25 = vld [vmem:[%s8563_s23 + $0x4f8] sm:$0xf0]  ;;  %v7574_v26 = vld [vmem:[%s8563_s23 + $0x5ec] sm:$0xf]  ;;  %v9700_v27 = vpop.f32.mrf.mxu1 }
 0x225   : > { %4449 = vmatpush.bf16.msra.mxu0 %v6296_v58  ;;  %v7454_v58 = vld [vmem:[%s8563_s23 + $0x22c] sm:$0xf] }
 0x226   : > { %4463 = vmatpush.bf16.msra.mxu1 %v6424_v60  ;;  %v6501_v60 = vld [vmem:[%s8563_s23 + $0x238] sm:$0xf0] }
 0x227   : > { %4477 = vmatpush.bf16.msra.mxu2 %v6552_v63  ;;  %v7486_v63 = vld [vmem:[%s8563_s23 + $0x32c] sm:$0xf]  ;;  %v6504_v45 = vor.u32 %v7454_v58, %v6501_v60  ;;  %v6856_v58 = vor.u32 %v7542_v24, %v6853_v25 }
 0x228   : > { %4491 = vmatpush.bf16.msra.mxu3 %v6680_v4  ;;  %v7386_v4 = vld [vmem:[%s8563_s23 + $0xc] sm:$0xf] }
 0x229   : > { %4450 = vmatpush.bf16.msra.mxu0 %v6280_v42  ;;  %v6357_v42 = vld [vmem:[%s8563_s23 + $0x118] sm:$0xf0]  ;;  %v6232_v28 = vor.u32 %v7386_v4, %v6229_v6  ;;  %v7570_v4 = vld [vmem:[%s8563_s23 + $0x5cc] sm:$0xf] }
 0x22a   : > { %4464 = vmatpush.bf16.msra.mxu1 %v6408_v18  ;;  %v7450_v18 = vld [vmem:[%s8563_s23 + $0x20c] sm:$0xf]  ;;  %v6360_v36 = vor.u32 %v7418_v13, %v6357_v42  ;;  %v7221_v42 = vld [vmem:[%s8563_s23 + $0x7d8] sm:$0xf0] }
 0x22b   : > { %4478 = vmatpush.bf16.msra.mxu2 %v6536_v16  ;;  %v6632_v16 = vor.u32 %v7486_v63, %v6629_v61  ;;  %v6488_v38 = vor.u32 %v7450_v18, %v6485_v17  ;;  %v7538_v61 = vld [vmem:[%s8563_s23 + $0x4cc] sm:$0xf]  ;;  %v2368_v18 = vadd.f32 %v9020_v49, %v9010_v35  ;;  %v6821_v35 = vld [vmem:[%s8563_s23 + $0x4b8] sm:$0xf0] }
 0x22c   : > { %4492 = vmatpush.bf16.msra.mxu3 %v6664_v23  ;;  %v9695_v23 = vpop.f32.mrf.mxu0  ;;  %v7634_v13 = vld [vmem:[%s8563_s23 + $0x7cc] sm:$0xf] }
 0x22d   : > { %4451 = vmatpush.bf16.msra.mxu0 %v6264_v21  ;;  %v6981_v21 = vld [vmem:[%s8563_s23 + $0x5f8] sm:$0xf0]  ;;  %v7566_v49 = vld [vmem:[%s8563_s23 + $0x5ac] sm:$0xf] }
 0x22e   : > { %4465 = vmatpush.bf16.msra.mxu1 %v6392_v5  ;;  %v7606_v5 = vld [vmem:[%s8563_s23 + $0x6ec] sm:$0xf]  ;;  %v6984_v60 = vor.u32 %v7574_v26, %v6981_v21  ;;  %v7224_v21 = vor.u32 %v7634_v13, %v7221_v42 }
 0x22f   : > { %4479 = vmatpush.bf16.msra.mxu2 %v6520_v33  ;;  %v7109_v33 = vld [vmem:[%s8563_s23 + $0x6f8] sm:$0xf0]  ;;  %v7534_v26 = vld [vmem:[%s8563_s23 + $0x4ac] sm:$0xf] }
 0x230   : > { %4493 = vmatpush.bf16.msra.mxu3 %v6648_v43  ;;  %v7237_v43 = vld [vmem:[%s8563_s23 + $0x7f8] sm:$0xf0]  ;;  %v7112_v63 = vor.u32 %v7606_v5, %v7109_v33  ;;  %v7598_v33 = vld [vmem:[%s8563_s23 + $0x6ac] sm:$0xf] }
 0x231   : > { %4452 = vmatpush.bf16.msra.mxu0 %v6248_v41  ;;  %v6837_v41 = vld [vmem:[%s8563_s23 + $0x4d8] sm:$0xf0]  ;;  %v7240_v6 = vor.u32 %v7638_v31, %v7237_v43  ;;  %v2382_v31 = vadd.f32 %v9034_v0, %v2368_v18  ;;  %v7594_v0 = vld [vmem:[%s8563_s23 + $0x68c] sm:$0xf] }
 0x232   : > { %4466 = vmatpush.bf16.msra.mxu1 %v6376_v10  ;;  %v6965_v10 = vld [vmem:[%s8563_s23 + $0x5d8] sm:$0xf0]  ;;  %v6840_v17 = vor.u32 %v7538_v61, %v6837_v41  ;;  %v7626_v41 = vld [vmem:[%s8563_s23 + $0x78c] sm:$0xf] }
 0x233   : > { %4480 = vmatpush.bf16.msra.mxu2 %v6504_v45  ;;  %v7602_v45 = vld [vmem:[%s8563_s23 + $0x6cc] sm:$0xf]  ;;  %v6968_v24 = vor.u32 %v7570_v4, %v6965_v10  ;;  %v6949_v5 = vld [vmem:[%s8563_s23 + $0x5b8] sm:$0xf0]  ;;  %v2396_v4 = vadd.f32 %v9039_v9, %v2382_v31 }
 0x234   : > { %4494 = vmatpush.bf16.msra.mxu3 %v6632_v16  ;;  %v9717_v16 = vpop.f32.mrf.mxu2  ;;  %v9721_v20 = vpop.f32.mrf.mxu0  ;;  %v7096_v25 = vor.u32 %v7602_v45, %v7093_v46  ;;  %v7630_v46 = vld [vmem:[%s8563_s23 + $0x7ac] sm:$0xf]  ;;  %v6952_v43 = vor.u32 %v7566_v49, %v6949_v5  ;;  %v7061_v61 = vld [vmem:[%s8563_s23 + $0x698] sm:$0xf0] }
 0x235   : > { %4453 = vmatpush.bf16.msra.mxu0 %v6232_v28  ;;  %v9726_v28 = vpop.f32.mrf.mxu1  ;;  %v9749_v45 = vpop.f32.mrf.mxu3  ;;  %v7064_v42 = vor.u32 %v7594_v0, %v7061_v61  ;;  %v7526_v18 = vld [vmem:[%s8563_s23 + $0x46c] sm:$0xf]  ;;  %v7045_v49 = vld [vmem:[%s8563_s23 + $0x678] sm:$0xf0] }
 0x236   : > { %4467 = vmatpush.bf16.msra.mxu1 %v6360_v36  ;;  %v7077_v36 = vld [vmem:[%s8563_s23 + $0x6b8] sm:$0xf0]  ;;  %v7622_v5 = vld [vmem:[%s8563_s23 + $0x76c] sm:$0xf] }
 0x237   : > { %4481 = vmatpush.bf16.msra.mxu2 %v6488_v38  ;;  %v7205_v38 = vld [vmem:[%s8563_s23 + $0x7b8] sm:$0xf0]  ;;  %v7618_v0 = vld [vmem:[%s8563_s23 + $0x74c] sm:$0xf] }
 0x238   : > { %4495 = vmatpush.bf16.msra.mxu3 %v6616_v56  ;;  %4454 = vmatmul.bf16.vlgmr.msra.gmra.mxu0 %v9249_v62  ;;  %v6824_v62 = vor.u32 %v7534_v26, %v6821_v35  ;;  %v7080_v56 = vor.u32 %v7598_v33, %v7077_v36  ;;  %v6917_v26 = vld [vmem:[%s8563_s23 + $0x578] sm:$0xf0]  ;;  %v7590_v35 = vld [vmem:[%s8563_s23 + $0x66c] sm:$0xf] }
 0x239   : > { %4502 = vmatpush.bf16.msrb.mxu0 %v6856_v58  ;;  %4468 = vmatmul.bf16.vlgmr.msra.gmra.mxu1 %v9256_v59  ;;  %v6805_v58 = vld [vmem:[%s8563_s23 + $0x498] sm:$0xf0]  ;;  %v7562_v59 = vld [vmem:[%s8563_s23 + $0x58c] sm:$0xf]  ;;  %v7048_v31 = vor.u32 %v7590_v35, %v7045_v49 }
 0x23a   : > { %4516 = vmatpush.bf16.msrb.mxu1 %v6984_v60  ;;  %4482 = vmatmul.bf16.vlgmr.msra.gmra.mxu2 %v9254_v7  ;;  %v7530_v7 = vld [vmem:[%s8563_s23 + $0x48c] sm:$0xf]  ;;  %v7208_v60 = vor.u32 %v7630_v46, %v7205_v38  ;;  %v7173_v33 = vld [vmem:[%s8563_s23 + $0x778] sm:$0xf0]  ;;  %v2480_v46 = vadd.f32 %v9177_v55, %v9167_v37 }
 0x23b   : > { %4530 = vmatpush.bf16.msrb.mxu2 %v7112_v63  ;;  %4496 = vmatmul.bf16.vlgmr.msra.gmra.mxu3 %v9264_v11  ;;  %v6933_v63 = vld [vmem:[%s8563_s23 + $0x598] sm:$0xf0]  ;;  %v6808_v10 = vor.u32 %v7530_v7, %v6805_v58  ;;  %v7176_v58 = vor.u32 %v7622_v5, %v7173_v33 }
 0x23c   : > { %4544 = vmatpush.bf16.msrb.mxu3 %v7240_v6  ;;  %v7189_v11 = vld [vmem:[%s8563_s23 + $0x798] sm:$0xf0]  ;;  %v9747_v6 = vpop.f32.mrf.mxu2  ;;  %v6936_v13 = vor.u32 %v7562_v59, %v6933_v63 }
 0x23d   : > { %4503 = vmatpush.bf16.msrb.mxu0 %v6840_v17  ;;  %v6789_v17 = vld [vmem:[%s8563_s23 + $0x478] sm:$0xf0]  ;;  %v7192_v9 = vor.u32 %v7626_v41, %v7189_v11  ;;  %v9762_v36 = vpop.f32.mrf.mxu1  ;;  %v2494_v41 = vadd.f32 %v9191_v8, %v2480_v46  ;;  %v9785_v8 = vpop.f32.mrf.mxu3 }
 0x23e   : > { %4517 = vmatpush.bf16.msrb.mxu1 %v6968_v24  ;;  %v7558_v24 = vld [vmem:[%s8563_s23 + $0x56c] sm:$0xf]  ;;  %v6901_v59 = vld [vmem:[%s8563_s23 + $0x558] sm:$0xf0] }
 0x23f   : > { %4531 = vmatpush.bf16.msrb.mxu2 %v7096_v25  ;;  %v2410_v25 = vadd.f32 %v9097_v50, %v2396_v4  ;;  %v6792_v50 = vor.u32 %v7526_v18, %v6789_v17  ;;  %v6920_v38 = vor.u32 %v7558_v24, %v6917_v26  ;;  %v7029_v63 = vld [vmem:[%s8563_s23 + $0x658] sm:$0xf0]  ;;  %v7518_v4 = vld [vmem:[%s8563_s23 + $0x42c] sm:$0xf]  ;;  %v2508_v33 = vadd.f32 %v9196_v14, %v2494_v41 }
 0x240   : > { %4545 = vmatpush.bf16.msrb.mxu3 %v7224_v21  ;;  %v9758_v21 = vpop.f32.mrf.mxu0  ;;  %v7157_v37 = vld [vmem:[%s8563_s23 + $0x758] sm:$0xf0] }
 0x241   : > { %4504 = vmatpush.bf16.msrb.mxu0 %v6824_v62  ;;  %v7522_v62 = vld [vmem:[%s8563_s23 + $0x44c] sm:$0xf]  ;;  %v2424_v7 = vadd.f32 %v9099_v51, %v2410_v25  ;;  %v7160_v18 = vor.u32 %v7618_v0, %v7157_v37  ;;  %v6885_v17 = vld [vmem:[%s8563_s23 + $0x538] sm:$0xf0] }
 0x242   : > { %4518 = vmatpush.bf16.msrb.mxu1 %v6952_v43  ;;  %v6773_v43 = vld [vmem:[%s8563_s23 + $0x458] sm:$0xf0] }
 0x243   : > { %4532 = vmatpush.bf16.msrb.mxu2 %v7080_v56  ;;  %v7554_v56 = vld [vmem:[%s8563_s23 + $0x54c] sm:$0xf]  ;;  %v2438_v55 = vadd.f32 %v9116_v12, %v2424_v7  ;;  %v6776_v61 = vor.u32 %v7522_v62, %v6773_v43  ;;  %v7013_v24 = vld [vmem:[%s8563_s23 + $0x638] sm:$0xf0] }
 0x244   : > { %4546 = vmatpush.bf16.msrb.mxu3 %v7208_v60  ;;  %v7586_v60 = vld [vmem:[%s8563_s23 + $0x64c] sm:$0xf]  ;;  %v6904_v51 = vor.u32 %v7554_v56, %v6901_v59  ;;  %v7141_v26 = vld [vmem:[%s8563_s23 + $0x738] sm:$0xf0]  ;;  %v2522_v59 = vadd.f32 %v9260_v2, %v2508_v33 }
 0x245   : > { %4505 = vmatpush.bf16.msrb.mxu0 %v6808_v10  ;;  %v7032_v11 = vor.u32 %v7586_v60, %v7029_v63  ;;  %v6757_v10 = vld [vmem:[%s8563_s23 + $0x438] sm:$0xf0]  ;;  %v7582_v12 = vld [vmem:[%s8563_s23 + $0x62c] sm:$0xf]  ;;  %v2452_v35 = vadd.f32 %v9121_v15, %v2438_v55  ;;  %v4245_v49 = vpop.f32.mrf.mxu1  ;;  %v4120_v63 = vadd.f32 %v9663_v48, %v9063_v54 }
 0x246   : > { %4519 = vmatpush.bf16.msrb.mxu1 %v6936_v13  ;;  %v7550_v13 = vld [vmem:[%s8563_s23 + $0x52c] sm:$0xf]  ;;  %v6760_v5 = vor.u32 %v7518_v4, %v6757_v10  ;;  %v7016_v46 = vor.u32 %v7582_v12, %v7013_v24  ;;  %v6869_v56 = vld [vmem:[%s8563_s23 + $0x518] sm:$0xf0]  ;;  %v2536_v2 = vadd.f32 %v9262_v44, %v2522_v59  ;;  %v4273_v4 = vpop.f32.mrf.mxu3  ;;  %v7920_v10 = vld [vmem:[%s8573_s16 + $0x78] sm:$0xff] }
 0x247   : > { %4533 = vmatpush.bf16.msrb.mxu2 %v7064_v42  ;;  %v9780_v42 = vpop.f32.mrf.mxu2  ;;  %v7546_v62 = vld [vmem:[%s8563_s23 + $0x50c] sm:$0xf]  ;;  %v4122_v43 = vadd.f32 %v9695_v23, %v2452_v35  ;;  %v7125_v14 = vld [vmem:[%s8563_s23 + $0x718] sm:$0xf0]  ;;  %v4134_v54 = vadd.f32 %v9668_v22, %v4120_v63 }
 0x248   : > { %4547 = vmatpush.bf16.msrb.mxu3 %v7192_v9  ;;  %v4231_v25 = vpop.f32.mrf.mxu0  ;;  %v7614_v9 = vld [vmem:[%s8563_s23 + $0x72c] sm:$0xf]  ;;  %v6872_v37 = vor.u32 %v7546_v62, %v6869_v56  ;;  %v7919_v22 = vld [vmem:[%s8573_s16 + $0x70] sm:$0xff]  ;;  %v7916_v62 = vld [vmem:[%s8573_s16 + $0x58] sm:$0xff] }
 0x249   : > { %4506 = vmatpush.bf16.msrb.mxu0 %v6792_v50  ;;  %v6888_v50 = vor.u32 %v7550_v13, %v6885_v17  ;;  %v7144_v15 = vor.u32 %v7614_v9, %v7141_v26  ;;  %v7578_v7 = vld [vmem:[%s8563_s23 + $0x60c] sm:$0xf]  ;;  %v4136_v55 = vadd.f32 %v9700_v27, %v4122_v43  ;;  %v2550_v13 = vadd.f32 %v9281_v30, %v2536_v2  ;;  %v7907_v59 = vld [vmem:[%s8573_s16 + $0x10] sm:$0xff] }
 0x24a   : > { %4520 = vmatpush.bf16.msrb.mxu1 %v6920_v38  ;;  %v7514_v38 = vld [vmem:[%s8563_s23 + $0x40c] sm:$0xf] }
 0x24b   : > { %4534 = vmatpush.bf16.msrb.mxu2 %v7048_v31  ;;  %v6741_v31 = vld [vmem:[%s8563_s23 + $0x418] sm:$0xf0]  ;;  %v7610_v60 = vld [vmem:[%s8563_s23 + $0x70c] sm:$0xf]  ;;  %v4150_v48 = vadd.f32 %v9717_v16, %v4136_v55  ;;  %v2564_v30 = vadd.f32 %v9286_v34, %v2550_v13  ;;  %v7906_v55 = vld [vmem:[%s8573_s16 + $0x8] sm:$0xff] }
 0x24c   : > { %4548 = vmatpush.bf16.msrb.mxu3 %v7176_v58  ;;  %v6997_v58 = vld [vmem:[%s8563_s23 + $0x618] sm:$0xf0]  ;;  %v6744_v0 = vor.u32 %v7514_v38, %v6741_v31  ;;  %v7128_v41 = vor.u32 %v7610_v60, %v7125_v14  ;;  %v7908_v38 = vld [vmem:[%s8573_s16 + $0x18] sm:$0xff] }
 0x24d   : > { %4507 = vmatpush.bf16.msrb.mxu0 %v6776_v61  ;;  %v7000_v23 = vor.u32 %v7578_v7, %v6997_v58  ;;  %v4247_v17 = vpop.f32.mrf.mxu1  ;;  %v4164_v16 = vadd.f32 %v9719_v19, %v4150_v48  ;;  %v7918_v19 = vld [vmem:[%s8573_s16 + $0x68] sm:$0xff]  ;;  %v9833_v31 = vld [vmem:[%s8571_s8] sm:$0xf]  ;;  %v7915_v14 = vld [vmem:[%s8573_s16 + $0x50] sm:$0xff] }
 0x24e   : > { %4521 = vmatpush.bf16.msrb.mxu1 %v6904_v51  ;;  %v7912_v51 = vld [vmem:[%s8573_s16 + $0x38] sm:$0xff]  ;;  %v4275_v34 = vpop.f32.mrf.mxu3  ;;  %v7905_v48 = vld [vmem:[%s8573_s16] sm:$0xff] }
 0x24f   : > { %4535 = vmatpush.bf16.msrb.mxu2 %v7032_v11  ;;  %v4259_v61 = vpop.f32.mrf.mxu2  ;;  %v4232_v11 = vadd.f32 %v4231_v25, %v9221_v1  ;;  %v7911_v1 = vld [vmem:[%s8573_s16 + $0x30] sm:$0xff]  ;;  %v4178_v24 = vadd.f32 %v9758_v21, %v4164_v16 }
 0x250   : > { %4549 = vmatpush.bf16.msrb.mxu3 %v7160_v18  ;;  %v4233_v27 = vpop.f32.mrf.mxu0  ;;  %v4148_v18 = vadd.f32 %v9683_v3, %v4134_v54 }
 0x251   : > { %4508 = vmatpush.bf16.msrb.mxu0 %v6760_v5  ;;  %v4246_v44 = vadd.f32 %v4245_v49, %v4232_v11  ;;  %v4234_v25 = vadd.f32 %v4233_v27, %v2564_v30  ;;  %v7917_v5 = vld [vmem:[%s8573_s16 + $0x60] sm:$0xff] }
 0x252   : > { %4522 = vmatpush.bf16.msrb.mxu1 %v6888_v50  ;;  %v4162_v12 = vadd.f32 %v9687_v40, %v4148_v18  ;;  %v7909_v40 = vld [vmem:[%s8573_s16 + $0x20] sm:$0xff]  ;;  %v7927_v18 = vld [vmem:[%s8573_s16 + $0xb0] sm:$0xff] }
 0x253   : > { %4536 = vmatpush.bf16.msrb.mxu2 %v7016_v46  ;;  %v4260_v3 = vadd.f32 %v4259_v61, %v4246_v44  ;;  %v4248_v35 = vadd.f32 %v4247_v17, %v4234_v25  ;;  %v7913_v27 = vld [vmem:[%s8573_s16 + $0x40] sm:$0xff] }
 0x254   : > { %4550 = vmatpush.bf16.msrb.mxu3 %v7144_v15  ;;  %v7925_v25 = vld [vmem:[%s8573_s16 + $0xa0] sm:$0xff] }
 0x255   : > { %4509 = vmatpush.bf16.msrb.mxu0 %v6744_v0 }
 0x256   : > { %4523 = vmatpush.bf16.msrb.mxu1 %v6872_v37  ;;  %v4301_v21 = vpop.f32.mrf.mxu1  ;;  %v4561_v37 = vperm.slane %v9833_v31, 1 }
 0x257   : > { %4537 = vmatpush.bf16.msrb.mxu2 %v7000_v23  ;;  %v4261_v9 = vpop.f32.mrf.mxu2 }
 0x258   : > { %4551 = vmatpush.bf16.msrb.mxu3 %v7128_v41  ;;  %4510 = vmatmul.bf16.vlgmr.msrb.gmra.mxu0 %v9335_v39  ;;  %v7910_v39 = vld [vmem:[%s8573_s16 + $0x28] sm:$0xff]  ;;  %v4287_v26 = vpop.f32.mrf.mxu0  ;;  %v4262_v50 = vadd.f32 %v4261_v9, %v4248_v35  ;;  %v7921_v35 = vld [vmem:[%s8573_s16 + $0x80] sm:$0xff] }
 0x259   : > { %4862 = vmatpush.bf16.msra.mxu0 %v7912_v51  ;;  %4524 = vmatmul.bf16.vlgmr.msrb.gmra.mxu1 %v9342_v52  ;;  %v4176_v52 = vadd.f32 %v9721_v20, %v4162_v12 }
 0x25a   : > { %4876 = vmatpush.bf16.msra.mxu1 %v7920_v10  ;;  %4538 = vmatmul.bf16.vlgmr.msrb.gmra.mxu2 %v9340_v47  ;;  %v4274_v47 = vadd.f32 %v4273_v4, %v4260_v3  ;;  %v4276_v56 = vadd.f32 %v4275_v34, %v4262_v50  ;;  %v7928_v10 = vld [vmem:[%s8573_s16 + $0xb8] sm:$0xff]  ;;  %v7922_v34 = vld [vmem:[%s8573_s16 + $0x88] sm:$0xff] }
 0x25b   : > { %4552 = vmatmul.bf16.vlgmr.msrb.gmra.mxu3 %v9346_v57  ;;  %v4192_v57 = vadd.f32 %v9762_v36, %v4178_v24  ;;  %v4190_v33 = vadd.f32 %v9726_v28, %v4176_v52  ;;  %4890 = vmatpush.bf16.msra.mxu2 %v7928_v10 }
 0x25c   : > { %v4288_v49 = vadd.f32 %v4287_v26, %v4274_v47  ;;  %v7923_v47 = vld [vmem:[%s8573_s16 + $0x90] sm:$0xff] }
 0x25d   : > { %4863 = vmatpush.bf16.msra.mxu0 %v7911_v1  ;;  %v4206_v20 = vadd.f32 %v9780_v42, %v4192_v57  ;;  %v4204_v46 = vadd.f32 %v9747_v6, %v4190_v33  ;;  %v4560_v6 = vperm.slane %v9833_v31, 0 }
 0x25e   : > { %4877 = vmatpush.bf16.msra.mxu1 %v7919_v22  ;;  %v4302_v36 = vadd.f32 %v4301_v21, %v4288_v49  ;;  %v4329_v42 = vpop.f32.mrf.mxu3  ;;  %v4303_v0 = vpop.f32.mrf.mxu1 }
 0x25f   : > { %v4220_v43 = vadd.f32 %v9785_v8, %v4206_v20  ;;  %v4315_v15 = vpop.f32.mrf.mxu2  ;;  %v4218_v58 = vadd.f32 %v9749_v45, %v4204_v46  ;;  %v7914_v45 = vld [vmem:[%s8573_s16 + $0x48] sm:$0xff]  ;;  %4891 = vmatpush.bf16.msra.mxu2 %v7927_v18  ;;  %v7931_v18 = vld [vmem:[%s8573_s16 + $0xd0] sm:$0xff] }
 0x260   : > { %v4316_v7 = vadd.f32 %v4315_v15, %v4302_v36  ;;  %v4289_v28 = vpop.f32.mrf.mxu0 }
 0x261   : > { %4864 = vmatpush.bf16.msra.mxu0 %v7910_v39  ;;  %v4290_v60 = vadd.f32 %v4289_v28, %v4276_v56  ;;  %v4572_v63 = vadd.f32 %v4560_v6, %v4220_v43  ;;  %v4568_v23 = vadd.f32 %v4560_v6, %v4218_v58  ;;  %v7926_v39 = vld [vmem:[%s8573_s16 + $0xa8] sm:$0xff] }
 0x262   : > { %4878 = vmatpush.bf16.msra.mxu1 %v7918_v19  ;;  %v4330_v8 = vadd.f32 %v4329_v42, %v4316_v7  ;;  %v7924_v19 = vld [vmem:[%s8573_s16 + $0x98] sm:$0xff] }
 0x263   : > { %v4304_v61 = vadd.f32 %v4303_v0, %v4290_v60  ;;  %v4588_v41 = vmul.f32 0.01, %v4572_v63  ;;  %vm4580_vm0 = vcmp.gt.f32.partialorder %v4572_v63, 0.0  ;;  %v4584_v54 = vmul.f32 0.01, %v4568_v23  ;;  %4892 = vmatpush.bf16.msra.mxu2 %v7926_v39 }
 0x264   : > { %v4569_v2 = vadd.f32 %v4561_v37, %v4330_v8  ;;  %vm4576_vm1 = vcmp.gt.f32.partialorder %v4568_v23, 0.0 }
 0x265   : > { %4865 = vmatpush.bf16.msra.mxu0 %v7909_v40  ;;  %v4596_v17 = vsel %vm4580_vm0, %v4572_v63, %v4588_v41  ;;  %v4592_v22 = vsel %vm4576_vm1, %v4568_v23, %v4584_v54  ;;  %v7934_v54 = vld [vmem:[%s8573_s16 + $0xe8] sm:$0xff] }
 0x266   : > { %4879 = vmatpush.bf16.msra.mxu1 %v7917_v5  ;;  %v4331_v4 = vpop.f32.mrf.mxu3  ;;  %v4585_v1 = vmul.f32 0.01, %v4569_v2  ;;  %vm4577_vm2 = vcmp.gt.f32.partialorder %v4569_v2, 0.0  ;;  %v4602_v16 = vpack.c.bf16 %v4596_v17, %v4592_v22 }
 0x267   : > { %v4317_v51 = vpop.f32.mrf.mxu2  ;;  %4893 = vmatpush.bf16.msra.mxu2 %v7925_v25  ;;  %v9923_v25 = vld [vmem:[#allocation24_spill] sm:$0xff] }
 0x268   : > { %v4318_v11 = vadd.f32 %v4317_v51, %v4304_v61  ;;  %v4593_v3 = vsel %vm4577_vm2, %v4569_v2, %v4585_v1  ;;  %v7930_v1 = vld [vmem:[%s8573_s16 + $0xc8] sm:$0xff] }
 0x269   : > { %4866 = vmatpush.bf16.msra.mxu0 %v7908_v38 }
 0x26a   : > { %4880 = vmatpush.bf16.msra.mxu1 %v7916_v62  ;;  %v4332_v13 = vadd.f32 %v4331_v4, %v4318_v11 }
 0x26b   : > { %4894 = vmatpush.bf16.msra.mxu2 %v7924_v19 }
 0x26c   : > { %v4573_v44 = vadd.f32 %v4561_v37, %v4332_v13  ;;  %v7932_v13 = vld [vmem:[%s8573_s16 + $0xd8] sm:$0xff] }
 0x26d   : > { %4867 = vmatpush.bf16.msra.mxu0 %v7907_v59 }
 0x26e   : > { %4881 = vmatpush.bf16.msra.mxu1 %v7915_v14  ;;  %vm4581_vm3 = vcmp.gt.f32.partialorder %v4573_v44, 0.0  ;;  %v4589_v30 = vmul.f32 0.01, %v4573_v44 }
 0x26f   : > { %4895 = vmatpush.bf16.msra.mxu2 %v7923_v47 }
 0x270   : > { %v4597_v12 = vsel %vm4581_vm3, %v4573_v44, %v4589_v30  ;;  %v7929_v30 = vld [vmem:[%s8573_s16 + $0xc0] sm:$0xff] }
 0x271   : > { %4868 = vmatpush.bf16.msra.mxu0 %v7906_v55  ;;  %v4603_v24 = vpack.c.bf16 %v4597_v12, %v4593_v3  ;;  %v7936_v55 = vld [vmem:[%s8573_s16 + $0xf8] sm:$0xff] }
 0x272   : > { %4882 = vmatpush.bf16.msra.mxu1 %v7914_v45  ;;  %4904 = vmatpush.bf16.msra.mxu3 %v7936_v55  ;;  %v7935_v45 = vld [vmem:[%s8573_s16 + $0xf0] sm:$0xff] }
 0x273   : > { %4896 = vmatpush.bf16.msra.mxu2 %v7922_v34 }
 0x275   : > { %4869 = vmatpush.bf16.msra.mxu0 %v7905_v48  ;;  %v4343_v52 = vpop.f32.mrf.mxu0  ;;  %v7933_v48 = vld [vmem:[%s8573_s16 + $0xe0] sm:$0xff] }
 0x276   : > { %4883 = vmatpush.bf16.msra.mxu1 %v7913_v27  ;;  %v4357_v9 = vpop.f32.mrf.mxu1  ;;  %v4344_v57 = vadd.f32 %v4343_v52, %v9385_v32  ;;  %4905 = vmatpush.bf16.msra.mxu3 %v7935_v45 }
 0x277   : > { %4897 = vmatpush.bf16.msra.mxu2 %v7921_v35 }
 0x278   : > { %4870 = vmatmul.bf16.vlgmr.msra.gmra.mxu0 %v4602_v16  ;;  %v4358_v5 = vadd.f32 %v4357_v9, %v4344_v57 }
 0x279   : > { %4884 = vmatmul.bf16.vlgmr.msra.gmra.mxu1 %v4603_v24 }
 0x27a   : > { %4906 = vmatpush.bf16.msra.mxu3 %v7934_v54 }
 0x27d   : > { %v4371_v26 = vpop.f32.mrf.mxu2  ;;  %v4345_v21 = vpop.f32.mrf.mxu0 }
 0x27e   : > { %v4385_v40 = vpop.f32.mrf.mxu3  ;;  %v4359_v49 = vpop.f32.mrf.mxu1  ;;  %v4372_v33 = vadd.f32 %v4371_v26, %v4358_v5  ;;  %v4346_v20 = vadd.f32 %v4345_v21, %v9409_v29  ;;  %v4562_v29 = vperm.slane %v9833_v31, 2  ;;  %4907 = vmatpush.bf16.msra.mxu3 %v7933_v48 }
 0x280   : > { %v4386_v46 = vadd.f32 %v4385_v40, %v4372_v33  ;;  %v4360_v43 = vadd.f32 %v4359_v49, %v4346_v20 }
 0x282   : > { %4908 = vmatpush.bf16.msra.mxu3 %v7932_v13 }
 0x285   : > { %v4373_v50 = vpop.f32.mrf.mxu2 }
 0x286   : > { %v4387_v38 = vpop.f32.mrf.mxu3  ;;  %v4374_v56 = vadd.f32 %v4373_v50, %v4360_v43  ;;  %4909 = vmatpush.bf16.msra.mxu3 %v7931_v18 }
 0x288   : > { %v4388_v28 = vadd.f32 %v4387_v38, %v4374_v56  ;;  %v4563_v38 = vperm.slane %v9833_v31, 3 }
 0x28a   : > { %4910 = vmatpush.bf16.msra.mxu3 %v7930_v1 }
 0x28e   : > { %4911 = vmatpush.bf16.msra.mxu3 %v7929_v30 }
 0x295   : > { %v4399_v36 = vpop.f32.mrf.mxu0 }
 0x296   : > { %v4413_v62 = vpop.f32.mrf.mxu1  ;;  %v4400_v15 = vadd.f32 %v4399_v36, %v4386_v46 }
 0x298   : > { %v4414_v32 = vadd.f32 %v4413_v62, %v4400_v15 }
 0x29d   : > { %v4427_v7 = vpop.f32.mrf.mxu2  ;;  %v4401_v58 = vpop.f32.mrf.mxu0 }
 0x29e   : > { %v4428_v42 = vadd.f32 %v4427_v7, %v4414_v32  ;;  %v4441_v6 = vpop.f32.mrf.mxu3  ;;  %v4402_v59 = vadd.f32 %v4401_v58, %v4388_v28  ;;  %v4415_v60 = vpop.f32.mrf.mxu1 }
 0x2a0   : > { %v4442_v14 = vadd.f32 %v4441_v6, %v4428_v42  ;;  %v4416_v63 = vadd.f32 %v4415_v60, %v4402_v59 }
 0x2a2   : > { %v4570_v8 = vadd.f32 %v4562_v29, %v4442_v14 }
 0x2a4   : > { %v4586_v41 = vmul.f32 0.01, %v4570_v8  ;;  %vm4578_vm4 = vcmp.gt.f32.partialorder %v4570_v8, 0.0 }
 0x2a5   : > { %v4429_v0 = vpop.f32.mrf.mxu2 }
 0x2a6   : > { %v4430_v37 = vadd.f32 %v4429_v0, %v4416_v63  ;;  %v4443_v23 = vpop.f32.mrf.mxu3  ;;  %v4594_v11 = vsel %vm4578_vm4, %v4570_v8, %v4586_v41  ;;  %v4600_v8 = vld [vmem:[#allocation2] sm:$0xff] }
 0x2a8   : > { %v4444_v61 = vadd.f32 %v4443_v23, %v4430_v37 }
 0x2aa   : > { %v4574_v51 = vadd.f32 %v4562_v29, %v4444_v61 }
 0x2ac   : > { %vm4582_vm5 = vcmp.gt.f32.partialorder %v4574_v51, 0.0  ;;  %v4590_v2 = vmul.f32 0.01, %v4574_v51 }
 0x2ae   : > { %v4598_v4 = vsel %vm4582_vm5, %v4574_v51, %v4590_v2 }
 0x2af   : > { %v4604_v10 = vpack.c.bf16 %v4598_v4, %v4594_v11  ;;  %v4601_v11 = vld [vmem:[#allocation2 + $0x8] sm:$0xff] }
 0x2b1   : > { %4898 = vmatmul.bf16.vlgmr.msra.gmra.mxu2 %v4604_v10 }
 0x2b5   : > { %v4455_v27 = vpop.f32.mrf.mxu0 }
 0x2b6   : > { %v4469_v17 = vpop.f32.mrf.mxu1  ;;  %v4456_v22 = vadd.f32 %v4455_v27, %v9531_v53 }
 0x2b8   : > { %v4470_v12 = vadd.f32 %v4469_v17, %v4456_v22 }
 0x2bd   : > { %v4483_v44 = vpop.f32.mrf.mxu2  ;;  %v4457_v3 = vpop.f32.mrf.mxu0 }
 0x2be   : > { %v4497_v16 = vpop.f32.mrf.mxu3  ;;  %v4471_v24 = vpop.f32.mrf.mxu1  ;;  %v4484_v39 = vadd.f32 %v4483_v44, %v4470_v12  ;;  %v4458_v19 = vadd.f32 %v4457_v3, %v9923_v25 }
 0x2c0   : > { %v4498_v9 = vadd.f32 %v4497_v16, %v4484_v39  ;;  %v4472_v26 = vadd.f32 %v4471_v24, %v4458_v19 }
 0x2c5   : > { %v4485_v52 = vpop.f32.mrf.mxu2 }
 0x2c6   : > { %v4499_v47 = vpop.f32.mrf.mxu3  ;;  %v4486_v21 = vadd.f32 %v4485_v52, %v4472_v26 }
 0x2c8   : > { %v4500_v53 = vadd.f32 %v4499_v47, %v4486_v21 }
 0x2d5   : > { %v4511_v34 = vpop.f32.mrf.mxu0 }
 0x2d6   : > { %v4512_v57 = vadd.f32 %v4511_v34, %v4498_v9  ;;  %v4525_v40 = vpop.f32.mrf.mxu1 }
 0x2d8   : > { %v4526_v35 = vadd.f32 %v4525_v40, %v4512_v57 }
 0x2dd   : > { %v4539_v49 = vpop.f32.mrf.mxu2  ;;  %v4513_v20 = vpop.f32.mrf.mxu0 }
 0x2de   : > { %v4540_v5 = vadd.f32 %v4539_v49, %v4526_v35  ;;  %v4553_v33 = vpop.f32.mrf.mxu3  ;;  %v4514_v50 = vadd.f32 %v4513_v20, %v4500_v53  ;;  %v4527_v36 = vpop.f32.mrf.mxu1 }
 0x2e0   : > { %v4554_v46 = vadd.f32 %v4553_v33, %v4540_v5  ;;  %v4528_v62 = vadd.f32 %v4527_v36, %v4514_v50 }
 0x2e2   : > { %v4571_v15 = vadd.f32 %v4563_v38, %v4554_v46 }
 0x2e4   : > { %v4587_v28 = vmul.f32 0.01, %v4571_v15  ;;  %vm4579_vm6 = vcmp.gt.f32.partialorder %v4571_v15, 0.0 }
 0x2e5   : > { %v4541_v43 = vpop.f32.mrf.mxu2 }
 0x2e6   : > { %v4542_v56 = vadd.f32 %v4541_v43, %v4528_v62  ;;  %v4555_v32 = vpop.f32.mrf.mxu3  ;;  %v4595_v6 = vsel %vm4579_vm6, %v4571_v15, %v4587_v28 }
 0x2e8   : > { %v4556_v7 = vadd.f32 %v4555_v32, %v4542_v56 }
 0x2ea   : > { %v4575_v42 = vadd.f32 %v4563_v38, %v4556_v7 }
 0x2ec   : > { %vm4583_vm7 = vcmp.gt.f32.partialorder %v4575_v42, 0.0  ;;  %v4591_v58 = vmul.f32 0.01, %v4575_v42 }
 0x2ee   : > { %v4599_v59 = vsel %vm4583_vm7, %v4575_v42, %v4591_v58 }
 0x2ef   : > { %v4605_v60 = vpack.c.bf16 %v4599_v59, %v4595_v6 }
 0x2f1   : > { %4912 = vmatmul.bf16.vlgmr.msra.gmra.mxu3 %v4605_v60 }
 0x2f5   : > { %v4871_v29 = vpop.f32.mrf.mxu0 }
 0x2f6   : > { %v4885_v14 = vpop.f32.mrf.mxu1 }
 0x2f7   : > { %v4886_v31 = vadd.f32 %v4885_v14, %v4871_v29 }
 0x2fd   : > { %v4873_v45 = vpop.f32.mrf.mxu0 }
 0x2fe   : > { %v4887_v55 = vpop.f32.mrf.mxu1 }
 0x2ff   : > { %v4888_v51 = vadd.f32 %v4887_v55, %v4873_v45 }
 0x334   : > { %v4899_v63 = vpop.f32.mrf.mxu2 }
 0x335   : > { %v4900_v0 = vadd.f32 %v4899_v63, %v4886_v31 }
 0x33c   : > { %v4901_v41 = vpop.f32.mrf.mxu2 }
 0x33d   : > { %v4902_v2 = vadd.f32 %v4901_v41, %v4888_v51 }
 0x374   : > { %v4913_v37 = vpop.f32.mrf.mxu3 }
 0x375   : > { %v4914_v23 = vadd.f32 %v4913_v37, %v4900_v0 }
 0x377   : > { %v4918_v61 = vadd.f32 %v4914_v23, %v4600_v8 }
 0x379   : > { %4920 = vst [vmem:[#allocation2] sm:$0xff] %v4918_v61 }
 0x37c   : > { %v4915_v4 = vpop.f32.mrf.mxu3 }
 0x37d   : > { %v4916_v10 = vadd.f32 %v4915_v4, %v4902_v2  ;;  %4925 = sbr.rel (%p7369_p2) target bundleno = 908 (0x38c), region = 84 }
 0x37f   : > { %v4919_v54 = vadd.f32 %v4916_v10, %v4601_v11 }
 0x381   : > { %4921 = vst [vmem:[#allocation2 + $0x8] sm:$0xff] %v4919_v54 }
 0x382   : > { %v4926_v48 = vld [vmem:[#allocation2] sm:$0xff]  ;;  %v8055_v13 = vld [vmem:[#allocation12] ss:$0 sm:$0xff] }
 0x383   : > { %v4932_v18 = vadd.f32 %v8055_v13, %v4926_v48 }
 0x385   : > { %4934 = vst [vmem:[#allocation13] sm:$0xff] %v4932_v18 }
 0x388   : > { %v4927_v27 = vld [vmem:[#allocation2 + $0x8] sm:$0xff] }
 0x389   : > { %v4933_v17 = vadd.f32 %v8055_v13, %v4927_v27 }
 0x38b   : > { %4935 = vst [vmem:[#allocation13 + $0x8] sm:$0xff] %v4933_v17 }
 0x38c PF: > { %p7991_p3 = scmp.eq.s32.totalorder %s8445_s30, 3  ;;  %s9925_s0 = sld [smem:[#allocation27_spill]] }
 0x38d   : > { %s8373_s24 = smov [#allocation13]   ;;  %s8374_s2 = smov 128  }
 0x38e   : > { %s4944_s12 = sshll.u32 %s8373_s24, 4  ;;  %s8375_s7 = smov 8   ;;  %s4945_s12 = int_to_ptr.vmem [resolvable:$true] %s4944_s12 }
 0x392   : > { %s4946_s18 = sshll.u32 %s9925_s0, 4  ;;  %s4947_s18 = int_to_ptr.hbm [resolvable:$true] %s4946_s18 }
 0x393   : > { %7958 = dma.vmem_to_hbm [thread:$0]  (%p7991_p3), %s4945_s12, 256, %s4947_s18, [#allocation5], %s8374_s2, %s8374_s2, %s8375_s7  }
 0x394   : > { %8335 = dma.done.wait (%p7991_p3), [#allocation5], 256  }
 0x395   : > { %8337 = vsyncadd (%p7991_p3), [#allocation5], 4294967040 }
 0x396 PF: > { %s9926_s21 = sld [smem:[#allocation21_spill]]  ;;  %s9930_s24 = smov %s8344_s25 }
 0x397   : > { %s9927_s19 = sld [smem:[#allocation19_spill]]  ;;  %s9932_s27 = smov %s8356_s28 }
 0x398   : > { %s9928_s26 = sld [smem:[#allocation23_spill]] }
 0x399   : > { %s9929_s30 = sld [smem:[#allocation22_spill]] }
 0x39c   : > { %s20_s29 = sadd.s32 1, %s9926_s21  }
 0x39d   : > { %p17_p4 = scmp.ge.s32.totalorder %s20_s29, 6   ;;  %s9931_s25 = smov %s9927_s19 }
 0x39f   : > { %s9933_s28 = smov %s9929_s30  ;;  %19 = sbr.rel (!%p17_p4) target bundleno = 9 (0x9), region = 140 }
 0x3a4   :  { %4963 = vsyncpa [#allocation4], 1 }
 0x3a5   :  { %4965 = vsyncpa [#allocation4 + $0x1], 1 }
 0x3a6   :  { %4966 = vsyncpa [#allocation7], 1 }
 0x3a7   :  { %4967 = vsyncpa [#allocation5], 1 }
 0x3a8   :  { %4969 = vsyncpa [#allocation5 + $0x1], 1 }

</bundles_post_ra>
